<compile_context>
chip_gen: v5e
topology: v5e:2x2
jax: 0.10.0
libtpu: 0.0.40
codegen_flags: <defaults>
</compile_context>

<pallas_src>
import jax
import jax.numpy as jnp
from jax.experimental import pallas as pl
from jax.experimental.pallas import tpu as pltpu

BN_EPS = 1e-5


def _hardswish(y):
    return y * jnp.clip(y + 3.0, 0.0, 6.0) * (1.0 / 6.0)


# ------------------------------ fused Pallas kernel -------------------------------

def _make_fused_kernel(n_pairs, n_imgs):
    """n_pairs = N (batch of image pairs); n_imgs = 2N (full + masked stacked on batch)."""

    def kernel(patch_ref, sw_ref, ss_ref, st_ref,        # stem conv-as-GEMM + folded BN
               hw_ref, hb_ref,                            # 1x1 conv_head (+ bias)
               w1a_hbm, w1b_hbm, s1_ref, t1_ref,          # reg-head layer 1 (w1 split, in HBM)
               w2_ref, s2_ref, t2_ref,                    # reg-head layer 2
               w3_ref, b3_ref,                            # reg-head layer 3 (lane-padded)
               o_ref,                                     # [N, 128] f32 (cols 3.. are pad)
               pooled_ref, w1a_vmem, w1b_vmem, sem):      # scratch
        i = pl.program_id(0)

        w1a_copy = pltpu.make_async_copy(w1a_hbm, w1a_vmem, sem.at[0])
        w1b_copy = pltpu.make_async_copy(w1b_hbm, w1b_vmem, sem.at[1])

        @pl.when(i == 0)
        def _():
            pooled_ref[...] = jnp.zeros_like(pooled_ref)
            # Prefetch the biggest weights (w1: 1.25 MiB bf16) behind the stem grid steps.
            w1a_copy.start()
            w1b_copy.start()

        # ---- stem: 3x3/s2 conv (as GEMM) + folded BN + hardswish, fused per-image GAP ----
        y = jnp.dot(patch_ref[0], sw_ref[...], preferred_element_type=jnp.float32)
        y = _hardswish(y * ss_ref[...] + st_ref[...])                      # [HW, 128] f32
        # f32 GAP accumulation (cast to bf16 only at the head matmul).
        pooled_ref[pl.ds(i, 1), :] = jnp.mean(y, axis=0, keepdims=True)

        # ---- on the last image: conv_head + hardswish + fused regression head ----
        @pl.when(i == n_imgs - 1)
        def _():
            w1a_copy.wait()
            w1b_copy.wait()
            pooled = pooled_ref[...].astype(jnp.bfloat16)                  # [8, 128]
            feat = jnp.dot(pooled, hw_ref[...],
                           preferred_element_type=jnp.float32) + hb_ref[...]
            feat = _hardswish(feat)                                        # [8, 1280] f32
            ff = feat[0:n_pairs].astype(jnp.bfloat16)                      # full-image features
            fm = feat[n_pairs:n_imgs].astype(jnp.bfloat16)                 # masked-object features
            # concat(ff, fm, axis=1) @ w1  ==  ff @ w1[:1280] + fm @ w1[1280:]
            h = (jnp.dot(ff, w1a_vmem[...], preferred_element_type=jnp.float32)
                 + jnp.dot(fm, w1b_vmem[...], preferred_element_type=jnp.float32))
            h = jnp.maximum(h * s1_ref[...] + t1_ref[...], 0.0)            # Linear+BN+ReLU
            # TODO(synk): Dropout(0.2) is identity in eval mode; train-mode dropout not implemented.
            h = jnp.dot(h.astype(jnp.bfloat16), w2_ref[...],
                        preferred_element_type=jnp.float32)
            h = jnp.maximum(h * s2_ref[...] + t2_ref[...], 0.0)            # Linear+BN+ReLU
            out = jnp.dot(h.astype(jnp.bfloat16), w3_ref[...],
                          preferred_element_type=jnp.float32) + b3_ref[...]
            o_ref[...] = out.astype(o_ref.dtype)

    return kernel


def fused_forward(patches, p, n_pairs):
    """patches: [2N, HW, Kpad] bf16 (im2col of the stem conv). Returns [N, 128] f32."""
    n_imgs, hw, k = patches.shape
    cstem = p["stem_w"].shape[1]                       # 128 (stem C_out padded 16 -> 128)
    chead = p["head_w"].shape[1]                       # 1280 (backbone_output_dim)
    pooled_rows = ((n_imgs + 7) // 8) * 8              # full-sublane GAP accumulator

    kernel = _make_fused_kernel(n_pairs, n_imgs)
    return pl.pallas_call(
        kernel,
        out_shape=jax.ShapeDtypeStruct((n_pairs, 128), jnp.float32),
        grid_spec=pltpu.PrefetchScalarGridSpec(
            num_scalar_prefetch=0,
            grid=(n_imgs,),
            in_specs=[
                pl.BlockSpec((1, hw, k), lambda i: (i, 0, 0)),      # patches, one image/step
                pl.BlockSpec((k, cstem), lambda i: (0, 0)),         # stem_w
                pl.BlockSpec((1, cstem), lambda i: (0, 0)),         # stem BN scale
                pl.BlockSpec((1, cstem), lambda i: (0, 0)),         # stem BN shift
                pl.BlockSpec((cstem, chead), lambda i: (0, 0)),     # conv_head weight
                pl.BlockSpec((1, chead), lambda i: (0, 0)),         # conv_head bias
                pl.BlockSpec(memory_space=pl.ANY),                  # w1a (HBM, manual prefetch)
                pl.BlockSpec(memory_space=pl.ANY),                  # w1b (HBM, manual prefetch)
                pl.BlockSpec((1, 256), lambda i: (0, 0)),           # s1
                pl.BlockSpec((1, 256), lambda i: (0, 0)),           # t1
                pl.BlockSpec((256, 128), lambda i: (0, 0)),         # w2
                pl.BlockSpec((1, 128), lambda i: (0, 0)),           # s2
                pl.BlockSpec((1, 128), lambda i: (0, 0)),           # t2
                pl.BlockSpec((128, 128), lambda i: (0, 0)),         # w3 (lane-padded 3 -> 128)
                pl.BlockSpec((1, 128), lambda i: (0, 0)),           # b3
            ],
            out_specs=pl.BlockSpec((n_pairs, 128), lambda i: (0, 0)),
            scratch_shapes=[
                pltpu.VMEM((pooled_rows, cstem), jnp.float32),      # per-image GAP accumulator
                pltpu.VMEM((chead, 256), jnp.bfloat16),             # w1a landing buffer
                pltpu.VMEM((chead, 256), jnp.bfloat16),             # w1b landing buffer
                pltpu.SemaphoreType.DMA((2,)),
            ]),
        compiler_params=pltpu.CompilerParams(
            # Cross-step state (GAP accumulator, w1 prefetch DMA) -> sequential grid.
            dimension_semantics=("arbitrary",)),
    )(patches,
      p["stem_w"], p["stem_scale"].reshape(1, cstem), p["stem_shift"].reshape(1, cstem),
      p["head_w"], p["head_b"].reshape(1, chead),
      p["w1a"], p["w1b"], p["s1"].reshape(1, -1), p["t1"].reshape(1, -1),
      p["w2"], p["s2"].reshape(1, -1), p["t2"].reshape(1, -1),
      p["w3"], p["b3"].reshape(1, -1))


# ------------------------------ glue (plain JAX) ---------------------------

def im2col_3x3_s2(x_nhwc):
    """3x3, stride 2, padding 1 patches, row ordering (kh, kw, c). Matches PyTorch output size."""
    n, h, w, c = x_nhwc.shape
    ho = (h - 1) // 2 + 1
    wo = (w - 1) // 2 + 1
    xp = jnp.pad(x_nhwc, ((0, 0), (1, 1), (1, 1), (0, 0)))
    cols = []
    for kh in range(3):
        for kw in range(3):
            cols.append(xp[:, kh:kh + 2 * ho:2, kw:kw + 2 * wo:2, :])
    patches = jnp.concatenate(cols, axis=-1)            # [N, Ho, Wo, 9*C]
    return patches.reshape(n * ho * wo, 9 * c), ho, wo


def dimension_predictor(full_img, masked_obj, params):
    n = full_img.shape[0]
    # One backbone pass for both images: shared weights loaded once, 2x the GEMM rows.
    batched = jnp.concatenate([full_img, masked_obj], axis=0)        # [2N, C, H, W]
    x = jnp.transpose(batched, (0, 2, 3, 1))                         # NCHW -> NHWC
    patches, ho, wo = im2col_3x3_s2(x)                               # [2N*Ho*Wo, 27]
    k = params["stem_w"].shape[0]                                    # contraction padded 27 -> 32
    # TODO(synk): im2col/pad/cast remain XLA glue; could fold into the pallas input DMA
    # (allow_input_fusion) or in-kernel strided reads once the real trunk is ported.
    patches = jnp.pad(patches, ((0, 0), (0, k - patches.shape[1]))).astype(jnp.bfloat16)
    patches = patches.reshape(2 * n, ho * wo, k)                     # Ho*Wo (=256) is 8-aligned
    out = fused_forward(patches, params, n)                          # [N, 128]
    return out[:, :3]


# ------------------------------ parameters ---------------------------------

def _bn_fold(gamma, beta, mean, var):
    scale = gamma / jnp.sqrt(var + BN_EPS)
    shift = beta - mean * scale
    return scale, shift


def init_params(key):
    ks = jax.random.split(key, 24)

    def nrm(k, shape, s=0.05):
        return s * jax.random.normal(k, shape, jnp.float32)

    p = {}
    # Stem: Conv2d(3, 16, 3, stride=2, padding=1, bias=False) + BN + hardswish
    w_conv = nrm(ks[0], (16, 3, 3, 3))                                  # PyTorch OIHW
    w = jnp.transpose(w_conv, (2, 3, 1, 0)).reshape(27, 16)             # (kh,kw,cin) x cout
    p["stem_w"] = jnp.pad(w, ((0, 5), (0, 112))).astype(jnp.bfloat16)   # K 27->32, Cout 16->128
    g = 1.0 + nrm(ks[1], (16,)); b = nrm(ks[2], (16,))
    m = nrm(ks[3], (16,)); v = jnp.abs(1.0 + nrm(ks[4], (16,)))
    sc, sh = _bn_fold(g, b, m, v)
    p["stem_scale"] = jnp.pad(sc, (0, 112), constant_values=1.0)        # padded ch -> hswish(0)=0
    p["stem_shift"] = jnp.pad(sh, (0, 112), constant_values=0.0)

    # conv_head (1x1, 16 -> 1280, bias) + hardswish (timm MobileNetV3 head runs after GAP).
    # TODO(synk): full timm MobileNetV3-Large inverted-residual trunk (16->960 ch) not ported.
    hw_ = nrm(ks[5], (16, 1280))
    p["head_w"] = jnp.pad(hw_, ((0, 112), (0, 0))).astype(jnp.bfloat16)  # rows 16.. zero (inert)
    p["head_b"] = nrm(ks[6], (1280,))

    # Regression head: Linear(2560,256)+BN+ReLU+Drop, Linear(256,128)+BN+ReLU, Linear(128,3)
    w1 = nrm(ks[7], (2560, 256)); b1 = nrm(ks[8], (256,))
    g1 = 1.0 + nrm(ks[9], (256,)); bb1 = nrm(ks[10], (256,))
    m1 = nrm(ks[11], (256,)); v1 = jnp.abs(1.0 + nrm(ks[12], (256,)))
    s1, t1 = _bn_fold(g1, bb1, m1, v1)
    # concat(full, masked) @ w1 == full @ w1[:1280] + masked @ w1[1280:]  (done in-kernel)
    p["w1a"] = w1[:1280].astype(jnp.bfloat16)
    p["w1b"] = w1[1280:].astype(jnp.bfloat16)
    p["s1"] = s1
    p["t1"] = b1 * s1 + t1                                              # linear bias folded into BN shift

    w2 = nrm(ks[13], (256, 128)); b2 = nrm(ks[14], (128,))
    g2 = 1.0 + nrm(ks[15], (128,)); bb2 = nrm(ks[16], (128,))
    m2 = nrm(ks[17], (128,)); v2 = jnp.abs(1.0 + nrm(ks[18], (128,)))
    s2, t2 = _bn_fold(g2, bb2, m2, v2)
    p["w2"] = w2.astype(jnp.bfloat16)
    p["s2"] = s2
    p["t2"] = b2 * s2 + t2

    w3 = nrm(ks[19], (128, 3)); b3 = nrm(ks[20], (3,))
    p["w3"] = jnp.pad(w3, ((0, 0), (0, 125))).astype(jnp.bfloat16)      # lane-pad 3 -> 128
    p["b3"] = jnp.pad(b3, (0, 125))
    return p


# --------------------------------- main -------------------------------------

if __name__ == "__main__":
    key = jax.random.PRNGKey(0)
    k_img, k_msk, k_par = jax.random.split(key, 3)

    N, C, H, W = 2, 3, 32, 32
    full_img = jax.random.normal(k_img, (N, C, H, W), jnp.float32)    # NCHW, like PyTorch
    masked_obj = jax.random.normal(k_msk, (N, C, H, W), jnp.float32)  # NCHW, like PyTorch
    params = init_params(k_par)

    out = jax.jit(dimension_predictor)(full_img, masked_obj, params)
    out = jax.block_until_ready(out)
    assert out.shape == (N, 3) and out.dtype == jnp.float32
    print("KERNEL_OK")
</pallas_src>

<mosaic_0001>
module attributes {stable_mosaic.version = 11 : i64} {
  func.func @kernel(%arg0: i32, %arg1: memref<1x256x32xbf16, #tpu.memory_space<vmem>>, %arg2: memref<32x128xbf16, #tpu.memory_space<vmem>>, %arg3: memref<1x128xf32, #tpu.memory_space<vmem>>, %arg4: memref<1x128xf32, #tpu.memory_space<vmem>>, %arg5: memref<128x1280xbf16, #tpu.memory_space<vmem>>, %arg6: memref<1x1280xf32, #tpu.memory_space<vmem>>, %arg7: memref<1280x256xbf16, #tpu.memory_space<any>>, %arg8: memref<1280x256xbf16, #tpu.memory_space<any>>, %arg9: memref<1x256xf32, #tpu.memory_space<vmem>>, %arg10: memref<1x256xf32, #tpu.memory_space<vmem>>, %arg11: memref<256x128xbf16, #tpu.memory_space<vmem>>, %arg12: memref<1x128xf32, #tpu.memory_space<vmem>>, %arg13: memref<1x128xf32, #tpu.memory_space<vmem>>, %arg14: memref<128x128xbf16, #tpu.memory_space<vmem>>, %arg15: memref<1x128xf32, #tpu.memory_space<vmem>>, %arg16: memref<2x128xf32, #tpu.memory_space<vmem>>, %arg17: memref<8x128xf32, #tpu.memory_space<vmem>>, %arg18: memref<1280x256xbf16, #tpu.memory_space<vmem>>, %arg19: memref<1280x256xbf16, #tpu.memory_space<vmem>>, %arg20: memref<2x!tpu.dma_semaphore, #tpu.memory_space<semaphore_mem>>) attributes {dimension_semantics = [#tpu.dimension_semantics<arbitrary>], iteration_bounds = array<i64: 4>, scalar_prefetch = 0 : i64, scratch_operands = 4 : i64, tpu.core_type = #tpu.core_type<tc>, window_params = [{transform_indices = @transform_0, window_bounds = array<i64: 1, 256, 32>}, {pipeline_mode = #tpu.pipeline_mode<synchronous>, transform_indices = @transform_1, window_bounds = array<i64: 32, 128>}, {pipeline_mode = #tpu.pipeline_mode<synchronous>, transform_indices = @transform_2, window_bounds = array<i64: 1, 128>}, {pipeline_mode = #tpu.pipeline_mode<synchronous>, transform_indices = @transform_3, window_bounds = array<i64: 1, 128>}, {pipeline_mode = #tpu.pipeline_mode<synchronous>, transform_indices = @transform_4, window_bounds = array<i64: 128, 1280>}, {pipeline_mode = #tpu.pipeline_mode<synchronous>, transform_indices = @transform_5, window_bounds = array<i64: 1, 1280>}, {}, {}, {pipeline_mode = #tpu.pipeline_mode<synchronous>, transform_indices = @transform_8, window_bounds = array<i64: 1, 256>}, {pipeline_mode = #tpu.pipeline_mode<synchronous>, transform_indices = @transform_9, window_bounds = array<i64: 1, 256>}, {pipeline_mode = #tpu.pipeline_mode<synchronous>, transform_indices = @transform_10, window_bounds = array<i64: 256, 128>}, {pipeline_mode = #tpu.pipeline_mode<synchronous>, transform_indices = @transform_11, window_bounds = array<i64: 1, 128>}, {pipeline_mode = #tpu.pipeline_mode<synchronous>, transform_indices = @transform_12, window_bounds = array<i64: 1, 128>}, {pipeline_mode = #tpu.pipeline_mode<synchronous>, transform_indices = @transform_13, window_bounds = array<i64: 128, 128>}, {pipeline_mode = #tpu.pipeline_mode<synchronous>, transform_indices = @transform_14, window_bounds = array<i64: 1, 128>}, {pipeline_mode = #tpu.pipeline_mode<synchronous>, transform_indices = @transform_15, window_bounds = array<i64: 2, 128>}]} {
    %c0_i32 = arith.constant 0 : i32
    %0 = arith.cmpi eq, %arg0, %c0_i32 : i32
    %1 = arith.extui %0 : i1 to i32
    %c0_i32_0 = arith.constant 0 : i32
    %c1_i32 = arith.constant 1 : i32
    %c0_i32_1 = arith.constant 0 : i32
    %2 = arith.cmpi ne, %1, %c0_i32_1 : i32
    scf.if %2 {
      %cst_20 = arith.constant 0.000000e+00 : f32
      %31 = vector.broadcast %cst_20 : f32 to vector<8x128xf32>
      %c0_21 = arith.constant 0 : index
      %c0_22 = arith.constant 0 : index
      %32 = vector.load %arg17[%c0_21, %c0_22] : memref<8x128xf32, #tpu.memory_space<vmem>>, vector<8x128xf32>
      tpu.vector_store %arg17[%c0_21, %c0_22], %31 {strides = array<i32>} : memref<8x128xf32, #tpu.memory_space<vmem>>, vector<8x128xf32>,
      %33 = tpu.memref_slice %arg20[%c0_i32_0] : memref<2x!tpu.dma_semaphore, #tpu.memory_space<semaphore_mem>> -> memref<1x!tpu.dma_semaphore, #tpu.memory_space<semaphore_mem>>
      %34 = tpu.memref_squeeze %33 : memref<1x!tpu.dma_semaphore, #tpu.memory_space<semaphore_mem>> -> memref<!tpu.dma_semaphore, #tpu.memory_space<semaphore_mem>>
      tpu.enqueue_dma source(%arg7 : memref<1280x256xbf16, #tpu.memory_space<any>>) target(%arg18 : memref<1280x256xbf16, #tpu.memory_space<vmem>>) target_semaphore(%34 : memref<!tpu.dma_semaphore, #tpu.memory_space<semaphore_mem>>)
      %35 = tpu.memref_slice %arg20[%c1_i32] : memref<2x!tpu.dma_semaphore, #tpu.memory_space<semaphore_mem>> -> memref<1x!tpu.dma_semaphore, #tpu.memory_space<semaphore_mem>>
      %36 = tpu.memref_squeeze %35 : memref<1x!tpu.dma_semaphore, #tpu.memory_space<semaphore_mem>> -> memref<!tpu.dma_semaphore, #tpu.memory_space<semaphore_mem>>
      tpu.enqueue_dma source(%arg8 : memref<1280x256xbf16, #tpu.memory_space<any>>) target(%arg19 : memref<1280x256xbf16, #tpu.memory_space<vmem>>) target_semaphore(%36 : memref<!tpu.dma_semaphore, #tpu.memory_space<semaphore_mem>>)
    } else {
    }
    %c0 = arith.constant 0 : index
    %c0_2 = arith.constant 0 : index
    %c0_3 = arith.constant 0 : index
    %3 = vector.load %arg1[%c0, %c0_2, %c0_3] : memref<1x256x32xbf16, #tpu.memory_space<vmem>>, vector<1x256x32xbf16>
    %4 = vector.shape_cast %3 : vector<1x256x32xbf16> to vector<256x32xbf16>
    %c0_4 = arith.constant 0 : index
    %c0_5 = arith.constant 0 : index
    %5 = vector.load %arg2[%c0_4, %c0_5] : memref<32x128xbf16, #tpu.memory_space<vmem>>, vector<32x128xbf16>
    %cst = arith.constant dense<0.000000e+00> : vector<256x128xf32>
    %6 = tpu.matmul %4, %5, %cst {dimension_numbers = #tpu.dot_dimension_numbers<[1], [0], [0], [1], [0, 0, 1, 1], [], []>} : vector<256x32xbf16>, vector<32x128xbf16>, vector<256x128xf32> -> vector<256x128xf32>
    %c0_6 = arith.constant 0 : index
    %c0_7 = arith.constant 0 : index
    %7 = vector.load %arg3[%c0_6, %c0_7] : memref<1x128xf32, #tpu.memory_space<vmem>>, vector<1x128xf32>
    %8 = vector.broadcast %7 : vector<1x128xf32> to vector<256x128xf32>
    %9 = arith.mulf %6, %8 : vector<256x128xf32>
    %c0_8 = arith.constant 0 : index
    %c0_9 = arith.constant 0 : index
    %10 = vector.load %arg4[%c0_8, %c0_9] : memref<1x128xf32, #tpu.memory_space<vmem>>, vector<1x128xf32>
    %11 = vector.broadcast %10 : vector<1x128xf32> to vector<256x128xf32>
    %12 = arith.addf %9, %11 : vector<256x128xf32>
    %cst_10 = arith.constant 3.000000e+00 : f32
    %13 = vector.broadcast %cst_10 : f32 to vector<256x128xf32>
    %14 = arith.addf %12, %13 : vector<256x128xf32>
    %cst_11 = arith.constant 0.000000e+00 : f32
    %cst_12 = arith.constant 6.000000e+00 : f32
    %15 = vector.broadcast %cst_11 : f32 to vector<256x128xf32>
    %16 = arith.maximumf %15, %14 : vector<256x128xf32>
    %17 = vector.broadcast %cst_12 : f32 to vector<256x128xf32>
    %18 = arith.minimumf %17, %16 : vector<256x128xf32>
    %19 = arith.mulf %12, %18 : vector<256x128xf32>
    %cst_13 = arith.constant 0.166666672 : f32
    %20 = vector.broadcast %cst_13 : f32 to vector<256x128xf32>
    %21 = arith.mulf %19, %20 : vector<256x128xf32>
    %cst_14 = arith.constant dense<0.000000e+00> : vector<128xf32>
    %22 = vector.multi_reduction <add>, %21, %cst_14 [0] : vector<256x128xf32> to vector<128xf32>
    %23 = vector.shape_cast %22 : vector<128xf32> to vector<1x128xf32>
    %cst_15 = arith.constant 2.560000e+02 : f32
    %24 = vector.broadcast %cst_15 : f32 to vector<1x128xf32>
    %25 = arith.divf %23, %24 : vector<1x128xf32>
    %26 = arith.index_cast %arg0 : i32 to index
    %c0_16 = arith.constant 0 : index
    %27 = vector.load %arg17[%26, %c0_16] : memref<8x128xf32, #tpu.memory_space<vmem>>, vector<1x128xf32>
    tpu.vector_store %arg17[%26, %c0_16], %25 {strides = array<i32>} : memref<8x128xf32, #tpu.memory_space<vmem>>, vector<1x128xf32>,
    %c3_i32 = arith.constant 3 : i32
    %28 = arith.cmpi eq, %arg0, %c3_i32 : i32
    %29 = arith.extui %28 : i1 to i32
    %c0_i32_17 = arith.constant 0 : i32
    %c1_i32_18 = arith.constant 1 : i32
    %c0_i32_19 = arith.constant 0 : i32
    %30 = arith.cmpi ne, %29, %c0_i32_19 : i32
    scf.if %30 {
      %31 = tpu.memref_slice %arg20[%c0_i32_17] : memref<2x!tpu.dma_semaphore, #tpu.memory_space<semaphore_mem>> -> memref<1x!tpu.dma_semaphore, #tpu.memory_space<semaphore_mem>>
      %32 = tpu.memref_squeeze %31 : memref<1x!tpu.dma_semaphore, #tpu.memory_space<semaphore_mem>> -> memref<!tpu.dma_semaphore, #tpu.memory_space<semaphore_mem>>
      tpu.wait_dma2 semaphore(%32 : memref<!tpu.dma_semaphore, #tpu.memory_space<semaphore_mem>>) src(%arg7 : memref<1280x256xbf16, #tpu.memory_space<any>>) dst(%arg18 : memref<1280x256xbf16, #tpu.memory_space<vmem>>)
      %33 = tpu.memref_slice %arg20[%c1_i32_18] : memref<2x!tpu.dma_semaphore, #tpu.memory_space<semaphore_mem>> -> memref<1x!tpu.dma_semaphore, #tpu.memory_space<semaphore_mem>>
      %34 = tpu.memref_squeeze %33 : memref<1x!tpu.dma_semaphore, #tpu.memory_space<semaphore_mem>> -> memref<!tpu.dma_semaphore, #tpu.memory_space<semaphore_mem>>
      tpu.wait_dma2 semaphore(%34 : memref<!tpu.dma_semaphore, #tpu.memory_space<semaphore_mem>>) src(%arg8 : memref<1280x256xbf16, #tpu.memory_space<any>>) dst(%arg19 : memref<1280x256xbf16, #tpu.memory_space<vmem>>)
      %c0_20 = arith.constant 0 : index
      %c0_21 = arith.constant 0 : index
      %35 = vector.load %arg17[%c0_20, %c0_21] : memref<8x128xf32, #tpu.memory_space<vmem>>, vector<8x128xf32>
      %36 = arith.truncf %35 : vector<8x128xf32> to vector<8x128xbf16>
      %c0_22 = arith.constant 0 : index
      %c0_23 = arith.constant 0 : index
      %37 = vector.load %arg5[%c0_22, %c0_23] : memref<128x1280xbf16, #tpu.memory_space<vmem>>, vector<128x1280xbf16>
      %cst_24 = arith.constant dense<0.000000e+00> : vector<8x1280xf32>
      %38 = tpu.matmul %36, %37, %cst_24 {dimension_numbers = #tpu.dot_dimension_numbers<[1], [0], [0], [1], [0, 0, 1, 1], [], []>} : vector<8x128xbf16>, vector<128x1280xbf16>, vector<8x1280xf32> -> vector<8x1280xf32>
      %c0_25 = arith.constant 0 : index
      %c0_26 = arith.constant 0 : index
      %39 = vector.load %arg6[%c0_25, %c0_26] : memref<1x1280xf32, #tpu.memory_space<vmem>>, vector<1x1280xf32>
      %40 = vector.broadcast %39 : vector<1x1280xf32> to vector<8x1280xf32>
      %41 = arith.addf %38, %40 : vector<8x1280xf32>
      %cst_27 = arith.constant 3.000000e+00 : f32
      %42 = vector.broadcast %cst_27 : f32 to vector<8x1280xf32>
      %43 = arith.addf %41, %42 : vector<8x1280xf32>
      %cst_28 = arith.constant 0.000000e+00 : f32
      %cst_29 = arith.constant 6.000000e+00 : f32
      %44 = vector.broadcast %cst_28 : f32 to vector<8x1280xf32>
      %45 = arith.maximumf %44, %43 : vector<8x1280xf32>
      %46 = vector.broadcast %cst_29 : f32 to vector<8x1280xf32>
      %47 = arith.minimumf %46, %45 : vector<8x1280xf32>
      %48 = arith.mulf %41, %47 : vector<8x1280xf32>
      %cst_30 = arith.constant 0.166666672 : f32
      %49 = vector.broadcast %cst_30 : f32 to vector<8x1280xf32>
      %50 = arith.mulf %48, %49 : vector<8x1280xf32>
      %51 = vector.extract_strided_slice %50 {offsets = [0, 0], sizes = [2, 1280], strides = [1, 1]} : vector<8x1280xf32> to vector<2x1280xf32>
      %52 = arith.truncf %51 : vector<2x1280xf32> to vector<2x1280xbf16>
      %53 = vector.extract_strided_slice %50 {offsets = [2, 0], sizes = [2, 1280], strides = [1, 1]} : vector<8x1280xf32> to vector<2x1280xf32>
      %54 = arith.truncf %53 : vector<2x1280xf32> to vector<2x1280xbf16>
      %c0_31 = arith.constant 0 : index
      %c0_32 = arith.constant 0 : index
      %55 = vector.load %arg18[%c0_31, %c0_32] : memref<1280x256xbf16, #tpu.memory_space<vmem>>, vector<1280x256xbf16>
      %cst_33 = arith.constant dense<0.000000e+00> : vector<2x256xf32>
      %56 = tpu.matmul %52, %55, %cst_33 {dimension_numbers = #tpu.dot_dimension_numbers<[1], [0], [0], [1], [0, 0, 1, 1], [], []>} : vector<2x1280xbf16>, vector<1280x256xbf16>, vector<2x256xf32> -> vector<2x256xf32>
      %c0_34 = arith.constant 0 : index
      %c0_35 = arith.constant 0 : index
      %57 = vector.load %arg19[%c0_34, %c0_35] : memref<1280x256xbf16, #tpu.memory_space<vmem>>, vector<1280x256xbf16>
      %cst_36 = arith.constant dense<0.000000e+00> : vector<2x256xf32>
      %58 = tpu.matmul %54, %57, %cst_36 {dimension_numbers = #tpu.dot_dimension_numbers<[1], [0], [0], [1], [0, 0, 1, 1], [], []>} : vector<2x1280xbf16>, vector<1280x256xbf16>, vector<2x256xf32> -> vector<2x256xf32>
      %59 = arith.addf %56, %58 : vector<2x256xf32>
      %c0_37 = arith.constant 0 : index
      %c0_38 = arith.constant 0 : index
      %60 = vector.load %arg9[%c0_37, %c0_38] : memref<1x256xf32, #tpu.memory_space<vmem>>, vector<1x256xf32>
      %61 = vector.broadcast %60 : vector<1x256xf32> to vector<2x256xf32>
      %62 = arith.mulf %59, %61 : vector<2x256xf32>
      %c0_39 = arith.constant 0 : index
      %c0_40 = arith.constant 0 : index
      %63 = vector.load %arg10[%c0_39, %c0_40] : memref<1x256xf32, #tpu.memory_space<vmem>>, vector<1x256xf32>
      %64 = vector.broadcast %63 : vector<1x256xf32> to vector<2x256xf32>
      %65 = arith.addf %62, %64 : vector<2x256xf32>
      %cst_41 = arith.constant 0.000000e+00 : f32
      %66 = vector.broadcast %cst_41 : f32 to vector<2x256xf32>
      %67 = arith.maximumf %65, %66 : vector<2x256xf32>
      %68 = arith.truncf %67 : vector<2x256xf32> to vector<2x256xbf16>
      %c0_42 = arith.constant 0 : index
      %c0_43 = arith.constant 0 : index
      %69 = vector.load %arg11[%c0_42, %c0_43] : memref<256x128xbf16, #tpu.memory_space<vmem>>, vector<256x128xbf16>
      %cst_44 = arith.constant dense<0.000000e+00> : vector<2x128xf32>
      %70 = tpu.matmul %68, %69, %cst_44 {dimension_numbers = #tpu.dot_dimension_numbers<[1], [0], [0], [1], [0, 0, 1, 1], [], []>} : vector<2x256xbf16>, vector<256x128xbf16>, vector<2x128xf32> -> vector<2x128xf32>
      %c0_45 = arith.constant 0 : index
      %c0_46 = arith.constant 0 : index
      %71 = vector.load %arg12[%c0_45, %c0_46] : memref<1x128xf32, #tpu.memory_space<vmem>>, vector<1x128xf32>
      %72 = vector.broadcast %71 : vector<1x128xf32> to vector<2x128xf32>
      %73 = arith.mulf %70, %72 : vector<2x128xf32>
      %c0_47 = arith.constant 0 : index
      %c0_48 = arith.constant 0 : index
      %74 = vector.load %arg13[%c0_47, %c0_48] : memref<1x128xf32, #tpu.memory_space<vmem>>, vector<1x128xf32>
      %75 = vector.broadcast %74 : vector<1x128xf32> to vector<2x128xf32>
      %76 = arith.addf %73, %75 : vector<2x128xf32>
      %cst_49 = arith.constant 0.000000e+00 : f32
      %77 = vector.broadcast %cst_49 : f32 to vector<2x128xf32>
      %78 = arith.maximumf %76, %77 : vector<2x128xf32>
      %79 = arith.truncf %78 : vector<2x128xf32> to vector<2x128xbf16>
      %c0_50 = arith.constant 0 : index
      %c0_51 = arith.constant 0 : index
      %80 = vector.load %arg14[%c0_50, %c0_51] : memref<128x128xbf16, #tpu.memory_space<vmem>>, vector<128x128xbf16>
      %cst_52 = arith.constant dense<0.000000e+00> : vector<2x128xf32>
      %81 = tpu.matmul %79, %80, %cst_52 {dimension_numbers = #tpu.dot_dimension_numbers<[1], [0], [0], [1], [0, 0, 1, 1], [], []>} : vector<2x128xbf16>, vector<128x128xbf16>, vector<2x128xf32> -> vector<2x128xf32>
      %c0_53 = arith.constant 0 : index
      %c0_54 = arith.constant 0 : index
      %82 = vector.load %arg15[%c0_53, %c0_54] : memref<1x128xf32, #tpu.memory_space<vmem>>, vector<1x128xf32>
      %83 = vector.broadcast %82 : vector<1x128xf32> to vector<2x128xf32>
      %84 = arith.addf %81, %83 : vector<2x128xf32>
      %c0_55 = arith.constant 0 : index
      %c0_56 = arith.constant 0 : index
      %85 = vector.load %arg16[%c0_55, %c0_56] : memref<2x128xf32, #tpu.memory_space<vmem>>, vector<2x128xf32>
      tpu.vector_store %arg16[%c0_55, %c0_56], %84 {strides = array<i32>} : memref<2x128xf32, #tpu.memory_space<vmem>>, vector<2x128xf32>,
    } else {
    }
    return
  }
  func.func @transform_0(%arg0: i32) -> (i32, i32, i32) {
    %c0_i32 = arith.constant 0 : i32
    %c0_i32_0 = arith.constant 0 : i32
    %c0_i32_1 = arith.constant 0 : i32
    return %arg0, %c0_i32, %c0_i32_0 : i32, i32, i32
  }
  func.func @transform_1(%arg0: i32) -> (i32, i32) {
    %c0_i32 = arith.constant 0 : i32
    %c0_i32_0 = arith.constant 0 : i32
    %c0_i32_1 = arith.constant 0 : i32
    return %c0_i32, %c0_i32_0 : i32, i32
  }
  func.func @transform_2(%arg0: i32) -> (i32, i32) {
    %c0_i32 = arith.constant 0 : i32
    %c0_i32_0 = arith.constant 0 : i32
    %c0_i32_1 = arith.constant 0 : i32
    return %c0_i32, %c0_i32_0 : i32, i32
  }
  func.func @transform_3(%arg0: i32) -> (i32, i32) {
    %c0_i32 = arith.constant 0 : i32
    %c0_i32_0 = arith.constant 0 : i32
    %c0_i32_1 = arith.constant 0 : i32
    return %c0_i32, %c0_i32_0 : i32, i32
  }
  func.func @transform_4(%arg0: i32) -> (i32, i32) {
    %c0_i32 = arith.constant 0 : i32
    %c0_i32_0 = arith.constant 0 : i32
    %c0_i32_1 = arith.constant 0 : i32
    return %c0_i32, %c0_i32_0 : i32, i32
  }
  func.func @transform_5(%arg0: i32) -> (i32, i32) {
    %c0_i32 = arith.constant 0 : i32
    %c0_i32_0 = arith.constant 0 : i32
    %c0_i32_1 = arith.constant 0 : i32
    return %c0_i32, %c0_i32_0 : i32, i32
  }
  func.func @transform_8(%arg0: i32) -> (i32, i32) {
    %c0_i32 = arith.constant 0 : i32
    %c0_i32_0 = arith.constant 0 : i32
    %c0_i32_1 = arith.constant 0 : i32
    return %c0_i32, %c0_i32_0 : i32, i32
  }
  func.func @transform_9(%arg0: i32) -> (i32, i32) {
    %c0_i32 = arith.constant 0 : i32
    %c0_i32_0 = arith.constant 0 : i32
    %c0_i32_1 = arith.constant 0 : i32
    return %c0_i32, %c0_i32_0 : i32, i32
  }
  func.func @transform_10(%arg0: i32) -> (i32, i32) {
    %c0_i32 = arith.constant 0 : i32
    %c0_i32_0 = arith.constant 0 : i32
    %c0_i32_1 = arith.constant 0 : i32
    return %c0_i32, %c0_i32_0 : i32, i32
  }
  func.func @transform_11(%arg0: i32) -> (i32, i32) {
    %c0_i32 = arith.constant 0 : i32
    %c0_i32_0 = arith.constant 0 : i32
    %c0_i32_1 = arith.constant 0 : i32
    return %c0_i32, %c0_i32_0 : i32, i32
  }
  func.func @transform_12(%arg0: i32) -> (i32, i32) {
    %c0_i32 = arith.constant 0 : i32
    %c0_i32_0 = arith.constant 0 : i32
    %c0_i32_1 = arith.constant 0 : i32
    return %c0_i32, %c0_i32_0 : i32, i32
  }
  func.func @transform_13(%arg0: i32) -> (i32, i32) {
    %c0_i32 = arith.constant 0 : i32
    %c0_i32_0 = arith.constant 0 : i32
    %c0_i32_1 = arith.constant 0 : i32
    return %c0_i32, %c0_i32_0 : i32, i32
  }
  func.func @transform_14(%arg0: i32) -> (i32, i32) {
    %c0_i32 = arith.constant 0 : i32
    %c0_i32_0 = arith.constant 0 : i32
    %c0_i32_1 = arith.constant 0 : i32
    return %c0_i32, %c0_i32_0 : i32, i32
  }
  func.func @transform_15(%arg0: i32) -> (i32, i32) {
    %c0_i32 = arith.constant 0 : i32
    %c0_i32_0 = arith.constant 0 : i32
    %c0_i32_1 = arith.constant 0 : i32
    return %c0_i32, %c0_i32_0 : i32, i32
  }
}

</mosaic_0001>

<bundles_post_ra>
// kernel: dimension_predictor.1
= control target key start
LH: loop header
LB: loop body
LE: loop exit
PB: predicated region body
PF: predicated region fallthrough
CT: control target
= control target key end

     0   :  { %20 = vsyncpa [#allocation7], 0  ;;  %s7570_s18 = smov 0   ;;  %s9479_s0 = inlined_call_operand.vmem [shape: bf16[4,256,32], index: 0, kind: input, shape index: {}]   ;;  %s9480_s1 = inlined_call_operand.vmem [shape: bf16[32,128], index: 1, kind: input, shape index: {}]   ;;  %s9481_s2 = inlined_call_operand.vmem [shape: f32[1,128], index: 2, kind: input, shape index: {}]   ;;  %s9482_s3 = inlined_call_operand.vmem [shape: f32[1,128], index: 3, kind: input, shape index: {}]   ;;  %s9483_s4 = inlined_call_operand.vmem [shape: bf16[128,1280], index: 4, kind: input, shape index: {}]   ;;  %s9484_s5 = inlined_call_operand.vmem [shape: f32[1,1280], index: 5, kind: input, shape index: {}]   ;;  %s9485_s6 = inlined_call_operand.vmem [shape: bf16[1280,256], index: 6, kind: input, shape index: {}]   ;;  %s9486_s7 = inlined_call_operand.vmem [shape: bf16[1280,256], index: 7, kind: input, shape index: {}]   ;;  %s9487_s8 = inlined_call_operand.vmem [shape: f32[1,256], index: 8, kind: input, shape index: {}]   ;;  %s9488_s9 = inlined_call_operand.vmem [shape: f32[1,256], index: 9, kind: input, shape index: {}]   ;;  %s9489_s10 = inlined_call_operand.vmem [shape: bf16[256,128], index: 10, kind: input, shape index: {}]   ;;  %s9490_s11 = inlined_call_operand.vmem [shape: f32[1,128], index: 11, kind: input, shape index: {}]   ;;  %s9491_s12 = inlined_call_operand.vmem [shape: f32[1,128], index: 12, kind: input, shape index: {}]   ;;  %s9492_s13 = inlined_call_operand.vmem [shape: bf16[128,128], index: 13, kind: input, shape index: {}]   ;;  %s9493_s14 = inlined_call_operand.vmem [shape: f32[1,128], index: 14, kind: input, shape index: {}]   ;;  %s9494_s15 = inlined_call_operand.hbm [shape: f32[2,128], index: 15, kind: output, shape index: {}]  }
   0x1 LB: > { %s7576_s19 = sadd.s32 4294967295, %s7485_s18   ;;  %p5171_p0 = scmp.ge.s32.totalorder %s7485_s18, 1  ;;  %s7485_s18 = sphi %s7570_s18, %s26_s18  }
   0x2   : > { %p385_p1 = scmp.lt.s32.totalorder %s7485_s18, 5 }
   0x4   : > { %p386_p2 = pnand %p5171_p0, %p385_p1 }
   0x5   : > { %p424_p3 = scmp.lt.s32.totalorder (!%p386_p2), %s7576_s19, 3  ;;  %p5174_p4 = scmp.ne.s32.totalorder (!%p386_p2), %s7576_s19, 0 }
   0x6   : > { %389 = sbr.rel (%p386_p2) target bundleno = 1474 (0x5c2), region = 72 }
   0xb   : > { %s425_s20 = scalar_select %p424_p3, %s7576_s19, 3 }
   0xc   : > { %433 = sbr.rel (%p5174_p4) target bundleno = 341 (0x155), region = 76 }
   0xd   : > { %s6967_s21 = sshll.u32 %s425_s20, 7 }
   0xe   : > { %s7585_s24 = scalar_lea.vmem %s9479_s0, %s6967_s21 }
  0x11   : > { %v445_v0 = vld [vmem:[%s9485_s6] sm:$0xff]  ;;  %v447_v1 = vld [vmem:[%s9485_s6 + $0x8] sm:$0xff]  ;;  %v7487_v2 = vmov 0.0   ;;  %v449_v3 = vld [vmem:[%s9485_s6 + $0x10] sm:$0xff] }
  0x12   : > { %434 = vst [vmem:[#allocation2] sm:$0xff] %v7487_v2  ;;  %v451_v4 = vld [vmem:[%s9485_s6 + $0x18] sm:$0xff]  ;;  %v453_v5 = vld [vmem:[%s9485_s6 + $0x20] sm:$0xff]  ;;  %v455_v6 = vld [vmem:[%s9485_s6 + $0x28] sm:$0xff] }
  0x13   : > { %446 = vst [vmem:[#allocation3] sm:$0xff] %v445_v0  ;;  %v457_v7 = vld [vmem:[%s9485_s6 + $0x30] sm:$0xff]  ;;  %v459_v8 = vld [vmem:[%s9485_s6 + $0x38] sm:$0xff]  ;;  %v461_v9 = vld [vmem:[%s9485_s6 + $0x40] sm:$0xff] }
  0x14   : > { %448 = vst [vmem:[#allocation3 + $0x8] sm:$0xff] %v447_v1  ;;  %v463_v10 = vld [vmem:[%s9485_s6 + $0x48] sm:$0xff]  ;;  %v465_v11 = vld [vmem:[%s9485_s6 + $0x50] sm:$0xff]  ;;  %v467_v12 = vld [vmem:[%s9485_s6 + $0x58] sm:$0xff] }
  0x15   : > { %450 = vst [vmem:[#allocation3 + $0x10] sm:$0xff] %v449_v3  ;;  %v469_v13 = vld [vmem:[%s9485_s6 + $0x60] sm:$0xff]  ;;  %v471_v14 = vld [vmem:[%s9485_s6 + $0x68] sm:$0xff]  ;;  %v473_v15 = vld [vmem:[%s9485_s6 + $0x70] sm:$0xff] }
  0x16   : > { %452 = vst [vmem:[#allocation3 + $0x18] sm:$0xff] %v451_v4  ;;  %v475_v16 = vld [vmem:[%s9485_s6 + $0x78] sm:$0xff]  ;;  %v477_v17 = vld [vmem:[%s9485_s6 + $0x80] sm:$0xff]  ;;  %v479_v18 = vld [vmem:[%s9485_s6 + $0x88] sm:$0xff] }
  0x17   : > { %454 = vst [vmem:[#allocation3 + $0x20] sm:$0xff] %v453_v5  ;;  %v481_v19 = vld [vmem:[%s9485_s6 + $0x90] sm:$0xff]  ;;  %v483_v20 = vld [vmem:[%s9485_s6 + $0x98] sm:$0xff]  ;;  %v485_v21 = vld [vmem:[%s9485_s6 + $0xa0] sm:$0xff] }
  0x18   : > { %456 = vst [vmem:[#allocation3 + $0x28] sm:$0xff] %v455_v6  ;;  %v487_v22 = vld [vmem:[%s9485_s6 + $0xa8] sm:$0xff]  ;;  %v489_v23 = vld [vmem:[%s9485_s6 + $0xb0] sm:$0xff]  ;;  %v491_v24 = vld [vmem:[%s9485_s6 + $0xb8] sm:$0xff] }
  0x19   : > { %458 = vst [vmem:[#allocation3 + $0x30] sm:$0xff] %v457_v7  ;;  %v493_v25 = vld [vmem:[%s9485_s6 + $0xc0] sm:$0xff]  ;;  %v495_v26 = vld [vmem:[%s9485_s6 + $0xc8] sm:$0xff]  ;;  %v497_v27 = vld [vmem:[%s9485_s6 + $0xd0] sm:$0xff] }
  0x1a   : > { %460 = vst [vmem:[#allocation3 + $0x38] sm:$0xff] %v459_v8  ;;  %v499_v28 = vld [vmem:[%s9485_s6 + $0xd8] sm:$0xff]  ;;  %v501_v29 = vld [vmem:[%s9485_s6 + $0xe0] sm:$0xff]  ;;  %v503_v30 = vld [vmem:[%s9485_s6 + $0xe8] sm:$0xff] }
  0x1b   : > { %462 = vst [vmem:[#allocation3 + $0x40] sm:$0xff] %v461_v9  ;;  %v505_v31 = vld [vmem:[%s9485_s6 + $0xf0] sm:$0xff]  ;;  %v507_v32 = vld [vmem:[%s9485_s6 + $0xf8] sm:$0xff]  ;;  %v509_v33 = vld [vmem:[%s9485_s6 + $0x100] sm:$0xff] }
  0x1c   : > { %464 = vst [vmem:[#allocation3 + $0x48] sm:$0xff] %v463_v10  ;;  %v511_v34 = vld [vmem:[%s9485_s6 + $0x108] sm:$0xff]  ;;  %v513_v35 = vld [vmem:[%s9485_s6 + $0x110] sm:$0xff]  ;;  %v515_v36 = vld [vmem:[%s9485_s6 + $0x118] sm:$0xff] }
  0x1d   : > { %466 = vst [vmem:[#allocation3 + $0x50] sm:$0xff] %v465_v11  ;;  %v517_v37 = vld [vmem:[%s9485_s6 + $0x120] sm:$0xff]  ;;  %v519_v38 = vld [vmem:[%s9485_s6 + $0x128] sm:$0xff]  ;;  %v521_v39 = vld [vmem:[%s9485_s6 + $0x130] sm:$0xff] }
  0x1e   : > { %468 = vst [vmem:[#allocation3 + $0x58] sm:$0xff] %v467_v12  ;;  %v523_v40 = vld [vmem:[%s9485_s6 + $0x138] sm:$0xff]  ;;  %v525_v41 = vld [vmem:[%s9485_s6 + $0x140] sm:$0xff]  ;;  %v527_v42 = vld [vmem:[%s9485_s6 + $0x148] sm:$0xff] }
  0x1f   : > { %470 = vst [vmem:[#allocation3 + $0x60] sm:$0xff] %v469_v13  ;;  %v529_v43 = vld [vmem:[%s9485_s6 + $0x150] sm:$0xff]  ;;  %v531_v44 = vld [vmem:[%s9485_s6 + $0x158] sm:$0xff]  ;;  %v533_v45 = vld [vmem:[%s9485_s6 + $0x160] sm:$0xff] }
  0x20   : > { %472 = vst [vmem:[#allocation3 + $0x68] sm:$0xff] %v471_v14  ;;  %v535_v46 = vld [vmem:[%s9485_s6 + $0x168] sm:$0xff]  ;;  %v537_v47 = vld [vmem:[%s9485_s6 + $0x170] sm:$0xff]  ;;  %v539_v48 = vld [vmem:[%s9485_s6 + $0x178] sm:$0xff] }
  0x21   : > { %474 = vst [vmem:[#allocation3 + $0x70] sm:$0xff] %v473_v15  ;;  %v541_v49 = vld [vmem:[%s9485_s6 + $0x180] sm:$0xff]  ;;  %v543_v50 = vld [vmem:[%s9485_s6 + $0x188] sm:$0xff]  ;;  %v545_v51 = vld [vmem:[%s9485_s6 + $0x190] sm:$0xff] }
  0x22   : > { %476 = vst [vmem:[#allocation3 + $0x78] sm:$0xff] %v475_v16  ;;  %v547_v52 = vld [vmem:[%s9485_s6 + $0x198] sm:$0xff]  ;;  %v549_v53 = vld [vmem:[%s9485_s6 + $0x1a0] sm:$0xff]  ;;  %v551_v54 = vld [vmem:[%s9485_s6 + $0x1a8] sm:$0xff] }
  0x23   : > { %478 = vst [vmem:[#allocation3 + $0x80] sm:$0xff] %v477_v17  ;;  %v553_v55 = vld [vmem:[%s9485_s6 + $0x1b0] sm:$0xff]  ;;  %v555_v56 = vld [vmem:[%s9485_s6 + $0x1b8] sm:$0xff]  ;;  %v557_v57 = vld [vmem:[%s9485_s6 + $0x1c0] sm:$0xff] }
  0x24   : > { %480 = vst [vmem:[#allocation3 + $0x88] sm:$0xff] %v479_v18  ;;  %v559_v58 = vld [vmem:[%s9485_s6 + $0x1c8] sm:$0xff]  ;;  %v561_v59 = vld [vmem:[%s9485_s6 + $0x1d0] sm:$0xff]  ;;  %v563_v60 = vld [vmem:[%s9485_s6 + $0x1d8] sm:$0xff] }
  0x25   : > { %482 = vst [vmem:[#allocation3 + $0x90] sm:$0xff] %v481_v19  ;;  %v565_v61 = vld [vmem:[%s9485_s6 + $0x1e0] sm:$0xff]  ;;  %v567_v62 = vld [vmem:[%s9485_s6 + $0x1e8] sm:$0xff]  ;;  %v569_v63 = vld [vmem:[%s9485_s6 + $0x1f0] sm:$0xff] }
  0x26   : > { %484 = vst [vmem:[#allocation3 + $0x98] sm:$0xff] %v483_v20  ;;  %v571_v0 = vld [vmem:[%s9485_s6 + $0x1f8] sm:$0xff]  ;;  %v573_v1 = vld [vmem:[%s9485_s6 + $0x200] sm:$0xff]  ;;  %v575_v2 = vld [vmem:[%s9485_s6 + $0x208] sm:$0xff] }
  0x27   : > { %486 = vst [vmem:[#allocation3 + $0xa0] sm:$0xff] %v485_v21  ;;  %v577_v3 = vld [vmem:[%s9485_s6 + $0x210] sm:$0xff]  ;;  %v579_v4 = vld [vmem:[%s9485_s6 + $0x218] sm:$0xff]  ;;  %v581_v5 = vld [vmem:[%s9485_s6 + $0x220] sm:$0xff] }
  0x28   : > { %488 = vst [vmem:[#allocation3 + $0xa8] sm:$0xff] %v487_v22  ;;  %v583_v6 = vld [vmem:[%s9485_s6 + $0x228] sm:$0xff]  ;;  %v585_v7 = vld [vmem:[%s9485_s6 + $0x230] sm:$0xff]  ;;  %v587_v8 = vld [vmem:[%s9485_s6 + $0x238] sm:$0xff] }
  0x29   : > { %490 = vst [vmem:[#allocation3 + $0xb0] sm:$0xff] %v489_v23  ;;  %v589_v9 = vld [vmem:[%s9485_s6 + $0x240] sm:$0xff]  ;;  %v591_v10 = vld [vmem:[%s9485_s6 + $0x248] sm:$0xff]  ;;  %v593_v11 = vld [vmem:[%s9485_s6 + $0x250] sm:$0xff] }
  0x2a   : > { %492 = vst [vmem:[#allocation3 + $0xb8] sm:$0xff] %v491_v24  ;;  %v595_v12 = vld [vmem:[%s9485_s6 + $0x258] sm:$0xff]  ;;  %v597_v13 = vld [vmem:[%s9485_s6 + $0x260] sm:$0xff]  ;;  %v599_v14 = vld [vmem:[%s9485_s6 + $0x268] sm:$0xff] }
  0x2b   : > { %494 = vst [vmem:[#allocation3 + $0xc0] sm:$0xff] %v493_v25  ;;  %v601_v15 = vld [vmem:[%s9485_s6 + $0x270] sm:$0xff]  ;;  %v603_v16 = vld [vmem:[%s9485_s6 + $0x278] sm:$0xff]  ;;  %v605_v17 = vld [vmem:[%s9485_s6 + $0x280] sm:$0xff] }
  0x2c   : > { %496 = vst [vmem:[#allocation3 + $0xc8] sm:$0xff] %v495_v26  ;;  %v607_v18 = vld [vmem:[%s9485_s6 + $0x288] sm:$0xff]  ;;  %v609_v19 = vld [vmem:[%s9485_s6 + $0x290] sm:$0xff]  ;;  %v611_v20 = vld [vmem:[%s9485_s6 + $0x298] sm:$0xff] }
  0x2d   : > { %498 = vst [vmem:[#allocation3 + $0xd0] sm:$0xff] %v497_v27  ;;  %v613_v21 = vld [vmem:[%s9485_s6 + $0x2a0] sm:$0xff]  ;;  %v615_v22 = vld [vmem:[%s9485_s6 + $0x2a8] sm:$0xff]  ;;  %v617_v23 = vld [vmem:[%s9485_s6 + $0x2b0] sm:$0xff] }
  0x2e   : > { %500 = vst [vmem:[#allocation3 + $0xd8] sm:$0xff] %v499_v28  ;;  %v619_v24 = vld [vmem:[%s9485_s6 + $0x2b8] sm:$0xff]  ;;  %v621_v25 = vld [vmem:[%s9485_s6 + $0x2c0] sm:$0xff]  ;;  %v623_v26 = vld [vmem:[%s9485_s6 + $0x2c8] sm:$0xff] }
  0x2f   : > { %502 = vst [vmem:[#allocation3 + $0xe0] sm:$0xff] %v501_v29  ;;  %v625_v27 = vld [vmem:[%s9485_s6 + $0x2d0] sm:$0xff]  ;;  %v627_v28 = vld [vmem:[%s9485_s6 + $0x2d8] sm:$0xff]  ;;  %v629_v29 = vld [vmem:[%s9485_s6 + $0x2e0] sm:$0xff] }
  0x30   : > { %504 = vst [vmem:[#allocation3 + $0xe8] sm:$0xff] %v503_v30  ;;  %v631_v30 = vld [vmem:[%s9485_s6 + $0x2e8] sm:$0xff] }
  0x31   : > { %506 = vst [vmem:[#allocation3 + $0xf0] sm:$0xff] %v505_v31  ;;  %v633_v31 = vld [vmem:[%s9485_s6 + $0x2f0] sm:$0xff] }
  0x32   : > { %508 = vst [vmem:[#allocation3 + $0xf8] sm:$0xff] %v507_v32  ;;  %v635_v32 = vld [vmem:[%s9485_s6 + $0x2f8] sm:$0xff] }
  0x33   : > { %510 = vst [vmem:[#allocation3 + $0x100] sm:$0xff] %v509_v33  ;;  %v637_v33 = vld [vmem:[%s9485_s6 + $0x300] sm:$0xff] }
  0x34   : > { %512 = vst [vmem:[#allocation3 + $0x108] sm:$0xff] %v511_v34  ;;  %v639_v34 = vld [vmem:[%s9485_s6 + $0x308] sm:$0xff] }
  0x35   : > { %514 = vst [vmem:[#allocation3 + $0x110] sm:$0xff] %v513_v35  ;;  %v641_v35 = vld [vmem:[%s9485_s6 + $0x310] sm:$0xff] }
  0x36   : > { %516 = vst [vmem:[#allocation3 + $0x118] sm:$0xff] %v515_v36  ;;  %v643_v36 = vld [vmem:[%s9485_s6 + $0x318] sm:$0xff] }
  0x37   : > { %518 = vst [vmem:[#allocation3 + $0x120] sm:$0xff] %v517_v37  ;;  %v645_v37 = vld [vmem:[%s9485_s6 + $0x320] sm:$0xff] }
  0x38   : > { %520 = vst [vmem:[#allocation3 + $0x128] sm:$0xff] %v519_v38  ;;  %v647_v38 = vld [vmem:[%s9485_s6 + $0x328] sm:$0xff] }
  0x39   : > { %522 = vst [vmem:[#allocation3 + $0x130] sm:$0xff] %v521_v39  ;;  %v649_v39 = vld [vmem:[%s9485_s6 + $0x330] sm:$0xff] }
  0x3a   : > { %524 = vst [vmem:[#allocation3 + $0x138] sm:$0xff] %v523_v40  ;;  %v651_v40 = vld [vmem:[%s9485_s6 + $0x338] sm:$0xff] }
  0x3b   : > { %526 = vst [vmem:[#allocation3 + $0x140] sm:$0xff] %v525_v41  ;;  %v653_v41 = vld [vmem:[%s9485_s6 + $0x340] sm:$0xff] }
  0x3c   : > { %528 = vst [vmem:[#allocation3 + $0x148] sm:$0xff] %v527_v42  ;;  %v655_v42 = vld [vmem:[%s9485_s6 + $0x348] sm:$0xff] }
  0x3d   : > { %530 = vst [vmem:[#allocation3 + $0x150] sm:$0xff] %v529_v43  ;;  %v657_v43 = vld [vmem:[%s9485_s6 + $0x350] sm:$0xff] }
  0x3e   : > { %532 = vst [vmem:[#allocation3 + $0x158] sm:$0xff] %v531_v44  ;;  %v659_v44 = vld [vmem:[%s9485_s6 + $0x358] sm:$0xff] }
  0x3f   : > { %534 = vst [vmem:[#allocation3 + $0x160] sm:$0xff] %v533_v45  ;;  %v661_v45 = vld [vmem:[%s9485_s6 + $0x360] sm:$0xff] }
  0x40   : > { %536 = vst [vmem:[#allocation3 + $0x168] sm:$0xff] %v535_v46  ;;  %v663_v46 = vld [vmem:[%s9485_s6 + $0x368] sm:$0xff] }
  0x41   : > { %538 = vst [vmem:[#allocation3 + $0x170] sm:$0xff] %v537_v47  ;;  %v665_v47 = vld [vmem:[%s9485_s6 + $0x370] sm:$0xff] }
  0x42   : > { %540 = vst [vmem:[#allocation3 + $0x178] sm:$0xff] %v539_v48  ;;  %v667_v48 = vld [vmem:[%s9485_s6 + $0x378] sm:$0xff] }
  0x43   : > { %542 = vst [vmem:[#allocation3 + $0x180] sm:$0xff] %v541_v49  ;;  %v669_v49 = vld [vmem:[%s9485_s6 + $0x380] sm:$0xff] }
  0x44   : > { %544 = vst [vmem:[#allocation3 + $0x188] sm:$0xff] %v543_v50  ;;  %v671_v50 = vld [vmem:[%s9485_s6 + $0x388] sm:$0xff] }
  0x45   : > { %546 = vst [vmem:[#allocation3 + $0x190] sm:$0xff] %v545_v51  ;;  %v673_v51 = vld [vmem:[%s9485_s6 + $0x390] sm:$0xff] }
  0x46   : > { %548 = vst [vmem:[#allocation3 + $0x198] sm:$0xff] %v547_v52  ;;  %v675_v52 = vld [vmem:[%s9485_s6 + $0x398] sm:$0xff] }
  0x47   : > { %550 = vst [vmem:[#allocation3 + $0x1a0] sm:$0xff] %v549_v53  ;;  %v677_v53 = vld [vmem:[%s9485_s6 + $0x3a0] sm:$0xff] }
  0x48   : > { %552 = vst [vmem:[#allocation3 + $0x1a8] sm:$0xff] %v551_v54  ;;  %v679_v54 = vld [vmem:[%s9485_s6 + $0x3a8] sm:$0xff] }
  0x49   : > { %554 = vst [vmem:[#allocation3 + $0x1b0] sm:$0xff] %v553_v55  ;;  %v681_v55 = vld [vmem:[%s9485_s6 + $0x3b0] sm:$0xff] }
  0x4a   : > { %556 = vst [vmem:[#allocation3 + $0x1b8] sm:$0xff] %v555_v56  ;;  %v683_v56 = vld [vmem:[%s9485_s6 + $0x3b8] sm:$0xff] }
  0x4b   : > { %558 = vst [vmem:[#allocation3 + $0x1c0] sm:$0xff] %v557_v57  ;;  %v685_v57 = vld [vmem:[%s9485_s6 + $0x3c0] sm:$0xff] }
  0x4c   : > { %560 = vst [vmem:[#allocation3 + $0x1c8] sm:$0xff] %v559_v58  ;;  %v687_v58 = vld [vmem:[%s9485_s6 + $0x3c8] sm:$0xff] }
  0x4d   : > { %562 = vst [vmem:[#allocation3 + $0x1d0] sm:$0xff] %v561_v59  ;;  %v689_v59 = vld [vmem:[%s9485_s6 + $0x3d0] sm:$0xff] }
  0x4e   : > { %564 = vst [vmem:[#allocation3 + $0x1d8] sm:$0xff] %v563_v60  ;;  %v691_v60 = vld [vmem:[%s9485_s6 + $0x3d8] sm:$0xff] }
  0x4f   : > { %566 = vst [vmem:[#allocation3 + $0x1e0] sm:$0xff] %v565_v61  ;;  %v693_v61 = vld [vmem:[%s9485_s6 + $0x3e0] sm:$0xff] }
  0x50   : > { %568 = vst [vmem:[#allocation3 + $0x1e8] sm:$0xff] %v567_v62  ;;  %v695_v62 = vld [vmem:[%s9485_s6 + $0x3e8] sm:$0xff] }
  0x51   : > { %570 = vst [vmem:[#allocation3 + $0x1f0] sm:$0xff] %v569_v63  ;;  %v697_v63 = vld [vmem:[%s9485_s6 + $0x3f0] sm:$0xff] }
  0x52   : > { %572 = vst [vmem:[#allocation3 + $0x1f8] sm:$0xff] %v571_v0  ;;  %v699_v0 = vld [vmem:[%s9485_s6 + $0x3f8] sm:$0xff] }
  0x53   : > { %574 = vst [vmem:[#allocation3 + $0x200] sm:$0xff] %v573_v1  ;;  %v701_v1 = vld [vmem:[%s9485_s6 + $0x400] sm:$0xff] }
  0x54   : > { %576 = vst [vmem:[#allocation3 + $0x208] sm:$0xff] %v575_v2  ;;  %v703_v2 = vld [vmem:[%s9485_s6 + $0x408] sm:$0xff] }
  0x55   : > { %578 = vst [vmem:[#allocation3 + $0x210] sm:$0xff] %v577_v3  ;;  %v705_v3 = vld [vmem:[%s9485_s6 + $0x410] sm:$0xff] }
  0x56   : > { %580 = vst [vmem:[#allocation3 + $0x218] sm:$0xff] %v579_v4  ;;  %v707_v4 = vld [vmem:[%s9485_s6 + $0x418] sm:$0xff] }
  0x57   : > { %582 = vst [vmem:[#allocation3 + $0x220] sm:$0xff] %v581_v5  ;;  %v709_v5 = vld [vmem:[%s9485_s6 + $0x420] sm:$0xff] }
  0x58   : > { %584 = vst [vmem:[#allocation3 + $0x228] sm:$0xff] %v583_v6  ;;  %v711_v6 = vld [vmem:[%s9485_s6 + $0x428] sm:$0xff] }
  0x59   : > { %586 = vst [vmem:[#allocation3 + $0x230] sm:$0xff] %v585_v7  ;;  %v713_v7 = vld [vmem:[%s9485_s6 + $0x430] sm:$0xff] }
  0x5a   : > { %588 = vst [vmem:[#allocation3 + $0x238] sm:$0xff] %v587_v8  ;;  %v715_v8 = vld [vmem:[%s9485_s6 + $0x438] sm:$0xff] }
  0x5b   : > { %590 = vst [vmem:[#allocation3 + $0x240] sm:$0xff] %v589_v9  ;;  %v717_v9 = vld [vmem:[%s9485_s6 + $0x440] sm:$0xff] }
  0x5c   : > { %592 = vst [vmem:[#allocation3 + $0x248] sm:$0xff] %v591_v10  ;;  %v719_v10 = vld [vmem:[%s9485_s6 + $0x448] sm:$0xff] }
  0x5d   : > { %594 = vst [vmem:[#allocation3 + $0x250] sm:$0xff] %v593_v11  ;;  %v721_v11 = vld [vmem:[%s9485_s6 + $0x450] sm:$0xff] }
  0x5e   : > { %596 = vst [vmem:[#allocation3 + $0x258] sm:$0xff] %v595_v12  ;;  %v723_v12 = vld [vmem:[%s9485_s6 + $0x458] sm:$0xff] }
  0x5f   : > { %598 = vst [vmem:[#allocation3 + $0x260] sm:$0xff] %v597_v13  ;;  %v725_v13 = vld [vmem:[%s9485_s6 + $0x460] sm:$0xff] }
  0x60   : > { %600 = vst [vmem:[#allocation3 + $0x268] sm:$0xff] %v599_v14  ;;  %v727_v14 = vld [vmem:[%s9485_s6 + $0x468] sm:$0xff] }
  0x61   : > { %602 = vst [vmem:[#allocation3 + $0x270] sm:$0xff] %v601_v15  ;;  %v729_v15 = vld [vmem:[%s9485_s6 + $0x470] sm:$0xff] }
  0x62   : > { %604 = vst [vmem:[#allocation3 + $0x278] sm:$0xff] %v603_v16  ;;  %v731_v16 = vld [vmem:[%s9485_s6 + $0x478] sm:$0xff] }
  0x63   : > { %606 = vst [vmem:[#allocation3 + $0x280] sm:$0xff] %v605_v17  ;;  %v733_v17 = vld [vmem:[%s9485_s6 + $0x480] sm:$0xff] }
  0x64   : > { %608 = vst [vmem:[#allocation3 + $0x288] sm:$0xff] %v607_v18  ;;  %v735_v18 = vld [vmem:[%s9485_s6 + $0x488] sm:$0xff] }
  0x65   : > { %610 = vst [vmem:[#allocation3 + $0x290] sm:$0xff] %v609_v19  ;;  %v737_v19 = vld [vmem:[%s9485_s6 + $0x490] sm:$0xff] }
  0x66   : > { %612 = vst [vmem:[#allocation3 + $0x298] sm:$0xff] %v611_v20  ;;  %v739_v20 = vld [vmem:[%s9485_s6 + $0x498] sm:$0xff] }
  0x67   : > { %614 = vst [vmem:[#allocation3 + $0x2a0] sm:$0xff] %v613_v21  ;;  %v741_v21 = vld [vmem:[%s9485_s6 + $0x4a0] sm:$0xff] }
  0x68   : > { %616 = vst [vmem:[#allocation3 + $0x2a8] sm:$0xff] %v615_v22  ;;  %v743_v22 = vld [vmem:[%s9485_s6 + $0x4a8] sm:$0xff] }
  0x69   : > { %618 = vst [vmem:[#allocation3 + $0x2b0] sm:$0xff] %v617_v23  ;;  %v745_v23 = vld [vmem:[%s9485_s6 + $0x4b0] sm:$0xff] }
  0x6a   : > { %620 = vst [vmem:[#allocation3 + $0x2b8] sm:$0xff] %v619_v24  ;;  %v747_v24 = vld [vmem:[%s9485_s6 + $0x4b8] sm:$0xff] }
  0x6b   : > { %622 = vst [vmem:[#allocation3 + $0x2c0] sm:$0xff] %v621_v25  ;;  %v749_v25 = vld [vmem:[%s9485_s6 + $0x4c0] sm:$0xff] }
  0x6c   : > { %624 = vst [vmem:[#allocation3 + $0x2c8] sm:$0xff] %v623_v26  ;;  %v751_v26 = vld [vmem:[%s9485_s6 + $0x4c8] sm:$0xff] }
  0x6d   : > { %626 = vst [vmem:[#allocation3 + $0x2d0] sm:$0xff] %v625_v27  ;;  %v753_v27 = vld [vmem:[%s9485_s6 + $0x4d0] sm:$0xff] }
  0x6e   : > { %628 = vst [vmem:[#allocation3 + $0x2d8] sm:$0xff] %v627_v28  ;;  %v755_v28 = vld [vmem:[%s9485_s6 + $0x4d8] sm:$0xff] }
  0x6f   : > { %630 = vst [vmem:[#allocation3 + $0x2e0] sm:$0xff] %v629_v29  ;;  %v757_v29 = vld [vmem:[%s9485_s6 + $0x4e0] sm:$0xff] }
  0x70   : > { %632 = vst [vmem:[#allocation3 + $0x2e8] sm:$0xff] %v631_v30  ;;  %v759_v30 = vld [vmem:[%s9485_s6 + $0x4e8] sm:$0xff] }
  0x71   : > { %634 = vst [vmem:[#allocation3 + $0x2f0] sm:$0xff] %v633_v31  ;;  %v761_v31 = vld [vmem:[%s9485_s6 + $0x4f0] sm:$0xff] }
  0x72   : > { %636 = vst [vmem:[#allocation3 + $0x2f8] sm:$0xff] %v635_v32  ;;  %v763_v32 = vld [vmem:[%s9485_s6 + $0x4f8] sm:$0xff] }
  0x73   : > { %638 = vst [vmem:[#allocation3 + $0x300] sm:$0xff] %v637_v33 }
  0x74   : > { %640 = vst [vmem:[#allocation3 + $0x308] sm:$0xff] %v639_v34 }
  0x75   : > { %642 = vst [vmem:[#allocation3 + $0x310] sm:$0xff] %v641_v35 }
  0x76   : > { %644 = vst [vmem:[#allocation3 + $0x318] sm:$0xff] %v643_v36 }
  0x77   : > { %646 = vst [vmem:[#allocation3 + $0x320] sm:$0xff] %v645_v37 }
  0x78   : > { %648 = vst [vmem:[#allocation3 + $0x328] sm:$0xff] %v647_v38 }
  0x79   : > { %650 = vst [vmem:[#allocation3 + $0x330] sm:$0xff] %v649_v39 }
  0x7a   : > { %652 = vst [vmem:[#allocation3 + $0x338] sm:$0xff] %v651_v40 }
  0x7b   : > { %654 = vst [vmem:[#allocation3 + $0x340] sm:$0xff] %v653_v41 }
  0x7c   : > { %656 = vst [vmem:[#allocation3 + $0x348] sm:$0xff] %v655_v42 }
  0x7d   : > { %658 = vst [vmem:[#allocation3 + $0x350] sm:$0xff] %v657_v43 }
  0x7e   : > { %660 = vst [vmem:[#allocation3 + $0x358] sm:$0xff] %v659_v44 }
  0x7f   : > { %662 = vst [vmem:[#allocation3 + $0x360] sm:$0xff] %v661_v45 }
  0x80   : > { %664 = vst [vmem:[#allocation3 + $0x368] sm:$0xff] %v663_v46 }
  0x81   : > { %666 = vst [vmem:[#allocation3 + $0x370] sm:$0xff] %v665_v47 }
  0x82   : > { %668 = vst [vmem:[#allocation3 + $0x378] sm:$0xff] %v667_v48 }
  0x83   : > { %670 = vst [vmem:[#allocation3 + $0x380] sm:$0xff] %v669_v49 }
  0x84   : > { %672 = vst [vmem:[#allocation3 + $0x388] sm:$0xff] %v671_v50 }
  0x85   : > { %674 = vst [vmem:[#allocation3 + $0x390] sm:$0xff] %v673_v51 }
  0x86   : > { %676 = vst [vmem:[#allocation3 + $0x398] sm:$0xff] %v675_v52 }
  0x87   : > { %678 = vst [vmem:[#allocation3 + $0x3a0] sm:$0xff] %v677_v53 }
  0x88   : > { %680 = vst [vmem:[#allocation3 + $0x3a8] sm:$0xff] %v679_v54 }
  0x89   : > { %682 = vst [vmem:[#allocation3 + $0x3b0] sm:$0xff] %v681_v55 }
  0x8a   : > { %684 = vst [vmem:[#allocation3 + $0x3b8] sm:$0xff] %v683_v56 }
  0x8b   : > { %686 = vst [vmem:[#allocation3 + $0x3c0] sm:$0xff] %v685_v57 }
  0x8c   : > { %688 = vst [vmem:[#allocation3 + $0x3c8] sm:$0xff] %v687_v58 }
  0x8d   : > { %690 = vst [vmem:[#allocation3 + $0x3d0] sm:$0xff] %v689_v59 }
  0x8e   : > { %692 = vst [vmem:[#allocation3 + $0x3d8] sm:$0xff] %v691_v60 }
  0x8f   : > { %694 = vst [vmem:[#allocation3 + $0x3e0] sm:$0xff] %v693_v61 }
  0x90   : > { %696 = vst [vmem:[#allocation3 + $0x3e8] sm:$0xff] %v695_v62 }
  0x91   : > { %698 = vst [vmem:[#allocation3 + $0x3f0] sm:$0xff] %v697_v63 }
  0x92   : > { %700 = vst [vmem:[#allocation3 + $0x3f8] sm:$0xff] %v699_v0 }
  0x93   : > { %702 = vst [vmem:[#allocation3 + $0x400] sm:$0xff] %v701_v1 }
  0x94   : > { %704 = vst [vmem:[#allocation3 + $0x408] sm:$0xff] %v703_v2 }
  0x95   : > { %706 = vst [vmem:[#allocation3 + $0x410] sm:$0xff] %v705_v3 }
  0x96   : > { %708 = vst [vmem:[#allocation3 + $0x418] sm:$0xff] %v707_v4 }
  0x97   : > { %710 = vst [vmem:[#allocation3 + $0x420] sm:$0xff] %v709_v5 }
  0x98   : > { %712 = vst [vmem:[#allocation3 + $0x428] sm:$0xff] %v711_v6 }
  0x99   : > { %714 = vst [vmem:[#allocation3 + $0x430] sm:$0xff] %v713_v7 }
  0x9a   : > { %716 = vst [vmem:[#allocation3 + $0x438] sm:$0xff] %v715_v8 }
  0x9b   : > { %718 = vst [vmem:[#allocation3 + $0x440] sm:$0xff] %v717_v9 }
  0x9c   : > { %720 = vst [vmem:[#allocation3 + $0x448] sm:$0xff] %v719_v10 }
  0x9d   : > { %722 = vst [vmem:[#allocation3 + $0x450] sm:$0xff] %v721_v11 }
  0x9e   : > { %724 = vst [vmem:[#allocation3 + $0x458] sm:$0xff] %v723_v12 }
  0x9f   : > { %726 = vst [vmem:[#allocation3 + $0x460] sm:$0xff] %v725_v13 }
  0xa0   : > { %728 = vst [vmem:[#allocation3 + $0x468] sm:$0xff] %v727_v14 }
  0xa1   : > { %730 = vst [vmem:[#allocation3 + $0x470] sm:$0xff] %v729_v15 }
  0xa2   : > { %732 = vst [vmem:[#allocation3 + $0x478] sm:$0xff] %v731_v16 }
  0xa3   : > { %734 = vst [vmem:[#allocation3 + $0x480] sm:$0xff] %v733_v17 }
  0xa4   : > { %736 = vst [vmem:[#allocation3 + $0x488] sm:$0xff] %v735_v18 }
  0xa5   : > { %738 = vst [vmem:[#allocation3 + $0x490] sm:$0xff] %v737_v19 }
  0xa6   : > { %740 = vst [vmem:[#allocation3 + $0x498] sm:$0xff] %v739_v20 }
  0xa7   : > { %742 = vst [vmem:[#allocation3 + $0x4a0] sm:$0xff] %v741_v21 }
  0xa8   : > { %744 = vst [vmem:[#allocation3 + $0x4a8] sm:$0xff] %v743_v22 }
  0xa9   : > { %746 = vst [vmem:[#allocation3 + $0x4b0] sm:$0xff] %v745_v23 }
  0xaa   : > { %748 = vst [vmem:[#allocation3 + $0x4b8] sm:$0xff] %v747_v24 }
  0xab   : > { %750 = vst [vmem:[#allocation3 + $0x4c0] sm:$0xff] %v749_v25 }
  0xac   : > { %752 = vst [vmem:[#allocation3 + $0x4c8] sm:$0xff] %v751_v26 }
  0xad   : > { %754 = vst [vmem:[#allocation3 + $0x4d0] sm:$0xff] %v753_v27 }
  0xae   : > { %756 = vst [vmem:[#allocation3 + $0x4d8] sm:$0xff] %v755_v28 }
  0xaf   : > { %758 = vst [vmem:[#allocation3 + $0x4e0] sm:$0xff] %v757_v29 }
  0xb0   : > { %760 = vst [vmem:[#allocation3 + $0x4e8] sm:$0xff] %v759_v30 }
  0xb1   : > { %762 = vst [vmem:[#allocation3 + $0x4f0] sm:$0xff] %v761_v31 }
  0xb2   : > { %764 = vst [vmem:[#allocation3 + $0x4f8] sm:$0xff] %v763_v32 }
  0xb3   : > { %770 = vsyncadd [#allocation5], 20480  ;;  %v782_v33 = vld [vmem:[%s9486_s7] sm:$0xff]  ;;  %v784_v34 = vld [vmem:[%s9486_s7 + $0x8] sm:$0xff] }
  0xb4   : > { %783 = vst [vmem:[#allocation4] sm:$0xff] %v782_v33  ;;  %v786_v35 = vld [vmem:[%s9486_s7 + $0x10] sm:$0xff]  ;;  %v788_v36 = vld [vmem:[%s9486_s7 + $0x18] sm:$0xff]  ;;  %v790_v37 = vld [vmem:[%s9486_s7 + $0x20] sm:$0xff] }
  0xb5   : > { %785 = vst [vmem:[#allocation4 + $0x8] sm:$0xff] %v784_v34  ;;  %v792_v38 = vld [vmem:[%s9486_s7 + $0x28] sm:$0xff]  ;;  %v794_v39 = vld [vmem:[%s9486_s7 + $0x30] sm:$0xff]  ;;  %v796_v40 = vld [vmem:[%s9486_s7 + $0x38] sm:$0xff] }
  0xb6   : > { %787 = vst [vmem:[#allocation4 + $0x10] sm:$0xff] %v786_v35  ;;  %v798_v41 = vld [vmem:[%s9486_s7 + $0x40] sm:$0xff]  ;;  %v800_v42 = vld [vmem:[%s9486_s7 + $0x48] sm:$0xff]  ;;  %v802_v43 = vld [vmem:[%s9486_s7 + $0x50] sm:$0xff] }
  0xb7   : > { %789 = vst [vmem:[#allocation4 + $0x18] sm:$0xff] %v788_v36  ;;  %v804_v44 = vld [vmem:[%s9486_s7 + $0x58] sm:$0xff]  ;;  %v806_v45 = vld [vmem:[%s9486_s7 + $0x60] sm:$0xff]  ;;  %v808_v46 = vld [vmem:[%s9486_s7 + $0x68] sm:$0xff] }
  0xb8   : > { %791 = vst [vmem:[#allocation4 + $0x20] sm:$0xff] %v790_v37  ;;  %v810_v47 = vld [vmem:[%s9486_s7 + $0x70] sm:$0xff]  ;;  %v812_v48 = vld [vmem:[%s9486_s7 + $0x78] sm:$0xff]  ;;  %v814_v49 = vld [vmem:[%s9486_s7 + $0x80] sm:$0xff] }
  0xb9   : > { %793 = vst [vmem:[#allocation4 + $0x28] sm:$0xff] %v792_v38  ;;  %v816_v50 = vld [vmem:[%s9486_s7 + $0x88] sm:$0xff]  ;;  %v818_v51 = vld [vmem:[%s9486_s7 + $0x90] sm:$0xff]  ;;  %v820_v52 = vld [vmem:[%s9486_s7 + $0x98] sm:$0xff] }
  0xba   : > { %795 = vst [vmem:[#allocation4 + $0x30] sm:$0xff] %v794_v39  ;;  %v822_v53 = vld [vmem:[%s9486_s7 + $0xa0] sm:$0xff]  ;;  %v824_v54 = vld [vmem:[%s9486_s7 + $0xa8] sm:$0xff]  ;;  %v826_v55 = vld [vmem:[%s9486_s7 + $0xb0] sm:$0xff] }
  0xbb   : > { %797 = vst [vmem:[#allocation4 + $0x38] sm:$0xff] %v796_v40  ;;  %v828_v56 = vld [vmem:[%s9486_s7 + $0xb8] sm:$0xff]  ;;  %v830_v57 = vld [vmem:[%s9486_s7 + $0xc0] sm:$0xff]  ;;  %v832_v58 = vld [vmem:[%s9486_s7 + $0xc8] sm:$0xff] }
  0xbc   : > { %799 = vst [vmem:[#allocation4 + $0x40] sm:$0xff] %v798_v41  ;;  %v834_v59 = vld [vmem:[%s9486_s7 + $0xd0] sm:$0xff]  ;;  %v836_v60 = vld [vmem:[%s9486_s7 + $0xd8] sm:$0xff]  ;;  %v838_v61 = vld [vmem:[%s9486_s7 + $0xe0] sm:$0xff] }
  0xbd   : > { %801 = vst [vmem:[#allocation4 + $0x48] sm:$0xff] %v800_v42  ;;  %v840_v62 = vld [vmem:[%s9486_s7 + $0xe8] sm:$0xff]  ;;  %v842_v63 = vld [vmem:[%s9486_s7 + $0xf0] sm:$0xff]  ;;  %v844_v0 = vld [vmem:[%s9486_s7 + $0xf8] sm:$0xff] }
  0xbe   : > { %803 = vst [vmem:[#allocation4 + $0x50] sm:$0xff] %v802_v43  ;;  %v846_v1 = vld [vmem:[%s9486_s7 + $0x100] sm:$0xff]  ;;  %v848_v2 = vld [vmem:[%s9486_s7 + $0x108] sm:$0xff]  ;;  %v850_v3 = vld [vmem:[%s9486_s7 + $0x110] sm:$0xff] }
  0xbf   : > { %805 = vst [vmem:[#allocation4 + $0x58] sm:$0xff] %v804_v44  ;;  %v852_v4 = vld [vmem:[%s9486_s7 + $0x118] sm:$0xff]  ;;  %v854_v5 = vld [vmem:[%s9486_s7 + $0x120] sm:$0xff]  ;;  %v856_v6 = vld [vmem:[%s9486_s7 + $0x128] sm:$0xff] }
  0xc0   : > { %807 = vst [vmem:[#allocation4 + $0x60] sm:$0xff] %v806_v45  ;;  %v858_v7 = vld [vmem:[%s9486_s7 + $0x130] sm:$0xff]  ;;  %v860_v8 = vld [vmem:[%s9486_s7 + $0x138] sm:$0xff]  ;;  %v862_v9 = vld [vmem:[%s9486_s7 + $0x140] sm:$0xff] }
  0xc1   : > { %809 = vst [vmem:[#allocation4 + $0x68] sm:$0xff] %v808_v46  ;;  %v864_v10 = vld [vmem:[%s9486_s7 + $0x148] sm:$0xff]  ;;  %v866_v11 = vld [vmem:[%s9486_s7 + $0x150] sm:$0xff]  ;;  %v868_v12 = vld [vmem:[%s9486_s7 + $0x158] sm:$0xff] }
  0xc2   : > { %811 = vst [vmem:[#allocation4 + $0x70] sm:$0xff] %v810_v47  ;;  %v870_v13 = vld [vmem:[%s9486_s7 + $0x160] sm:$0xff]  ;;  %v872_v14 = vld [vmem:[%s9486_s7 + $0x168] sm:$0xff]  ;;  %v874_v15 = vld [vmem:[%s9486_s7 + $0x170] sm:$0xff] }
  0xc3   : > { %813 = vst [vmem:[#allocation4 + $0x78] sm:$0xff] %v812_v48  ;;  %v876_v16 = vld [vmem:[%s9486_s7 + $0x178] sm:$0xff]  ;;  %v878_v17 = vld [vmem:[%s9486_s7 + $0x180] sm:$0xff]  ;;  %v880_v18 = vld [vmem:[%s9486_s7 + $0x188] sm:$0xff] }
  0xc4   : > { %815 = vst [vmem:[#allocation4 + $0x80] sm:$0xff] %v814_v49  ;;  %v882_v19 = vld [vmem:[%s9486_s7 + $0x190] sm:$0xff]  ;;  %v884_v20 = vld [vmem:[%s9486_s7 + $0x198] sm:$0xff]  ;;  %v886_v21 = vld [vmem:[%s9486_s7 + $0x1a0] sm:$0xff] }
  0xc5   : > { %817 = vst [vmem:[#allocation4 + $0x88] sm:$0xff] %v816_v50  ;;  %v888_v22 = vld [vmem:[%s9486_s7 + $0x1a8] sm:$0xff]  ;;  %v890_v23 = vld [vmem:[%s9486_s7 + $0x1b0] sm:$0xff]  ;;  %v892_v24 = vld [vmem:[%s9486_s7 + $0x1b8] sm:$0xff] }
  0xc6   : > { %819 = vst [vmem:[#allocation4 + $0x90] sm:$0xff] %v818_v51  ;;  %v894_v25 = vld [vmem:[%s9486_s7 + $0x1c0] sm:$0xff]  ;;  %v896_v26 = vld [vmem:[%s9486_s7 + $0x1c8] sm:$0xff]  ;;  %v898_v27 = vld [vmem:[%s9486_s7 + $0x1d0] sm:$0xff] }
  0xc7   : > { %821 = vst [vmem:[#allocation4 + $0x98] sm:$0xff] %v820_v52  ;;  %v900_v28 = vld [vmem:[%s9486_s7 + $0x1d8] sm:$0xff]  ;;  %v902_v29 = vld [vmem:[%s9486_s7 + $0x1e0] sm:$0xff]  ;;  %v904_v30 = vld [vmem:[%s9486_s7 + $0x1e8] sm:$0xff] }
  0xc8   : > { %823 = vst [vmem:[#allocation4 + $0xa0] sm:$0xff] %v822_v53  ;;  %v906_v31 = vld [vmem:[%s9486_s7 + $0x1f0] sm:$0xff]  ;;  %v908_v32 = vld [vmem:[%s9486_s7 + $0x1f8] sm:$0xff]  ;;  %v910_v33 = vld [vmem:[%s9486_s7 + $0x200] sm:$0xff] }
  0xc9   : > { %825 = vst [vmem:[#allocation4 + $0xa8] sm:$0xff] %v824_v54  ;;  %v912_v34 = vld [vmem:[%s9486_s7 + $0x208] sm:$0xff]  ;;  %v914_v35 = vld [vmem:[%s9486_s7 + $0x210] sm:$0xff]  ;;  %v916_v36 = vld [vmem:[%s9486_s7 + $0x218] sm:$0xff] }
  0xca   : > { %827 = vst [vmem:[#allocation4 + $0xb0] sm:$0xff] %v826_v55  ;;  %v918_v37 = vld [vmem:[%s9486_s7 + $0x220] sm:$0xff]  ;;  %v920_v38 = vld [vmem:[%s9486_s7 + $0x228] sm:$0xff]  ;;  %v922_v39 = vld [vmem:[%s9486_s7 + $0x230] sm:$0xff] }
  0xcb   : > { %829 = vst [vmem:[#allocation4 + $0xb8] sm:$0xff] %v828_v56  ;;  %v924_v40 = vld [vmem:[%s9486_s7 + $0x238] sm:$0xff]  ;;  %v926_v41 = vld [vmem:[%s9486_s7 + $0x240] sm:$0xff]  ;;  %v928_v42 = vld [vmem:[%s9486_s7 + $0x248] sm:$0xff] }
  0xcc   : > { %831 = vst [vmem:[#allocation4 + $0xc0] sm:$0xff] %v830_v57  ;;  %v930_v43 = vld [vmem:[%s9486_s7 + $0x250] sm:$0xff]  ;;  %v932_v44 = vld [vmem:[%s9486_s7 + $0x258] sm:$0xff]  ;;  %v934_v45 = vld [vmem:[%s9486_s7 + $0x260] sm:$0xff] }
  0xcd   : > { %833 = vst [vmem:[#allocation4 + $0xc8] sm:$0xff] %v832_v58  ;;  %v936_v46 = vld [vmem:[%s9486_s7 + $0x268] sm:$0xff]  ;;  %v938_v47 = vld [vmem:[%s9486_s7 + $0x270] sm:$0xff]  ;;  %v940_v48 = vld [vmem:[%s9486_s7 + $0x278] sm:$0xff] }
  0xce   : > { %835 = vst [vmem:[#allocation4 + $0xd0] sm:$0xff] %v834_v59  ;;  %v942_v49 = vld [vmem:[%s9486_s7 + $0x280] sm:$0xff]  ;;  %v944_v50 = vld [vmem:[%s9486_s7 + $0x288] sm:$0xff]  ;;  %v946_v51 = vld [vmem:[%s9486_s7 + $0x290] sm:$0xff] }
  0xcf   : > { %837 = vst [vmem:[#allocation4 + $0xd8] sm:$0xff] %v836_v60  ;;  %v948_v52 = vld [vmem:[%s9486_s7 + $0x298] sm:$0xff]  ;;  %v950_v53 = vld [vmem:[%s9486_s7 + $0x2a0] sm:$0xff]  ;;  %v952_v54 = vld [vmem:[%s9486_s7 + $0x2a8] sm:$0xff] }
  0xd0   : > { %839 = vst [vmem:[#allocation4 + $0xe0] sm:$0xff] %v838_v61  ;;  %v954_v55 = vld [vmem:[%s9486_s7 + $0x2b0] sm:$0xff]  ;;  %v956_v56 = vld [vmem:[%s9486_s7 + $0x2b8] sm:$0xff]  ;;  %v958_v57 = vld [vmem:[%s9486_s7 + $0x2c0] sm:$0xff] }
  0xd1   : > { %841 = vst [vmem:[#allocation4 + $0xe8] sm:$0xff] %v840_v62  ;;  %v960_v58 = vld [vmem:[%s9486_s7 + $0x2c8] sm:$0xff]  ;;  %v962_v59 = vld [vmem:[%s9486_s7 + $0x2d0] sm:$0xff]  ;;  %v964_v60 = vld [vmem:[%s9486_s7 + $0x2d8] sm:$0xff] }
  0xd2   : > { %843 = vst [vmem:[#allocation4 + $0xf0] sm:$0xff] %v842_v63  ;;  %v966_v61 = vld [vmem:[%s9486_s7 + $0x2e0] sm:$0xff]  ;;  %v968_v62 = vld [vmem:[%s9486_s7 + $0x2e8] sm:$0xff]  ;;  %v970_v63 = vld [vmem:[%s9486_s7 + $0x2f0] sm:$0xff] }
  0xd3   : > { %845 = vst [vmem:[#allocation4 + $0xf8] sm:$0xff] %v844_v0  ;;  %v972_v0 = vld [vmem:[%s9486_s7 + $0x2f8] sm:$0xff] }
  0xd4   : > { %847 = vst [vmem:[#allocation4 + $0x100] sm:$0xff] %v846_v1  ;;  %v974_v1 = vld [vmem:[%s9486_s7 + $0x300] sm:$0xff] }
  0xd5   : > { %849 = vst [vmem:[#allocation4 + $0x108] sm:$0xff] %v848_v2  ;;  %v976_v2 = vld [vmem:[%s9486_s7 + $0x308] sm:$0xff] }
  0xd6   : > { %851 = vst [vmem:[#allocation4 + $0x110] sm:$0xff] %v850_v3  ;;  %v978_v3 = vld [vmem:[%s9486_s7 + $0x310] sm:$0xff] }
  0xd7   : > { %853 = vst [vmem:[#allocation4 + $0x118] sm:$0xff] %v852_v4  ;;  %v980_v4 = vld [vmem:[%s9486_s7 + $0x318] sm:$0xff] }
  0xd8   : > { %855 = vst [vmem:[#allocation4 + $0x120] sm:$0xff] %v854_v5  ;;  %v982_v5 = vld [vmem:[%s9486_s7 + $0x320] sm:$0xff] }
  0xd9   : > { %857 = vst [vmem:[#allocation4 + $0x128] sm:$0xff] %v856_v6  ;;  %v984_v6 = vld [vmem:[%s9486_s7 + $0x328] sm:$0xff] }
  0xda   : > { %859 = vst [vmem:[#allocation4 + $0x130] sm:$0xff] %v858_v7  ;;  %v986_v7 = vld [vmem:[%s9486_s7 + $0x330] sm:$0xff] }
  0xdb   : > { %861 = vst [vmem:[#allocation4 + $0x138] sm:$0xff] %v860_v8  ;;  %v988_v8 = vld [vmem:[%s9486_s7 + $0x338] sm:$0xff] }
  0xdc   : > { %863 = vst [vmem:[#allocation4 + $0x140] sm:$0xff] %v862_v9  ;;  %v990_v9 = vld [vmem:[%s9486_s7 + $0x340] sm:$0xff] }
  0xdd   : > { %865 = vst [vmem:[#allocation4 + $0x148] sm:$0xff] %v864_v10  ;;  %v992_v10 = vld [vmem:[%s9486_s7 + $0x348] sm:$0xff] }
  0xde   : > { %867 = vst [vmem:[#allocation4 + $0x150] sm:$0xff] %v866_v11  ;;  %v994_v11 = vld [vmem:[%s9486_s7 + $0x350] sm:$0xff] }
  0xdf   : > { %869 = vst [vmem:[#allocation4 + $0x158] sm:$0xff] %v868_v12  ;;  %v996_v12 = vld [vmem:[%s9486_s7 + $0x358] sm:$0xff] }
  0xe0   : > { %871 = vst [vmem:[#allocation4 + $0x160] sm:$0xff] %v870_v13  ;;  %v998_v13 = vld [vmem:[%s9486_s7 + $0x360] sm:$0xff] }
  0xe1   : > { %873 = vst [vmem:[#allocation4 + $0x168] sm:$0xff] %v872_v14  ;;  %v1000_v14 = vld [vmem:[%s9486_s7 + $0x368] sm:$0xff] }
  0xe2   : > { %875 = vst [vmem:[#allocation4 + $0x170] sm:$0xff] %v874_v15  ;;  %v1002_v15 = vld [vmem:[%s9486_s7 + $0x370] sm:$0xff] }
  0xe3   : > { %877 = vst [vmem:[#allocation4 + $0x178] sm:$0xff] %v876_v16  ;;  %v1004_v16 = vld [vmem:[%s9486_s7 + $0x378] sm:$0xff] }
  0xe4   : > { %879 = vst [vmem:[#allocation4 + $0x180] sm:$0xff] %v878_v17  ;;  %v1006_v17 = vld [vmem:[%s9486_s7 + $0x380] sm:$0xff] }
  0xe5   : > { %881 = vst [vmem:[#allocation4 + $0x188] sm:$0xff] %v880_v18  ;;  %v1008_v18 = vld [vmem:[%s9486_s7 + $0x388] sm:$0xff] }
  0xe6   : > { %883 = vst [vmem:[#allocation4 + $0x190] sm:$0xff] %v882_v19  ;;  %v1010_v19 = vld [vmem:[%s9486_s7 + $0x390] sm:$0xff] }
  0xe7   : > { %885 = vst [vmem:[#allocation4 + $0x198] sm:$0xff] %v884_v20  ;;  %v1012_v20 = vld [vmem:[%s9486_s7 + $0x398] sm:$0xff] }
  0xe8   : > { %887 = vst [vmem:[#allocation4 + $0x1a0] sm:$0xff] %v886_v21  ;;  %v1014_v21 = vld [vmem:[%s9486_s7 + $0x3a0] sm:$0xff] }
  0xe9   : > { %889 = vst [vmem:[#allocation4 + $0x1a8] sm:$0xff] %v888_v22  ;;  %v1016_v22 = vld [vmem:[%s9486_s7 + $0x3a8] sm:$0xff] }
  0xea   : > { %891 = vst [vmem:[#allocation4 + $0x1b0] sm:$0xff] %v890_v23  ;;  %v1018_v23 = vld [vmem:[%s9486_s7 + $0x3b0] sm:$0xff] }
  0xeb   : > { %893 = vst [vmem:[#allocation4 + $0x1b8] sm:$0xff] %v892_v24  ;;  %v1020_v24 = vld [vmem:[%s9486_s7 + $0x3b8] sm:$0xff] }
  0xec   : > { %895 = vst [vmem:[#allocation4 + $0x1c0] sm:$0xff] %v894_v25  ;;  %v1022_v25 = vld [vmem:[%s9486_s7 + $0x3c0] sm:$0xff] }
  0xed   : > { %897 = vst [vmem:[#allocation4 + $0x1c8] sm:$0xff] %v896_v26  ;;  %v1024_v26 = vld [vmem:[%s9486_s7 + $0x3c8] sm:$0xff] }
  0xee   : > { %899 = vst [vmem:[#allocation4 + $0x1d0] sm:$0xff] %v898_v27  ;;  %v1026_v27 = vld [vmem:[%s9486_s7 + $0x3d0] sm:$0xff] }
  0xef   : > { %901 = vst [vmem:[#allocation4 + $0x1d8] sm:$0xff] %v900_v28  ;;  %v1028_v28 = vld [vmem:[%s9486_s7 + $0x3d8] sm:$0xff] }
  0xf0   : > { %903 = vst [vmem:[#allocation4 + $0x1e0] sm:$0xff] %v902_v29  ;;  %v1030_v29 = vld [vmem:[%s9486_s7 + $0x3e0] sm:$0xff] }
  0xf1   : > { %905 = vst [vmem:[#allocation4 + $0x1e8] sm:$0xff] %v904_v30  ;;  %v1032_v30 = vld [vmem:[%s9486_s7 + $0x3e8] sm:$0xff] }
  0xf2   : > { %907 = vst [vmem:[#allocation4 + $0x1f0] sm:$0xff] %v906_v31  ;;  %v1034_v31 = vld [vmem:[%s9486_s7 + $0x3f0] sm:$0xff] }
  0xf3   : > { %909 = vst [vmem:[#allocation4 + $0x1f8] sm:$0xff] %v908_v32  ;;  %v1036_v32 = vld [vmem:[%s9486_s7 + $0x3f8] sm:$0xff] }
  0xf4   : > { %911 = vst [vmem:[#allocation4 + $0x200] sm:$0xff] %v910_v33  ;;  %v1038_v33 = vld [vmem:[%s9486_s7 + $0x400] sm:$0xff] }
  0xf5   : > { %913 = vst [vmem:[#allocation4 + $0x208] sm:$0xff] %v912_v34  ;;  %v1040_v34 = vld [vmem:[%s9486_s7 + $0x408] sm:$0xff] }
  0xf6   : > { %915 = vst [vmem:[#allocation4 + $0x210] sm:$0xff] %v914_v35  ;;  %v1042_v35 = vld [vmem:[%s9486_s7 + $0x410] sm:$0xff] }
  0xf7   : > { %917 = vst [vmem:[#allocation4 + $0x218] sm:$0xff] %v916_v36  ;;  %v1044_v36 = vld [vmem:[%s9486_s7 + $0x418] sm:$0xff] }
  0xf8   : > { %919 = vst [vmem:[#allocation4 + $0x220] sm:$0xff] %v918_v37  ;;  %v1046_v37 = vld [vmem:[%s9486_s7 + $0x420] sm:$0xff] }
  0xf9   : > { %921 = vst [vmem:[#allocation4 + $0x228] sm:$0xff] %v920_v38  ;;  %v1048_v38 = vld [vmem:[%s9486_s7 + $0x428] sm:$0xff] }
  0xfa   : > { %923 = vst [vmem:[#allocation4 + $0x230] sm:$0xff] %v922_v39  ;;  %v1050_v39 = vld [vmem:[%s9486_s7 + $0x430] sm:$0xff] }
  0xfb   : > { %925 = vst [vmem:[#allocation4 + $0x238] sm:$0xff] %v924_v40  ;;  %v1052_v40 = vld [vmem:[%s9486_s7 + $0x438] sm:$0xff] }
  0xfc   : > { %927 = vst [vmem:[#allocation4 + $0x240] sm:$0xff] %v926_v41  ;;  %v1054_v41 = vld [vmem:[%s9486_s7 + $0x440] sm:$0xff] }
  0xfd   : > { %929 = vst [vmem:[#allocation4 + $0x248] sm:$0xff] %v928_v42  ;;  %v1056_v42 = vld [vmem:[%s9486_s7 + $0x448] sm:$0xff] }
  0xfe   : > { %931 = vst [vmem:[#allocation4 + $0x250] sm:$0xff] %v930_v43  ;;  %v1058_v43 = vld [vmem:[%s9486_s7 + $0x450] sm:$0xff] }
  0xff   : > { %933 = vst [vmem:[#allocation4 + $0x258] sm:$0xff] %v932_v44  ;;  %v1060_v44 = vld [vmem:[%s9486_s7 + $0x458] sm:$0xff] }
 0x100   : > { %935 = vst [vmem:[#allocation4 + $0x260] sm:$0xff] %v934_v45  ;;  %v1062_v45 = vld [vmem:[%s9486_s7 + $0x460] sm:$0xff] }
 0x101   : > { %937 = vst [vmem:[#allocation4 + $0x268] sm:$0xff] %v936_v46  ;;  %v1064_v46 = vld [vmem:[%s9486_s7 + $0x468] sm:$0xff] }
 0x102   : > { %939 = vst [vmem:[#allocation4 + $0x270] sm:$0xff] %v938_v47  ;;  %v1066_v47 = vld [vmem:[%s9486_s7 + $0x470] sm:$0xff] }
 0x103   : > { %941 = vst [vmem:[#allocation4 + $0x278] sm:$0xff] %v940_v48  ;;  %v1068_v48 = vld [vmem:[%s9486_s7 + $0x478] sm:$0xff] }
 0x104   : > { %943 = vst [vmem:[#allocation4 + $0x280] sm:$0xff] %v942_v49  ;;  %v1070_v49 = vld [vmem:[%s9486_s7 + $0x480] sm:$0xff] }
 0x105   : > { %945 = vst [vmem:[#allocation4 + $0x288] sm:$0xff] %v944_v50  ;;  %v1072_v50 = vld [vmem:[%s9486_s7 + $0x488] sm:$0xff] }
 0x106   : > { %947 = vst [vmem:[#allocation4 + $0x290] sm:$0xff] %v946_v51  ;;  %v1074_v51 = vld [vmem:[%s9486_s7 + $0x490] sm:$0xff] }
 0x107   : > { %949 = vst [vmem:[#allocation4 + $0x298] sm:$0xff] %v948_v52  ;;  %v1076_v52 = vld [vmem:[%s9486_s7 + $0x498] sm:$0xff] }
 0x108   : > { %951 = vst [vmem:[#allocation4 + $0x2a0] sm:$0xff] %v950_v53  ;;  %v1078_v53 = vld [vmem:[%s9486_s7 + $0x4a0] sm:$0xff] }
 0x109   : > { %953 = vst [vmem:[#allocation4 + $0x2a8] sm:$0xff] %v952_v54  ;;  %v1080_v54 = vld [vmem:[%s9486_s7 + $0x4a8] sm:$0xff] }
 0x10a   : > { %955 = vst [vmem:[#allocation4 + $0x2b0] sm:$0xff] %v954_v55  ;;  %v1082_v55 = vld [vmem:[%s9486_s7 + $0x4b0] sm:$0xff] }
 0x10b   : > { %957 = vst [vmem:[#allocation4 + $0x2b8] sm:$0xff] %v956_v56  ;;  %v1084_v56 = vld [vmem:[%s9486_s7 + $0x4b8] sm:$0xff] }
 0x10c   : > { %959 = vst [vmem:[#allocation4 + $0x2c0] sm:$0xff] %v958_v57  ;;  %v1086_v57 = vld [vmem:[%s9486_s7 + $0x4c0] sm:$0xff] }
 0x10d   : > { %961 = vst [vmem:[#allocation4 + $0x2c8] sm:$0xff] %v960_v58  ;;  %v1088_v58 = vld [vmem:[%s9486_s7 + $0x4c8] sm:$0xff] }
 0x10e   : > { %963 = vst [vmem:[#allocation4 + $0x2d0] sm:$0xff] %v962_v59  ;;  %v1090_v59 = vld [vmem:[%s9486_s7 + $0x4d0] sm:$0xff] }
 0x10f   : > { %965 = vst [vmem:[#allocation4 + $0x2d8] sm:$0xff] %v964_v60  ;;  %v1092_v60 = vld [vmem:[%s9486_s7 + $0x4d8] sm:$0xff] }
 0x110   : > { %967 = vst [vmem:[#allocation4 + $0x2e0] sm:$0xff] %v966_v61  ;;  %v1094_v61 = vld [vmem:[%s9486_s7 + $0x4e0] sm:$0xff] }
 0x111   : > { %969 = vst [vmem:[#allocation4 + $0x2e8] sm:$0xff] %v968_v62  ;;  %v1096_v62 = vld [vmem:[%s9486_s7 + $0x4e8] sm:$0xff] }
 0x112   : > { %971 = vst [vmem:[#allocation4 + $0x2f0] sm:$0xff] %v970_v63  ;;  %v1098_v63 = vld [vmem:[%s9486_s7 + $0x4f0] sm:$0xff] }
 0x113   : > { %973 = vst [vmem:[#allocation4 + $0x2f8] sm:$0xff] %v972_v0  ;;  %v1100_v0 = vld [vmem:[%s9486_s7 + $0x4f8] sm:$0xff] }
 0x114   : > { %975 = vst [vmem:[#allocation4 + $0x300] sm:$0xff] %v974_v1 }
 0x115   : > { %977 = vst [vmem:[#allocation4 + $0x308] sm:$0xff] %v976_v2 }
 0x116   : > { %979 = vst [vmem:[#allocation4 + $0x310] sm:$0xff] %v978_v3 }
 0x117   : > { %981 = vst [vmem:[#allocation4 + $0x318] sm:$0xff] %v980_v4 }
 0x118   : > { %983 = vst [vmem:[#allocation4 + $0x320] sm:$0xff] %v982_v5 }
 0x119   : > { %985 = vst [vmem:[#allocation4 + $0x328] sm:$0xff] %v984_v6 }
 0x11a   : > { %987 = vst [vmem:[#allocation4 + $0x330] sm:$0xff] %v986_v7 }
 0x11b   : > { %989 = vst [vmem:[#allocation4 + $0x338] sm:$0xff] %v988_v8 }
 0x11c   : > { %991 = vst [vmem:[#allocation4 + $0x340] sm:$0xff] %v990_v9 }
 0x11d   : > { %993 = vst [vmem:[#allocation4 + $0x348] sm:$0xff] %v992_v10 }
 0x11e   : > { %995 = vst [vmem:[#allocation4 + $0x350] sm:$0xff] %v994_v11 }
 0x11f   : > { %997 = vst [vmem:[#allocation4 + $0x358] sm:$0xff] %v996_v12 }
 0x120   : > { %999 = vst [vmem:[#allocation4 + $0x360] sm:$0xff] %v998_v13 }
 0x121   : > { %1001 = vst [vmem:[#allocation4 + $0x368] sm:$0xff] %v1000_v14 }
 0x122   : > { %1003 = vst [vmem:[#allocation4 + $0x370] sm:$0xff] %v1002_v15 }
 0x123   : > { %1005 = vst [vmem:[#allocation4 + $0x378] sm:$0xff] %v1004_v16 }
 0x124   : > { %1007 = vst [vmem:[#allocation4 + $0x380] sm:$0xff] %v1006_v17 }
 0x125   : > { %1009 = vst [vmem:[#allocation4 + $0x388] sm:$0xff] %v1008_v18 }
 0x126   : > { %1011 = vst [vmem:[#allocation4 + $0x390] sm:$0xff] %v1010_v19 }
 0x127   : > { %1013 = vst [vmem:[#allocation4 + $0x398] sm:$0xff] %v1012_v20 }
 0x128   : > { %1015 = vst [vmem:[#allocation4 + $0x3a0] sm:$0xff] %v1014_v21 }
 0x129   : > { %1017 = vst [vmem:[#allocation4 + $0x3a8] sm:$0xff] %v1016_v22 }
 0x12a   : > { %1019 = vst [vmem:[#allocation4 + $0x3b0] sm:$0xff] %v1018_v23 }
 0x12b   : > { %1021 = vst [vmem:[#allocation4 + $0x3b8] sm:$0xff] %v1020_v24 }
 0x12c   : > { %1023 = vst [vmem:[#allocation4 + $0x3c0] sm:$0xff] %v1022_v25 }
 0x12d   : > { %1025 = vst [vmem:[#allocation4 + $0x3c8] sm:$0xff] %v1024_v26 }
 0x12e   : > { %1027 = vst [vmem:[#allocation4 + $0x3d0] sm:$0xff] %v1026_v27 }
 0x12f   : > { %1029 = vst [vmem:[#allocation4 + $0x3d8] sm:$0xff] %v1028_v28 }
 0x130   : > { %1031 = vst [vmem:[#allocation4 + $0x3e0] sm:$0xff] %v1030_v29 }
 0x131   : > { %1033 = vst [vmem:[#allocation4 + $0x3e8] sm:$0xff] %v1032_v30 }
 0x132   : > { %1035 = vst [vmem:[#allocation4 + $0x3f0] sm:$0xff] %v1034_v31 }
 0x133   : > { %1037 = vst [vmem:[#allocation4 + $0x3f8] sm:$0xff] %v1036_v32 }
 0x134   : > { %1039 = vst [vmem:[#allocation4 + $0x400] sm:$0xff] %v1038_v33 }
 0x135   : > { %1041 = vst [vmem:[#allocation4 + $0x408] sm:$0xff] %v1040_v34 }
 0x136   : > { %1043 = vst [vmem:[#allocation4 + $0x410] sm:$0xff] %v1042_v35 }
 0x137   : > { %1045 = vst [vmem:[#allocation4 + $0x418] sm:$0xff] %v1044_v36 }
 0x138   : > { %1047 = vst [vmem:[#allocation4 + $0x420] sm:$0xff] %v1046_v37 }
 0x139   : > { %1049 = vst [vmem:[#allocation4 + $0x428] sm:$0xff] %v1048_v38 }
 0x13a   : > { %1051 = vst [vmem:[#allocation4 + $0x430] sm:$0xff] %v1050_v39 }
 0x13b   : > { %1053 = vst [vmem:[#allocation4 + $0x438] sm:$0xff] %v1052_v40 }
 0x13c   : > { %1055 = vst [vmem:[#allocation4 + $0x440] sm:$0xff] %v1054_v41 }
 0x13d   : > { %1057 = vst [vmem:[#allocation4 + $0x448] sm:$0xff] %v1056_v42 }
 0x13e   : > { %1059 = vst [vmem:[#allocation4 + $0x450] sm:$0xff] %v1058_v43 }
 0x13f   : > { %1061 = vst [vmem:[#allocation4 + $0x458] sm:$0xff] %v1060_v44 }
 0x140   : > { %1063 = vst [vmem:[#allocation4 + $0x460] sm:$0xff] %v1062_v45 }
 0x141   : > { %1065 = vst [vmem:[#allocation4 + $0x468] sm:$0xff] %v1064_v46 }
 0x142   : > { %1067 = vst [vmem:[#allocation4 + $0x470] sm:$0xff] %v1066_v47 }
 0x143   : > { %1069 = vst [vmem:[#allocation4 + $0x478] sm:$0xff] %v1068_v48 }
 0x144   : > { %1071 = vst [vmem:[#allocation4 + $0x480] sm:$0xff] %v1070_v49 }
 0x145   : > { %1073 = vst [vmem:[#allocation4 + $0x488] sm:$0xff] %v1072_v50 }
 0x146   : > { %1075 = vst [vmem:[#allocation4 + $0x490] sm:$0xff] %v1074_v51 }
 0x147   : > { %1077 = vst [vmem:[#allocation4 + $0x498] sm:$0xff] %v1076_v52 }
 0x148   : > { %1079 = vst [vmem:[#allocation4 + $0x4a0] sm:$0xff] %v1078_v53 }
 0x149   : > { %1081 = vst [vmem:[#allocation4 + $0x4a8] sm:$0xff] %v1080_v54 }
 0x14a   : > { %1083 = vst [vmem:[#allocation4 + $0x4b0] sm:$0xff] %v1082_v55 }
 0x14b   : > { %1085 = vst [vmem:[#allocation4 + $0x4b8] sm:$0xff] %v1084_v56 }
 0x14c   : > { %1087 = vst [vmem:[#allocation4 + $0x4c0] sm:$0xff] %v1086_v57 }
 0x14d   : > { %1089 = vst [vmem:[#allocation4 + $0x4c8] sm:$0xff] %v1088_v58 }
 0x14e   : > { %1091 = vst [vmem:[#allocation4 + $0x4d0] sm:$0xff] %v1090_v59 }
 0x14f   : > { %1093 = vst [vmem:[#allocation4 + $0x4d8] sm:$0xff] %v1092_v60 }
 0x150   : > { %1095 = vst [vmem:[#allocation4 + $0x4e0] sm:$0xff] %v1094_v61 }
 0x151   : > { %1097 = vst [vmem:[#allocation4 + $0x4e8] sm:$0xff] %v1096_v62 }
 0x152   : > { %1099 = vst [vmem:[#allocation4 + $0x4f0] sm:$0xff] %v1098_v63 }
 0x153   : > { %1101 = vst [vmem:[#allocation4 + $0x4f8] sm:$0xff] %v1100_v0 }
 0x154   : > { %1107 = vsyncadd [#allocation5 + $0x1], 20480 }
 0x155 PF: > { %v6985_v1 = vld [vmem:[%s9480_s1 + $0x8] sm:$0xff]  ;;  %v6984_v2 = vld [vmem:[%s9480_s1] sm:$0xff]  ;;  %vm1236_vm0 = vcmask 261120   ;;  %v6970_v11 = vld [vmem:[%s7585_s24 + $0x10] sm:$0xff]  ;;  %s6986_s23 = scalar_lea.vmem [#allocation2], %s7485_s18  ;;  %p5264_p5 = scmp.ne.s32.totalorder %s7576_s19, 3 }
 0x156   : > { %1291 = vmatpush.bf16.msra.mxu0 %v6985_v1  ;;  %7413 = vmatpush.bf16.msra.mxu1 %v6985_v1  ;;  %v6968_v3 = vld [vmem:[%s7585_s24] sm:$0xff]  ;;  %v6969_v7 = vld [vmem:[%s7585_s24 + $0x8] sm:$0xff]  ;;  %v6974_v12 = vld [vmem:[%s7585_s24 + $0x30] sm:$0xff] }
 0x157   : > { %7414 = vmatpush.bf16.msra.mxu2 %v6985_v1  ;;  %7415 = vmatpush.bf16.msra.mxu3 %v6985_v1  ;;  %v6972_v4 = vld [vmem:[%s7585_s24 + $0x20] sm:$0xff]  ;;  %v6973_v8 = vld [vmem:[%s7585_s24 + $0x28] sm:$0xff]  ;;  %v6978_v13 = vld [vmem:[%s7585_s24 + $0x50] sm:$0xff] }
 0x158   : > { %v6976_v5 = vld [vmem:[%s7585_s24 + $0x40] sm:$0xff]  ;;  %v6977_v9 = vld [vmem:[%s7585_s24 + $0x48] sm:$0xff]  ;;  %v6982_v14 = vld [vmem:[%s7585_s24 + $0x70] sm:$0xff] }
 0x159   : > { %v6980_v6 = vld [vmem:[%s7585_s24 + $0x60] sm:$0xff]  ;;  %v6981_v10 = vld [vmem:[%s7585_s24 + $0x68] sm:$0xff]  ;;  %v6971_v15 = vld [vmem:[%s7585_s24 + $0x18] sm:$0xff] }
 0x15a   : > { %1292 = vmatpush.bf16.msra.mxu0 %v6984_v2  ;;  %7416 = vmatpush.bf16.msra.mxu1 %v6984_v2  ;;  %v6975_v16 = vld [vmem:[%s7585_s24 + $0x38] sm:$0xff]  ;;  %v8597_v31 = vld [vmem:[%s9481_s2] ss:$0 sm:$0xff] }
 0x15b   : > { %7417 = vmatpush.bf16.msra.mxu2 %v6984_v2  ;;  %7418 = vmatpush.bf16.msra.mxu3 %v6984_v2  ;;  %v6979_v17 = vld [vmem:[%s7585_s24 + $0x58] sm:$0xff]  ;;  %v8606_v35 = vld [vmem:[%s9482_s3] ss:$0 sm:$0xff] }
 0x15c   : > { %v6983_v18 = vld [vmem:[%s7585_s24 + $0x78] sm:$0xff] }
 0x15d   : > { %5247 = vmatmul.msk.bf16.vlgmr.msra.gmra.mxu0 %vm1236_vm0, %v6968_v3  ;;  %5251 = vmatmul.msk.bf16.vlgmr.msra.gmra.mxu1 %vm1236_vm0, %v6972_v4 }
 0x15e   : > { %5255 = vmatmul.msk.bf16.vlgmr.msra.gmra.mxu2 %vm1236_vm0, %v6976_v5  ;;  %5259 = vmatmul.msk.bf16.vlgmr.msra.gmra.mxu3 %vm1236_vm0, %v6980_v6 }
 0x16d   : > { %5248 = vmatmul.msk.bf16.gmra.mxu0 %vm1236_vm0, %v6969_v7  ;;  %5252 = vmatmul.msk.bf16.gmra.mxu1 %vm1236_vm0, %v6973_v8 }
 0x16e   : > { %5256 = vmatmul.msk.bf16.gmra.mxu2 %vm1236_vm0, %v6977_v9  ;;  %5260 = vmatmul.msk.bf16.gmra.mxu3 %vm1236_vm0, %v6981_v10 }
 0x17d   : > { %5249 = vmatmul.msk.bf16.gmra.mxu0 %vm1236_vm0, %v6970_v11  ;;  %5253 = vmatmul.msk.bf16.gmra.mxu1 %vm1236_vm0, %v6974_v12 }
 0x17e   : > { %5257 = vmatmul.msk.bf16.gmra.mxu2 %vm1236_vm0, %v6978_v13  ;;  %5261 = vmatmul.msk.bf16.gmra.mxu3 %vm1236_vm0, %v6982_v14 }
 0x18d   : > { %5250 = vmatmul.msk.bf16.gmra.mxu0 %vm1236_vm0, %v6971_v15  ;;  %5254 = vmatmul.msk.bf16.gmra.mxu1 %vm1236_vm0, %v6975_v16 }
 0x18e   : > { %5258 = vmatmul.msk.bf16.gmra.mxu2 %vm1236_vm0, %v6979_v17  ;;  %5262 = vmatmul.msk.bf16.gmra.mxu3 %vm1236_vm0, %v6983_v18 }
 0x1da   : > { %v1294_v19 = vpop.f32.mrf.mxu0  ;;  %v1314_v20 = vpop.f32.mrf.mxu1 }
 0x1db   : > { %v1378_v34 = vmul.f32 %v8597_v31, %v1294_v19  ;;  %v1386_v61 = vmul.f32 %v8597_v31, %v1314_v20 }
 0x1dd   : > { %v1414_v41 = vadd.f32 %v8606_v35, %v1378_v34  ;;  %v8628_v8 = vadd.f32 %v8606_v35, %v1386_v61 }
 0x1df   : > { %v1446_v46 = vadd.f32 3.0, %v1414_v41 }
 0x1e1   : > { %v8586_v21 = vpop.f32.mrf.mxu2  ;;  %v8590_v27 = vpop.f32.mrf.mxu3  ;;  %v1478_v55 = vmax.f32 %v1446_v46, 0.0 }
 0x1e2   : > { %v1296_v22 = vpop.f32.mrf.mxu0  ;;  %v1316_v23 = vpop.f32.mrf.mxu1 }
 0x1e3   : > { %v1379_v33 = vmul.f32 %v8597_v31, %v1296_v22  ;;  %v1510_v63 = vmin.f32 %v1478_v55, 6.0  ;;  %v1387_v2 = vmul.f32 %v8597_v31, %v1316_v23  ;;  %v1454_v22 = vadd.f32 3.0, %v8628_v8 }
 0x1e5   : > { %v1415_v39 = vadd.f32 %v8606_v35, %v1379_v33  ;;  %v1542_v12 = vmul.f32 %v1510_v63, %v1414_v41  ;;  %v8635_v16 = vadd.f32 %v8606_v35, %v1387_v2 }
 0x1e7   : > { %v1447_v45 = vadd.f32 3.0, %v1415_v39  ;;  %v1574_v33 = vmul.f32 0.16666667, %v1542_v12 }
 0x1e9   : > { %v8588_v24 = vpop.f32.mrf.mxu2  ;;  %v8599_v32 = vpop.f32.mrf.mxu3  ;;  %v1479_v54 = vmax.f32 %v1447_v45, 0.0 }
 0x1ea   : > { %v1299_v25 = vpop.f32.mrf.mxu0  ;;  %v1319_v26 = vpop.f32.mrf.mxu1 }
 0x1eb   : > { %v1380_v36 = vmul.f32 %v8597_v31, %v1299_v25  ;;  %v1511_v62 = vmin.f32 %v1479_v54, 6.0  ;;  %v1388_v10 = vmul.f32 %v8597_v31, %v1319_v26 }
 0x1ed   : > { %v1416_v43 = vadd.f32 %v8606_v35, %v1380_v36  ;;  %v1543_v9 = vmul.f32 %v1511_v62, %v1415_v39  ;;  %v8640_v25 = vadd.f32 %v8606_v35, %v1388_v10  ;;  %v1455_v39 = vadd.f32 3.0, %v8635_v16 }
 0x1ef   : > { %v1448_v49 = vadd.f32 3.0, %v1416_v43  ;;  %v1575_v23 = vmul.f32 0.16666667, %v1543_v9 }
 0x1f1   : > { %v8592_v28 = vpop.f32.mrf.mxu2  ;;  %v8617_v48 = vpop.f32.mrf.mxu3  ;;  %v1480_v58 = vmax.f32 %v1448_v49, 0.0  ;;  %v1606_v49 = vadd.f32 %v1575_v23, %v1574_v33 }
 0x1f2   : > { %v1301_v29 = vpop.f32.mrf.mxu0  ;;  %v1321_v30 = vpop.f32.mrf.mxu1  ;;  %v1396_v33 = vmul.f32 %v8597_v31, %v8592_v28 }
 0x1f3   : > { %v1381_v42 = vmul.f32 %v8597_v31, %v1301_v29  ;;  %v1512_v3 = vmin.f32 %v1480_v58, 6.0  ;;  %v1389_v18 = vmul.f32 %v8597_v31, %v1321_v30 }
 0x1f5   : > { %v1417_v47 = vadd.f32 %v8606_v35, %v1381_v42  ;;  %v1544_v17 = vmul.f32 %v1512_v3, %v1416_v43  ;;  %v8647_v30 = vadd.f32 %v8606_v35, %v1389_v18 }
 0x1f7   : > { %v1449_v56 = vadd.f32 3.0, %v1417_v47  ;;  %v1576_v41 = vmul.f32 0.16666667, %v1544_v17 }
 0x1f9   : > { %v8610_v40 = vpop.f32.mrf.mxu2  ;;  %v1481_v0 = vmax.f32 %v1449_v56, 0.0  ;;  %v8631_v11 = vpop.f32.mrf.mxu3 }
 0x1fa   : > { %v1304_v37 = vpop.f32.mrf.mxu0  ;;  %v1324_v38 = vpop.f32.mrf.mxu1 }
 0x1fb   : > { %v1382_v44 = vmul.f32 %v8597_v31, %v1304_v37  ;;  %v1513_v13 = vmin.f32 %v1481_v0, 6.0  ;;  %v1390_v26 = vmul.f32 %v8597_v31, %v1324_v38  ;;  %v1486_v38 = vmax.f32 %v1454_v22, 0.0 }
 0x1fd   : > { %v1418_v52 = vadd.f32 %v8606_v35, %v1382_v44  ;;  %v1545_v34 = vmul.f32 %v1513_v13, %v1417_v47  ;;  %v8653_v47 = vadd.f32 %v8606_v35, %v1390_v26  ;;  %v1518_v3 = vmin.f32 %v1486_v38, 6.0 }
 0x1ff   : > { %v1450_v60 = vadd.f32 3.0, %v1418_v52  ;;  %v1577_v54 = vmul.f32 0.16666667, %v1545_v34  ;;  %v1550_v22 = vmul.f32 %v1518_v3, %v8628_v8  ;;  %v1397_v8 = vmul.f32 %v8597_v31, %v8610_v40 }
 0x201   : > { %v8622_v59 = vpop.f32.mrf.mxu2  ;;  %v1482_v6 = vmax.f32 %v1450_v60, 0.0  ;;  %v1607_v60 = vadd.f32 %v1606_v49, %v1576_v41  ;;  %v8661_v62 = vpop.f32.mrf.mxu3  ;;  %v8693_v49 = vadd.f32 %v8606_v35, %v1396_v33 }
 0x202   : > { %v1306_v50 = vpop.f32.mrf.mxu0  ;;  %v1326_v51 = vpop.f32.mrf.mxu1 }
 0x203   : > { %v1383_v53 = vmul.f32 %v8597_v31, %v1306_v50  ;;  %v1514_v19 = vmin.f32 %v1482_v6, 6.0  ;;  %v1391_v42 = vmul.f32 %v8597_v31, %v1326_v51  ;;  %v1456_v50 = vadd.f32 3.0, %v8640_v25 }
 0x204   : > { %v1487_v51 = vmax.f32 %v1455_v39, 0.0  ;;  %v1608_v6 = vadd.f32 %v1607_v60, %v1577_v54 }
 0x205   : > { %v1419_v57 = vadd.f32 %v8606_v35, %v1383_v53  ;;  %v1546_v44 = vmul.f32 %v1514_v19, %v1418_v52  ;;  %v1457_v52 = vadd.f32 3.0, %v8647_v30  ;;  %v8659_v61 = vadd.f32 %v8606_v35, %v1391_v42 }
 0x206   : > { %v1519_v12 = vmin.f32 %v1487_v51, 6.0 }
 0x207   : > { %v1451_v1 = vadd.f32 3.0, %v1419_v57  ;;  %v1578_v63 = vmul.f32 0.16666667, %v1546_v44  ;;  %v1489_v13 = vmax.f32 %v1457_v52, 0.0 }
 0x208   : > { %v1551_v39 = vmul.f32 %v1519_v12, %v8635_v16  ;;  %v1398_v16 = vmul.f32 %v8597_v31, %v8622_v59 }
 0x209   : > { %v1483_v14 = vmax.f32 %v1451_v1, 0.0  ;;  %v8643_v29 = vpop.f32.mrf.mxu2  ;;  %v1609_v18 = vadd.f32 %v1608_v6, %v1578_v63  ;;  %v1521_v41 = vmin.f32 %v1489_v13, 6.0 }
 0x20a   : > { %v1309_v4 = vpop.f32.mrf.mxu0  ;;  %v1329_v5 = vpop.f32.mrf.mxu1  ;;  %v1399_v51 = vmul.f32 %v8597_v31, %v8643_v29  ;;  %v1583_v60 = vmul.f32 0.16666667, %v1551_v39  ;;  %v8708_v3 = vadd.f32 %v8606_v35, %v1398_v16 }
 0x20b   : > { %v1384_v7 = vmul.f32 %v8597_v31, %v1309_v4  ;;  %v1515_v36 = vmin.f32 %v1483_v14, 6.0  ;;  %v1392_v56 = vmul.f32 %v8597_v31, %v1329_v5  ;;  %v1394_v4 = vmul.f32 %v8597_v31, %v8586_v21 }
 0x20c   : > { %v1458_v5 = vadd.f32 3.0, %v8653_v47  ;;  %v1395_v14 = vmul.f32 %v8597_v31, %v8588_v24  ;;  %v8714_v12 = vadd.f32 %v8606_v35, %v1399_v51 }
 0x20d   : > { %v1420_v15 = vadd.f32 %v8606_v35, %v1384_v7  ;;  %v1547_v55 = vmul.f32 %v1515_v36, %v1419_v57  ;;  %v1488_v57 = vmax.f32 %v1456_v50, 0.0  ;;  %v8668_v9 = vadd.f32 %v8606_v35, %v1392_v56  ;;  %v8697_v50 = vpop.f32.mrf.mxu3 }
 0x20e   : > { %v8678_v26 = vadd.f32 %v8606_v35, %v1394_v4  ;;  %v1490_v34 = vmax.f32 %v1458_v5, 0.0  ;;  %v8685_v42 = vadd.f32 %v8606_v35, %v1395_v14  ;;  %v1553_v56 = vmul.f32 %v1521_v41, %v8647_v30 }
 0x20f   : > { %v1452_v20 = vadd.f32 3.0, %v1420_v15  ;;  %v1579_v7 = vmul.f32 0.16666667, %v1547_v55  ;;  %v1520_v23 = vmin.f32 %v1488_v57, 6.0  ;;  %v1460_v36 = vadd.f32 3.0, %v8668_v9 }
 0x210   : > { %v1462_v38 = vadd.f32 3.0, %v8678_v26  ;;  %v1522_v54 = vmin.f32 %v1490_v34, 6.0 }
 0x211   : > { %v1484_v37 = vmax.f32 %v1452_v20, 0.0  ;;  %v1349_v17 = vpop.f32.mrf.mxu2  ;;  %v1610_v24 = vadd.f32 %v1609_v18, %v1579_v7  ;;  %v1552_v28 = vmul.f32 %v1520_v23, %v8640_v25  ;;  %v1492_v40 = vmax.f32 %v1460_v36, 0.0 }
 0x212   : > { %v1311_v43 = vpop.f32.mrf.mxu0  ;;  %v1331_v53 = vpop.f32.mrf.mxu1  ;;  %v8702_v25 = vadd.f32 %v8606_v35, %v1397_v8  ;;  %v1554_v57 = vmul.f32 %v1522_v54, %v8653_v47  ;;  %v1400_v6 = vmul.f32 %v8597_v31, %v1349_v17  ;;  %v1585_v7 = vmul.f32 0.16666667, %v1553_v56 }
 0x213   : > { %v1516_v45 = vmin.f32 %v1484_v37, 6.0  ;;  %v1385_v46 = vmul.f32 %v8597_v31, %v1311_v43  ;;  %v1393_v2 = vmul.f32 %v8597_v31, %v1331_v53  ;;  %v1582_v53 = vmul.f32 0.16666667, %v1550_v22 }
 0x214   : > { %v1524_v4 = vmin.f32 %v1492_v40, 6.0  ;;  %v1402_v47 = vmul.f32 %v8597_v31, %v8590_v27  ;;  %v1466_v17 = vadd.f32 3.0, %v8708_v3  ;;  %v1586_v22 = vmul.f32 0.16666667, %v1554_v57 }
 0x215   : > { %v1421_v58 = vadd.f32 %v8606_v35, %v1385_v46  ;;  %v1548_v0 = vmul.f32 %v1516_v45, %v1420_v15  ;;  %v1459_v15 = vadd.f32 3.0, %v8659_v61  ;;  %v8674_v21 = vadd.f32 %v8606_v35, %v1393_v2  ;;  %v1369_v39 = vpop.f32.mrf.mxu3 }
 0x216   : > { %v1464_v2 = vadd.f32 3.0, %v8693_v49  ;;  %v1556_v23 = vmul.f32 %v1524_v4, %v8668_v9  ;;  %v8723_v34 = vadd.f32 %v8606_v35, %v1400_v6  ;;  %v1403_v36 = vmul.f32 %v8597_v31, %v8599_v32 }
 0x217   : > { %v1453_v1 = vadd.f32 3.0, %v1421_v58  ;;  %v1580_v19 = vmul.f32 0.16666667, %v1548_v0  ;;  %v1491_v43 = vmax.f32 %v1459_v15, 0.0  ;;  %v1461_v46 = vadd.f32 3.0, %v8674_v21 }
 0x218   : > { %v1584_v0 = vmul.f32 0.16666667, %v1552_v28  ;;  %v1588_v28 = vmul.f32 0.16666667, %v1556_v23  ;;  %v1468_v16 = vadd.f32 3.0, %v8723_v34  ;;  %v1405_v40 = vmul.f32 %v8597_v31, %v8631_v11 }
 0x219   : > { %v1485_v10 = vmax.f32 %v1453_v1, 0.0  ;;  %v1611_v44 = vadd.f32 %v1610_v24, %v1580_v19  ;;  %v1523_v52 = vmin.f32 %v1491_v43, 6.0  ;;  %v1493_v59 = vmax.f32 %v1461_v46, 0.0  ;;  %v1351_v30 = vpop.f32.mrf.mxu2 }
 0x21a   : > { %v1494_v1 = vmax.f32 %v1462_v38, 0.0  ;;  %v1401_v18 = vmul.f32 %v8597_v31, %v1351_v30  ;;  %v1404_v46 = vmul.f32 %v8597_v31, %v8617_v48  ;;  %v1498_v38 = vmax.f32 %v1466_v17, 0.0 }
 0x21b   : > { %v1517_v20 = vmin.f32 %v1485_v10, 6.0  ;;  %v1465_v10 = vadd.f32 3.0, %v8702_v25  ;;  %v1555_v13 = vmul.f32 %v1523_v52, %v8659_v61  ;;  %v1525_v15 = vmin.f32 %v1493_v59, 6.0 }
 0x21c   : > { %v1526_v19 = vmin.f32 %v1494_v1, 6.0  ;;  %v1437_v43 = vadd.f32 %v8606_v35, %v1401_v18  ;;  %v1406_v52 = vmul.f32 %v8597_v31, %v8661_v62  ;;  %v1441_v11 = vadd.f32 %v8606_v35, %v1405_v40 }
 0x21d   : > { %v1549_v37 = vmul.f32 %v1517_v20, %v1421_v58  ;;  %v1463_v58 = vadd.f32 3.0, %v8685_v42  ;;  %v1496_v20 = vmax.f32 %v1464_v2, 0.0  ;;  %v1497_v61 = vmax.f32 %v1465_v10, 0.0  ;;  %v1371_v10 = vpop.f32.mrf.mxu3 }
 0x21e   : > { %v1587_v41 = vmul.f32 0.16666667, %v1555_v13  ;;  %v1557_v27 = vmul.f32 %v1525_v15, %v8674_v21  ;;  %v1558_v9 = vmul.f32 %v1526_v19, %v8678_v26  ;;  %v1439_v21 = vadd.f32 %v8606_v35, %v1403_v36 }
 0x21f   : > { %v1581_v45 = vmul.f32 0.16666667, %v1549_v37  ;;  %v1495_v29 = vmax.f32 %v1463_v58, 0.0  ;;  %v1467_v37 = vadd.f32 3.0, %v8714_v12  ;;  %v1529_v54 = vmin.f32 %v1497_v61, 6.0 }
 0x220   : > { %v1589_v26 = vmul.f32 0.16666667, %v1557_v27  ;;  %v1469_v58 = vadd.f32 3.0, %v1437_v43  ;;  %v1471_v2 = vadd.f32 3.0, %v1439_v21  ;;  %v1407_v30 = vmul.f32 %v8597_v31, %v8697_v50 }
 0x221   : > { %v1612_v55 = vadd.f32 %v1611_v44, %v1581_v45  ;;  %v1527_v24 = vmin.f32 %v1495_v29, 6.0  ;;  %v1528_v44 = vmin.f32 %v1496_v20, 6.0  ;;  %v1438_v45 = vadd.f32 %v8606_v35, %v1402_v47 }
 0x222   : > { %v1499_v56 = vmax.f32 %v1467_v37, 0.0  ;;  %v1561_v1 = vmul.f32 %v1529_v54, %v8702_v25  ;;  %v1442_v62 = vadd.f32 %v8606_v35, %v1406_v52  ;;  %v1408_v15 = vmul.f32 %v8597_v31, %v1369_v39 }
 0x223   : > { %v1613_v63 = vadd.f32 %v1612_v55, %v1582_v53  ;;  %v1559_v53 = vmul.f32 %v1527_v24, %v8685_v42  ;;  %v1560_v51 = vmul.f32 %v1528_v44, %v8693_v49  ;;  %v1470_v48 = vadd.f32 3.0, %v1438_v45 }
 0x224   : > { %v1530_v42 = vmin.f32 %v1498_v38, 6.0  ;;  %v1531_v4 = vmin.f32 %v1499_v56, 6.0  ;;  %v1593_v18 = vmul.f32 0.16666667, %v1561_v1  ;;  %v1503_v19 = vmax.f32 %v1471_v2, 0.0 }
 0x225   : > { %v1614_v5 = vadd.f32 %v1613_v63, %v1583_v60  ;;  %v1440_v60 = vadd.f32 %v8606_v35, %v1404_v46  ;;  %v1590_v63 = vmul.f32 0.16666667, %v1558_v9  ;;  %v1591_v57 = vmul.f32 0.16666667, %v1559_v53 }
 0x226   : > { %v1592_v6 = vmul.f32 0.16666667, %v1560_v51  ;;  %v1562_v13 = vmul.f32 %v1530_v42, %v8708_v3  ;;  %v1473_v20 = vadd.f32 3.0, %v1441_v11  ;;  %v1443_v50 = vadd.f32 %v8606_v35, %v1407_v30 }
 0x227   : > { %v1615_v14 = vadd.f32 %v1614_v5, %v1584_v0  ;;  %v1500_v0 = vmax.f32 %v1468_v16, 0.0  ;;  %v1501_v5 = vmax.f32 %v1469_v58, 0.0  ;;  %v1472_v29 = vadd.f32 3.0, %v1440_v60 }
 0x228   : > { %v1563_v47 = vmul.f32 %v1531_v4, %v8714_v12  ;;  %v1409_v23 = vmul.f32 %v8597_v31, %v1371_v10  ;;  %v1474_v61 = vadd.f32 3.0, %v1442_v62  ;;  %v1594_v36 = vmul.f32 0.16666667, %v1562_v13 }
 0x229   : > { %v1616_v33 = vadd.f32 %v1615_v14, %v1585_v7  ;;  %v1502_v7 = vmax.f32 %v1470_v48, 0.0  ;;  %v1532_v25 = vmin.f32 %v1500_v0, 6.0  ;;  %v1504_v24 = vmax.f32 %v1472_v29, 0.0 }
 0x22a   : > { %v1444_v39 = vadd.f32 %v8606_v35, %v1408_v15  ;;  %v1505_v27 = vmax.f32 %v1473_v20, 0.0  ;;  %v1595_v9 = vmul.f32 0.16666667, %v1563_v47  ;;  %v1445_v12 = vadd.f32 %v8606_v35, %v1409_v23 }
 0x22b   : > { %v1617_v8 = vadd.f32 %v1616_v33, %v1586_v22  ;;  %v1533_v22 = vmin.f32 %v1501_v5, 6.0  ;;  %v1534_v33 = vmin.f32 %v1502_v7, 6.0  ;;  %v1564_v37 = vmul.f32 %v1532_v25, %v8723_v34 }
 0x22c   : > { %v1536_v38 = vmin.f32 %v1504_v24, 6.0  ;;  %v1506_v16 = vmax.f32 %v1474_v61, 0.0  ;;  %v1476_v53 = vadd.f32 3.0, %v1444_v39  ;;  %v1537_v40 = vmin.f32 %v1505_v27, 6.0 }
 0x22d   : > { %v1618_v32 = vadd.f32 %v1617_v8, %v1587_v41  ;;  %v1535_v41 = vmin.f32 %v1503_v19, 6.0  ;;  %v1475_v8 = vadd.f32 3.0, %v1443_v50  ;;  %v1565_v46 = vmul.f32 %v1533_v22, %v1437_v43 }
 0x22e   : > { %v1477_v56 = vadd.f32 3.0, %v1445_v12  ;;  %v1568_v51 = vmul.f32 %v1536_v38, %v1440_v60  ;;  %v1538_v48 = vmin.f32 %v1506_v16, 6.0  ;;  %v1569_v42 = vmul.f32 %v1537_v40, %v1441_v11 }
 0x22f   : > { %v1619_v55 = vadd.f32 %v1618_v32, %v1588_v28  ;;  %v1566_v28 = vmul.f32 %v1534_v33, %v1438_v45  ;;  %v1596_v32 = vmul.f32 0.16666667, %v1564_v37  ;;  %v1567_v54 = vmul.f32 %v1535_v41, %v1439_v21 }
 0x230   : > { %v1597_v34 = vmul.f32 0.16666667, %v1565_v46  ;;  %v7488_v0 = vmov 256.0   ;;  %v1600_v1 = vmul.f32 0.16666667, %v1568_v51  ;;  %v1570_v2 = vmul.f32 %v1538_v48, %v1442_v62 }
 0x231   : > { %v1620_v59 = vadd.f32 %v1619_v55, %v1589_v26  ;;  %v1507_v55 = vmax.f32 %v1475_v8, 0.0  ;;  %v1598_v58 = vmul.f32 0.16666667, %v1566_v28  ;;  %v1599_v43 = vmul.f32 0.16666667, %v1567_v54 }
 0x232   : > { %7438 = vrcp.f32 %v7488_v0  ;;  %v1602_v60 = vmul.f32 0.16666667, %v1570_v2 }
 0x233   : > { %v1621_v49 = vadd.f32 %v1620_v59, %v1590_v63  ;;  %v1508_v63 = vmax.f32 %v1476_v53, 0.0  ;;  %v1539_v45 = vmin.f32 %v1507_v55, 6.0  ;;  %v1509_v59 = vmax.f32 %v1477_v56, 0.0 }
 0x235   : > { %v1622_v14 = vadd.f32 %v1621_v49, %v1591_v57  ;;  %v1540_v30 = vmin.f32 %v1508_v63, 6.0  ;;  %v1601_v57 = vmul.f32 0.16666667, %v1569_v42  ;;  %v1571_v49 = vmul.f32 %v1539_v45, %v1443_v50 }
 0x236   : > { %v1541_v5 = vmin.f32 %v1509_v59, 6.0 }
 0x237   : > { %v1623_v17 = vadd.f32 %v1622_v14, %v1592_v6  ;;  %v1572_v29 = vmul.f32 %v1540_v30, %v1444_v39  ;;  %v1603_v10 = vmul.f32 0.16666667, %v1571_v49 }
 0x238   : > { %v7439_v6 = vpop.eup %7438  ;;  %v1573_v11 = vmul.f32 %v1541_v5, %v1445_v12 }
 0x239   : > { %v1624_v3 = vadd.f32 %v1623_v17, %v1593_v18  ;;  %v1644_v14 = vmul.f32 256.0, %v7439_v6  ;;  %v1604_v15 = vmul.f32 0.16666667, %v1572_v29  ;;  %vm1648_vm1 = vweird.f32 %v7439_v6 }
 0x23a   : > { %v1605_v19 = vmul.f32 0.16666667, %v1573_v11 }
 0x23b   : > { %v1625_v44 = vadd.f32 %v1624_v3, %v1594_v36  ;;  %v1645_v62 = vsub.f32 1.0, %v1644_v14 }
 0x23d   : > { %v1626_v31 = vadd.f32 %v1625_v44, %v1595_v9  ;;  %v1646_v17 = vmul.f32 %v7439_v6, %v1645_v62 }
 0x23f   : > { %v1627_v26 = vadd.f32 %v1626_v31, %v1596_v32  ;;  %v1647_v23 = vadd.f32 %v7439_v6, %v1646_v17 }
 0x241   : > { %v1628_v52 = vadd.f32 %v1627_v26, %v1597_v34  ;;  %v1649_v61 = vsel %vm1648_vm1, %v7439_v6, %v1647_v23 }
 0x243   : > { %v1629_v35 = vadd.f32 %v1628_v52, %v1598_v58 }
 0x245   : > { %v1630_v21 = vadd.f32 %v1629_v35, %v1599_v43 }
 0x247   : > { %v1631_v4 = vadd.f32 %v1630_v21, %v1600_v1 }
 0x249   : > { %v1632_v7 = vadd.f32 %v1631_v4, %v1601_v57 }
 0x24b   : > { %v1633_v13 = vadd.f32 %v1632_v7, %v1602_v60 }
 0x24d   : > { %v1634_v25 = vadd.f32 %v1633_v13, %v1603_v10 }
 0x24f   : > { %v1635_v18 = vadd.f32 %v1634_v25, %v1604_v15 }
 0x251   : > { %v1636_v20 = vadd.f32 %v1635_v18, %v1605_v19 }
 0x253   : > { %v1637_v47 = vrot.slane %v1636_v20, 4 }
 0x255   : > { %v1638_v50 = vadd.f32 %v1637_v47, %v1636_v20 }
 0x257   : > { %v1639_v22 = vrot.slane %v1638_v50, 2 }
 0x259   : > { %v1640_v33 = vadd.f32 %v1639_v22, %v1638_v50 }
 0x25b   : > { %v1641_v24 = vrot.slane %v1640_v33, 1 }
 0x25d   : > { %v1642_v36 = vadd.f32 %v1641_v24, %v1640_v33  ;;  %1656 = sbr.rel (%p5264_p5) target bundleno = 1469 (0x5bd), region = 118 }
 0x25f   : > { %v1650_v3 = vmul.f32 %v1649_v61, %v1642_v36 }
 0x261   : > { %6988 = vst [vmem:[%s6986_s23 - $0x1] sm:$0x1] %v1650_v3 }
 0x262   : > { %7475 = dma.done.wait [#allocation5], 20480 }
 0x263   : > { %7476 = vsyncadd [#allocation5], 4294946816 }
 0x264   : > { %7477 = dma.done.wait [#allocation5 + $0x1], 20480 }
 0x265   : > { %7478 = vsyncadd [#allocation5 + $0x1], 4294946816  ;;  %v5547_v37 = vld [vmem:[%s9483_s4 + $0x230] sm:$0xf]  ;;  %v7064_v39 = vld [vmem:[%s9483_s4 + $0x254] sm:$0xf0] }
 0x266   : > { %v7059_v41 = vld [vmem:[%s9483_s4 + $0x234] sm:$0xf]  ;;  %v5548_v27 = vor.u32 %v7064_v39, %v5547_v37  ;;  %v5549_v8 = vld [vmem:[%s9483_s4 + $0x258] sm:$0xf0]  ;;  %v5555_v9 = vld [vmem:[%s9483_s4 + $0x238] sm:$0xf] }
 0x267   : > { %v7065_v44 = vld [vmem:[%s9483_s4 + $0x25c] sm:$0xf0]  ;;  %v5552_v46 = vor.u32 %v7059_v41, %v5549_v8  ;;  %v7060_v28 = vld [vmem:[%s9483_s4 + $0x23c] sm:$0xf]  ;;  %v5557_v38 = vld [vmem:[%s9483_s4 + $0x260] sm:$0xf0] }
 0x268   : > { %v5556_v12 = vor.u32 %v7065_v44, %v5555_v9  ;;  %v5507_v31 = vld [vmem:[%s9483_s4 + $0x1e0] sm:$0xf]  ;;  %2170 = vmatpush.bf16.msra.mxu0 %v5548_v27  ;;  %v5560_v32 = vor.u32 %v7060_v28, %v5557_v38  ;;  %v7054_v16 = vld [vmem:[%s9483_s4 + $0x204] sm:$0xf0]  ;;  %v7049_v53 = vld [vmem:[%s9483_s4 + $0x1e4] sm:$0xf] }
 0x269   : > { %v5509_v54 = vld [vmem:[%s9483_s4 + $0x208] sm:$0xf0]  ;;  %2183 = vmatpush.bf16.msra.mxu1 %v5552_v46  ;;  %v5508_v40 = vor.u32 %v7054_v16, %v5507_v31  ;;  %v5515_v34 = vld [vmem:[%s9483_s4 + $0x1e8] sm:$0xf]  ;;  %v7055_v55 = vld [vmem:[%s9483_s4 + $0x20c] sm:$0xf0] }
 0x26a   : > { %2196 = vmatpush.bf16.msra.mxu2 %v5556_v12  ;;  %v5512_v26 = vor.u32 %v7049_v53, %v5509_v54  ;;  %v7050_v56 = vld [vmem:[%s9483_s4 + $0x1ec] sm:$0xf]  ;;  %2209 = vmatpush.bf16.msra.mxu3 %v5560_v32  ;;  %v5516_v58 = vor.u32 %v7055_v55, %v5515_v34  ;;  %v5517_v51 = vld [vmem:[%s9483_s4 + $0x210] sm:$0xf0]  ;;  %v5467_v48 = vld [vmem:[%s9483_s4 + $0x190] sm:$0xf] }
 0x26b   : > { %v7044_v52 = vld [vmem:[%s9483_s4 + $0x1b4] sm:$0xf0]  ;;  %v5520_v63 = vor.u32 %v7050_v56, %v5517_v51  ;;  %v7039_v43 = vld [vmem:[%s9483_s4 + $0x194] sm:$0xf]  ;;  %v5469_v42 = vld [vmem:[%s9483_s4 + $0x1b8] sm:$0xf0] }
 0x26c   : > { %v5475_v35 = vld [vmem:[%s9483_s4 + $0x198] sm:$0xf]  ;;  %2171 = vmatpush.bf16.msra.mxu0 %v5508_v40  ;;  %v5468_v45 = vor.u32 %v7044_v52, %v5467_v48  ;;  %v7045_v59 = vld [vmem:[%s9483_s4 + $0x1bc] sm:$0xf0]  ;;  %v7040_v0 = vld [vmem:[%s9483_s4 + $0x19c] sm:$0xf]  ;;  %v5472_v2 = vor.u32 %v7039_v43, %v5469_v42 }
 0x26d   : > { %v5477_v1 = vld [vmem:[%s9483_s4 + $0x1c0] sm:$0xf0]  ;;  %2184 = vmatpush.bf16.msra.mxu1 %v5512_v26  ;;  %v5476_v21 = vor.u32 %v7045_v59, %v5475_v35  ;;  %v5427_v30 = vld [vmem:[%s9483_s4 + $0x140] sm:$0xf]  ;;  %v7034_v57 = vld [vmem:[%s9483_s4 + $0x164] sm:$0xf0] }
 0x26e   : > { %2197 = vmatpush.bf16.msra.mxu2 %v5516_v58  ;;  %v7029_v49 = vld [vmem:[%s9483_s4 + $0x144] sm:$0xf]  ;;  %2210 = vmatpush.bf16.msra.mxu3 %v5520_v63  ;;  %v5480_v4 = vor.u32 %v7040_v0, %v5477_v1  ;;  %v5429_v5 = vld [vmem:[%s9483_s4 + $0x168] sm:$0xf0]  ;;  %v5435_v6 = vld [vmem:[%s9483_s4 + $0x148] sm:$0xf]  ;;  %v5428_v10 = vor.u32 %v7034_v57, %v5427_v30 }
 0x26f   : > { %v7035_v60 = vld [vmem:[%s9483_s4 + $0x16c] sm:$0xf0]  ;;  %v7030_v7 = vld [vmem:[%s9483_s4 + $0x14c] sm:$0xf]  ;;  %v5437_v29 = vld [vmem:[%s9483_s4 + $0x170] sm:$0xf0]  ;;  %v5432_v13 = vor.u32 %v7029_v49, %v5429_v5 }
 0x270   : > { %2172 = vmatpush.bf16.msra.mxu0 %v5468_v45  ;;  %v5436_v11 = vor.u32 %v7035_v60, %v5435_v6  ;;  %v5387_v14 = vld [vmem:[%s9483_s4 + $0xf0] sm:$0xf]  ;;  %v7024_v25 = vld [vmem:[%s9483_s4 + $0x114] sm:$0xf0]  ;;  %v7019_v15 = vld [vmem:[%s9483_s4 + $0xf4] sm:$0xf]  ;;  %v5440_v18 = vor.u32 %v7030_v7, %v5437_v29 }
 0x271   : > { %2185 = vmatpush.bf16.msra.mxu1 %v5472_v2  ;;  %v5389_v19 = vld [vmem:[%s9483_s4 + $0x118] sm:$0xf0]  ;;  %v5395_v62 = vld [vmem:[%s9483_s4 + $0xf8] sm:$0xf]  ;;  %v7025_v20 = vld [vmem:[%s9483_s4 + $0x11c] sm:$0xf0]  ;;  %v5388_v50 = vor.u32 %v7024_v25, %v5387_v14 }
 0x272   : > { %2198 = vmatpush.bf16.msra.mxu2 %v5476_v21  ;;  %2211 = vmatpush.bf16.msra.mxu3 %v5480_v4  ;;  %v7020_v47 = vld [vmem:[%s9483_s4 + $0xfc] sm:$0xf]  ;;  %v5397_v17 = vld [vmem:[%s9483_s4 + $0x120] sm:$0xf0]  ;;  %v5392_v22 = vor.u32 %v7019_v15, %v5389_v19  ;;  %v5396_v23 = vor.u32 %v7025_v20, %v5395_v62  ;;  %v5347_v33 = vld [vmem:[%s9483_s4 + $0xa0] sm:$0xf] }
 0x273   : > { %v7014_v24 = vld [vmem:[%s9483_s4 + $0xc4] sm:$0xf0]  ;;  %v7009_v61 = vld [vmem:[%s9483_s4 + $0xa4] sm:$0xf]  ;;  %v5400_v36 = vor.u32 %v7020_v47, %v5397_v17  ;;  %v5349_v3 = vld [vmem:[%s9483_s4 + $0xc8] sm:$0xf0] }
 0x274   : > { %2173 = vmatpush.bf16.msra.mxu0 %v5428_v10  ;;  %v5355_v37 = vld [vmem:[%s9483_s4 + $0xa8] sm:$0xf]  ;;  %v7015_v39 = vld [vmem:[%s9483_s4 + $0xcc] sm:$0xf0]  ;;  %v7010_v41 = vld [vmem:[%s9483_s4 + $0xac] sm:$0xf]  ;;  %v5348_v8 = vor.u32 %v7014_v24, %v5347_v33  ;;  %v5352_v9 = vor.u32 %v7009_v61, %v5349_v3 }
 0x275   : > { %2186 = vmatpush.bf16.msra.mxu1 %v5432_v13  ;;  %v5357_v27 = vld [vmem:[%s9483_s4 + $0xd0] sm:$0xf0]  ;;  %v5356_v44 = vor.u32 %v7015_v39, %v5355_v37  ;;  %v5307_v46 = vld [vmem:[%s9483_s4 + $0x50] sm:$0xf]  ;;  %v7004_v12 = vld [vmem:[%s9483_s4 + $0x74] sm:$0xf0] }
 0x276   : > { %2199 = vmatpush.bf16.msra.mxu2 %v5436_v11  ;;  %2212 = vmatpush.bf16.msra.mxu3 %v5440_v18  ;;  %v6999_v28 = vld [vmem:[%s9483_s4 + $0x54] sm:$0xf]  ;;  %v5360_v38 = vor.u32 %v7010_v41, %v5357_v27  ;;  %v5309_v31 = vld [vmem:[%s9483_s4 + $0x78] sm:$0xf0]  ;;  %v5315_v32 = vld [vmem:[%s9483_s4 + $0x58] sm:$0xf]  ;;  %v5308_v40 = vor.u32 %v7004_v12, %v5307_v46 }
 0x277   : > { %v7005_v16 = vld [vmem:[%s9483_s4 + $0x7c] sm:$0xf0]  ;;  %v7000_v53 = vld [vmem:[%s9483_s4 + $0x5c] sm:$0xf]  ;;  %v5317_v54 = vld [vmem:[%s9483_s4 + $0x80] sm:$0xf0]  ;;  %v5312_v55 = vor.u32 %v6999_v28, %v5309_v31 }
 0x278   : > { %2174 = vmatpush.bf16.msra.mxu0 %v5388_v50  ;;  %v5267_v26 = vld [vmem:[%s9483_s4] sm:$0xf]  ;;  %v6994_v34 = vld [vmem:[%s9483_s4 + $0x24] sm:$0xf0]  ;;  %v5316_v56 = vor.u32 %v7005_v16, %v5315_v32  ;;  %v6989_v58 = vld [vmem:[%s9483_s4 + $0x4] sm:$0xf]  ;;  %v5320_v52 = vor.u32 %v7000_v53, %v5317_v54 }
 0x279   : > { %2187 = vmatpush.bf16.msra.mxu1 %v5392_v22  ;;  %v5269_v51 = vld [vmem:[%s9483_s4 + $0x28] sm:$0xf0]  ;;  %v5275_v48 = vld [vmem:[%s9483_s4 + $0x8] sm:$0xf]  ;;  %v6995_v63 = vld [vmem:[%s9483_s4 + $0x2c] sm:$0xf0]  ;;  %v5268_v0 = vor.u32 %v6994_v34, %v5267_v26 }
 0x27a   : > { %2200 = vmatpush.bf16.msra.mxu2 %v5396_v23  ;;  %2213 = vmatpush.bf16.msra.mxu3 %v5400_v36  ;;  %v6990_v43 = vld [vmem:[%s9483_s4 + $0xc] sm:$0xf]  ;;  %v5277_v42 = vld [vmem:[%s9483_s4 + $0x30] sm:$0xf0]  ;;  %v5563_v35 = vld [vmem:[%s9483_s4 + $0x240] sm:$0xf]  ;;  %v5272_v30 = vor.u32 %v6989_v58, %v5269_v51  ;;  %v5276_v57 = vor.u32 %v6995_v63, %v5275_v48 }
 0x27b   : > { %v7066_v45 = vld [vmem:[%s9483_s4 + $0x264] sm:$0xf0]  ;;  %v7061_v59 = vld [vmem:[%s9483_s4 + $0x244] sm:$0xf]  ;;  %v5565_v1 = vld [vmem:[%s9483_s4 + $0x268] sm:$0xf0]  ;;  %v5280_v6 = vor.u32 %v6990_v43, %v5277_v42 }
 0x27c   : > { %2175 = vmatpush.bf16.msra.mxu0 %v5348_v8  ;;  %v5571_v2 = vld [vmem:[%s9483_s4 + $0x248] sm:$0xf]  ;;  %v7067_v21 = vld [vmem:[%s9483_s4 + $0x26c] sm:$0xf0]  ;;  %v7062_v49 = vld [vmem:[%s9483_s4 + $0x24c] sm:$0xf]  ;;  %v5564_v60 = vor.u32 %v7066_v45, %v5563_v35  ;;  %v5568_v7 = vor.u32 %v7061_v59, %v5565_v1 }
 0x27d   : > { %2188 = vmatpush.bf16.msra.mxu1 %v5352_v9  ;;  %v5573_v4 = vld [vmem:[%s9483_s4 + $0x270] sm:$0xf0]  ;;  %v1664_v5 = vld [vmem:[#allocation2] sm:$0xff]  ;;  %v5572_v29 = vor.u32 %v7067_v21, %v5571_v2  ;;  %v5523_v10 = vld [vmem:[%s9483_s4 + $0x1f0] sm:$0xf] }
 0x27e   : > { %2201 = vmatpush.bf16.msra.mxu2 %v5356_v44  ;;  %2214 = vmatpush.bf16.msra.mxu3 %v5360_v38  ;;  %v7056_v13 = vld [vmem:[%s9483_s4 + $0x214] sm:$0xf0]  ;;  %v7051_v11 = vld [vmem:[%s9483_s4 + $0x1f4] sm:$0xf]  ;;  %v5576_v14 = vor.u32 %v7062_v49, %v5573_v4  ;;  %v8983_v25 = vpack.c.bf16 %v1664_v5, %v1664_v5  ;;  %v5525_v15 = vld [vmem:[%s9483_s4 + $0x218] sm:$0xf0] }
 0x27f   : > { %v5531_v18 = vld [vmem:[%s9483_s4 + $0x1f8] sm:$0xf]  ;;  %v7057_v19 = vld [vmem:[%s9483_s4 + $0x21c] sm:$0xf0]  ;;  %v7052_v62 = vld [vmem:[%s9483_s4 + $0x1fc] sm:$0xf]  ;;  %v5524_v47 = vor.u32 %v7056_v13, %v5523_v10  ;;  %v5528_v17 = vor.u32 %v7051_v11, %v5525_v15 }
 0x280   : > { %2176 = vmatpush.bf16.msra.mxu0 %v5308_v40  ;;  %v5533_v20 = vld [vmem:[%s9483_s4 + $0x220] sm:$0xf0]  ;;  %v5532_v50 = vor.u32 %v7057_v19, %v5531_v18  ;;  %v5483_v22 = vld [vmem:[%s9483_s4 + $0x1a0] sm:$0xf]  ;;  %v7046_v23 = vld [vmem:[%s9483_s4 + $0x1c4] sm:$0xf0] }
 0x281   : > { %2189 = vmatpush.bf16.msra.mxu1 %v5312_v55  ;;  %v7041_v33 = vld [vmem:[%s9483_s4 + $0x1a4] sm:$0xf]  ;;  %v5536_v24 = vor.u32 %v7052_v62, %v5533_v20  ;;  %v5485_v61 = vld [vmem:[%s9483_s4 + $0x1c8] sm:$0xf0]  ;;  %v5491_v36 = vld [vmem:[%s9483_s4 + $0x1a8] sm:$0xf]  ;;  %v5484_v41 = vor.u32 %v7046_v23, %v5483_v22 }
 0x282   : > { %2202 = vmatpush.bf16.msra.mxu2 %v5316_v56  ;;  %2215 = vmatpush.bf16.msra.mxu3 %v5320_v52  ;;  %v7047_v3 = vld [vmem:[%s9483_s4 + $0x1cc] sm:$0xf0]  ;;  %v7042_v37 = vld [vmem:[%s9483_s4 + $0x1ac] sm:$0xf]  ;;  %v5493_v39 = vld [vmem:[%s9483_s4 + $0x1d0] sm:$0xf0]  ;;  %v5488_v27 = vor.u32 %v7041_v33, %v5485_v61 }
 0x283   : > { %v5492_v8 = vor.u32 %v7047_v3, %v5491_v36  ;;  %v5443_v9 = vld [vmem:[%s9483_s4 + $0x150] sm:$0xf]  ;;  %v7036_v44 = vld [vmem:[%s9483_s4 + $0x174] sm:$0xf0]  ;;  %v7031_v46 = vld [vmem:[%s9483_s4 + $0x154] sm:$0xf]  ;;  %v5496_v12 = vor.u32 %v7042_v37, %v5493_v39 }
 0x284   : > { %2177 = vmatpush.bf16.msra.mxu0 %v5268_v0  ;;  %v5445_v28 = vld [vmem:[%s9483_s4 + $0x178] sm:$0xf0]  ;;  %v5451_v38 = vld [vmem:[%s9483_s4 + $0x158] sm:$0xf]  ;;  %v7037_v31 = vld [vmem:[%s9483_s4 + $0x17c] sm:$0xf0]  ;;  %v5444_v53 = vor.u32 %v7036_v44, %v5443_v9 }
 0x285   : > { %2190 = vmatpush.bf16.msra.mxu1 %v5272_v30  ;;  %v7032_v32 = vld [vmem:[%s9483_s4 + $0x15c] sm:$0xf]  ;;  %v5453_v16 = vld [vmem:[%s9483_s4 + $0x180] sm:$0xf0]  ;;  %v5448_v54 = vor.u32 %v7031_v46, %v5445_v28  ;;  %v5452_v40 = vor.u32 %v7037_v31, %v5451_v38  ;;  %v5403_v26 = vld [vmem:[%s9483_s4 + $0x100] sm:$0xf] }
 0x286   : > { %2203 = vmatpush.bf16.msra.mxu2 %v5276_v57  ;;  %2216 = vmatpush.bf16.msra.mxu3 %v5280_v6  ;;  %v7026_v34 = vld [vmem:[%s9483_s4 + $0x124] sm:$0xf0]  ;;  %v7021_v55 = vld [vmem:[%s9483_s4 + $0x104] sm:$0xf]  ;;  %v5456_v56 = vor.u32 %v7032_v32, %v5453_v16  ;;  %v5405_v58 = vld [vmem:[%s9483_s4 + $0x128] sm:$0xf0] }
 0x287   : > { %2178 = vmatmul.bf16.vlgmr.msra.gmra.mxu0 %v8983_v25  ;;  %v5411_v51 = vld [vmem:[%s9483_s4 + $0x108] sm:$0xf]  ;;  %v7027_v48 = vld [vmem:[%s9483_s4 + $0x12c] sm:$0xf0]  ;;  %v7022_v52 = vld [vmem:[%s9483_s4 + $0x10c] sm:$0xf]  ;;  %v5404_v43 = vor.u32 %v7026_v34, %v5403_v26  ;;  %v5408_v42 = vor.u32 %v7021_v55, %v5405_v58 }
 0x288   : > { %2222 = vmatpush.bf16.msrb.mxu0 %v5564_v60  ;;  %2191 = vmatmul.bf16.vlgmr.msra.gmra.mxu1 %v8983_v25  ;;  %v5413_v63 = vld [vmem:[%s9483_s4 + $0x130] sm:$0xf0]  ;;  %v5412_v35 = vor.u32 %v7027_v48, %v5411_v51  ;;  %v5363_v45 = vld [vmem:[%s9483_s4 + $0xb0] sm:$0xf]  ;;  %v7016_v59 = vld [vmem:[%s9483_s4 + $0xd4] sm:$0xf0] }
 0x289   : > { %2235 = vmatpush.bf16.msrb.mxu1 %v5568_v7  ;;  %2204 = vmatmul.bf16.vlgmr.msra.gmra.mxu2 %v8983_v25  ;;  %v7011_v0 = vld [vmem:[%s9483_s4 + $0xb4] sm:$0xf]  ;;  %v5416_v1 = vor.u32 %v7022_v52, %v5413_v63  ;;  %v5365_v2 = vld [vmem:[%s9483_s4 + $0xd8] sm:$0xf0]  ;;  %v5371_v21 = vld [vmem:[%s9483_s4 + $0xb8] sm:$0xf]  ;;  %v5364_v4 = vor.u32 %v7016_v59, %v5363_v45 }
 0x28a   : > { %2248 = vmatpush.bf16.msrb.mxu2 %v5572_v29  ;;  %2261 = vmatpush.bf16.msrb.mxu3 %v5576_v14  ;;  %v7017_v30 = vld [vmem:[%s9483_s4 + $0xdc] sm:$0xf0]  ;;  %v7012_v57 = vld [vmem:[%s9483_s4 + $0xbc] sm:$0xf]  ;;  %v5373_v49 = vld [vmem:[%s9483_s4 + $0xe0] sm:$0xf0]  ;;  %v5368_v7 = vor.u32 %v7011_v0, %v5365_v2 }
 0x28b   : > { %2217 = vmatmul.bf16.vlgmr.msra.gmra.mxu3 %v8983_v25  ;;  %v5323_v5 = vld [vmem:[%s9483_s4 + $0x60] sm:$0xf]  ;;  %v7006_v6 = vld [vmem:[%s9483_s4 + $0x84] sm:$0xf0]  ;;  %v7001_v60 = vld [vmem:[%s9483_s4 + $0x64] sm:$0xf]  ;;  %v5372_v29 = vor.u32 %v7017_v30, %v5371_v21  ;;  %v5376_v14 = vor.u32 %v7012_v57, %v5373_v49 }
 0x28c   : > { %2223 = vmatpush.bf16.msrb.mxu0 %v5524_v47  ;;  %v5325_v10 = vld [vmem:[%s9483_s4 + $0x88] sm:$0xf0]  ;;  %v5331_v13 = vld [vmem:[%s9483_s4 + $0x68] sm:$0xf]  ;;  %v7007_v11 = vld [vmem:[%s9483_s4 + $0x8c] sm:$0xf0]  ;;  %v5324_v19 = vor.u32 %v7006_v6, %v5323_v5 }
 0x28d   : > { %2236 = vmatpush.bf16.msrb.mxu1 %v5528_v17  ;;  %v7002_v15 = vld [vmem:[%s9483_s4 + $0x6c] sm:$0xf]  ;;  %v5333_v18 = vld [vmem:[%s9483_s4 + $0x90] sm:$0xf0]  ;;  %v5283_v62 = vld [vmem:[%s9483_s4 + $0x10] sm:$0xf]  ;;  %v5328_v20 = vor.u32 %v7001_v60, %v5325_v10  ;;  %v5332_v47 = vor.u32 %v7007_v11, %v5331_v13 }
 0x28e   : > { %2249 = vmatpush.bf16.msrb.mxu2 %v5532_v50  ;;  %2262 = vmatpush.bf16.msrb.mxu3 %v5536_v24  ;;  %v6996_v17 = vld [vmem:[%s9483_s4 + $0x34] sm:$0xf0]  ;;  %v6991_v50 = vld [vmem:[%s9483_s4 + $0x14] sm:$0xf]  ;;  %v5285_v22 = vld [vmem:[%s9483_s4 + $0x38] sm:$0xf0]  ;;  %v5336_v23 = vor.u32 %v7002_v15, %v5333_v18 }
 0x28f   : > { %v5291_v33 = vld [vmem:[%s9483_s4 + $0x18] sm:$0xf]  ;;  %v6997_v24 = vld [vmem:[%s9483_s4 + $0x3c] sm:$0xf0]  ;;  %v6992_v61 = vld [vmem:[%s9483_s4 + $0x1c] sm:$0xf]  ;;  %v5284_v39 = vor.u32 %v6996_v17, %v5283_v62 }
 0x290   : > { %2224 = vmatpush.bf16.msrb.mxu0 %v5484_v41  ;;  %v5293_v36 = vld [vmem:[%s9483_s4 + $0x40] sm:$0xf0]  ;;  %v5579_v3 = vld [vmem:[%s9483_s4 + $0x250] sm:$0xf]  ;;  %v7068_v37 = vld [vmem:[%s9483_s4 + $0x274] sm:$0xf0]  ;;  %v5292_v9 = vor.u32 %v6997_v24, %v5291_v33 }
 0x291   : > { %2237 = vmatpush.bf16.msrb.mxu1 %v5488_v27  ;;  %v7063_v41 = vld [vmem:[%s9483_s4 + $0x254] sm:$0xf]  ;;  %v5581_v27 = vld [vmem:[%s9483_s4 + $0x278] sm:$0xf0]  ;;  %v5296_v44 = vor.u32 %v6992_v61, %v5293_v36  ;;  %v5580_v46 = vor.u32 %v7068_v37, %v5579_v3  ;;  %v5539_v28 = vld [vmem:[%s9483_s4 + $0x200] sm:$0xf] }
 0x292   : > { %2250 = vmatpush.bf16.msrb.mxu2 %v5492_v8  ;;  %2263 = vmatpush.bf16.msrb.mxu3 %v5496_v12  ;;  %v5288_v8 = vor.u32 %v6991_v50, %v5285_v22  ;;  %v5584_v12 = vor.u32 %v7063_v41, %v5581_v27  ;;  %v7058_v38 = vld [vmem:[%s9483_s4 + $0x224] sm:$0xf0]  ;;  %v7053_v31 = vld [vmem:[%s9483_s4 + $0x204] sm:$0xf]  ;;  %v5541_v32 = vld [vmem:[%s9483_s4 + $0x228] sm:$0xf0] }
 0x293   : > { %v5499_v16 = vld [vmem:[%s9483_s4 + $0x1b0] sm:$0xf]  ;;  %v5643_v26 = vld [vmem:[#allocation4 + $0x70] sm:$0xf]  ;;  %v7244_v34 = vld [vmem:[#allocation4 + $0x74] sm:$0xf0] }
 0x294   : > { %2225 = vmatpush.bf16.msrb.mxu0 %v5444_v53  ;;  %v7048_v53 = vld [vmem:[%s9483_s4 + $0x1d4] sm:$0xf0]  ;;  %v5644_v58 = vor.u32 %v7244_v34, %v5643_v26  ;;  %v7260_v51 = vld [vmem:[#allocation4 + $0xf4] sm:$0xf0]  ;;  %v5635_v48 = vld [vmem:[#allocation4 + $0x60] sm:$0xf] }
 0x295   : > { %2238 = vmatpush.bf16.msrb.mxu1 %v5448_v54  ;;  %v5540_v54 = vor.u32 %v7058_v38, %v5539_v28  ;;  %v5707_v55 = vld [vmem:[#allocation4 + $0xf0] sm:$0xf]  ;;  %v7242_v52 = vld [vmem:[#allocation4 + $0x64] sm:$0xf0]  ;;  %v5501_v63 = vld [vmem:[%s9483_s4 + $0x1d8] sm:$0xf0]  ;;  %v5500_v59 = vor.u32 %v7048_v53, %v5499_v16 }
 0x296   : > { %2251 = vmatpush.bf16.msrb.mxu2 %v5452_v40  ;;  %2264 = vmatpush.bf16.msrb.mxu3 %v5456_v56  ;;  %v7043_v40 = vld [vmem:[%s9483_s4 + $0x1b4] sm:$0xf]  ;;  %v5544_v56 = vor.u32 %v7053_v31, %v5541_v32  ;;  %v5636_v45 = vor.u32 %v7242_v52, %v5635_v48  ;;  %v5459_v0 = vld [vmem:[%s9483_s4 + $0x160] sm:$0xf]  ;;  %v5627_v2 = vld [vmem:[#allocation4 + $0x50] sm:$0xf] }
 0x297   : > { %v7240_v21 = vld [vmem:[#allocation4 + $0x54] sm:$0xf0]  ;;  %v5504_v30 = vor.u32 %v7043_v40, %v5501_v63  ;;  %v7038_v57 = vld [vmem:[%s9483_s4 + $0x184] sm:$0xf0]  ;;  %v5691_v49 = vld [vmem:[#allocation4 + $0xd0] sm:$0xf] }
 0x298   : > { %2226 = vmatpush.bf16.msrb.mxu0 %v5404_v43  ;;  %v5708_v43 = vor.u32 %v7260_v51, %v5707_v55  ;;  %v7033_v5 = vld [vmem:[%s9483_s4 + $0x164] sm:$0xf]  ;;  %v5461_v6 = vld [vmem:[%s9483_s4 + $0x188] sm:$0xf0]  ;;  %v5628_v60 = vor.u32 %v7240_v21, %v5627_v2  ;;  %v5619_v13 = vld [vmem:[#allocation4 + $0x40] sm:$0xf] }
 0x299   : > { %2239 = vmatpush.bf16.msrb.mxu1 %v5408_v42  ;;  %v5699_v42 = vld [vmem:[#allocation4 + $0xe0] sm:$0xf]  ;;  %v7238_v11 = vld [vmem:[#allocation4 + $0x44] sm:$0xf0]  ;;  %v7028_v15 = vld [vmem:[%s9483_s4 + $0x134] sm:$0xf0] }
 0x29a   : > { %2252 = vmatpush.bf16.msrb.mxu2 %v5412_v35  ;;  %2265 = vmatpush.bf16.msrb.mxu3 %v5416_v1  ;;  %v7258_v35 = vld [vmem:[#allocation4 + $0xe4] sm:$0xf0]  ;;  %v5683_v18 = vld [vmem:[#allocation4 + $0xc0] sm:$0xf]  ;;  %v7023_v62 = vld [vmem:[%s9483_s4 + $0x114] sm:$0xf] }
 0x29b   : > { %v5700_v1 = vor.u32 %v7258_v35, %v5699_v42  ;;  %v5379_v50 = vld [vmem:[%s9483_s4 + $0xc0] sm:$0xf]  ;;  %v7018_v61 = vld [vmem:[%s9483_s4 + $0xe4] sm:$0xf0]  ;;  %v5675_v36 = vld [vmem:[#allocation4 + $0xb0] sm:$0xf] }
 0x29c   : > { %2227 = vmatpush.bf16.msrb.mxu0 %v5364_v4  ;;  %v7256_v4 = vld [vmem:[#allocation4 + $0xd4] sm:$0xf0]  ;;  %v7013_v37 = vld [vmem:[%s9483_s4 + $0xc4] sm:$0xf]  ;;  %v5380_v27 = vor.u32 %v7018_v61, %v5379_v50  ;;  %v7008_v28 = vld [vmem:[%s9483_s4 + $0x94] sm:$0xf0] }
 0x29d   : > { %2240 = vmatpush.bf16.msrb.mxu1 %v5368_v7  ;;  %v5460_v7 = vor.u32 %v7038_v57, %v5459_v0  ;;  %v5692_v10 = vor.u32 %v7256_v4, %v5691_v49  ;;  %v7236_v33 = vld [vmem:[#allocation4 + $0x34] sm:$0xf0]  ;;  %v5667_v38 = vld [vmem:[#allocation4 + $0xa0] sm:$0xf]  ;;  %v7250_v31 = vld [vmem:[#allocation4 + $0xa4] sm:$0xf0] }
 0x29e   : > { %2253 = vmatpush.bf16.msrb.mxu2 %v5372_v29  ;;  %2266 = vmatpush.bf16.msrb.mxu3 %v5376_v14  ;;  %v5419_v29 = vld [vmem:[%s9483_s4 + $0x110] sm:$0xf]  ;;  %v5464_v14 = vor.u32 %v7033_v5, %v5461_v6  ;;  %v7252_v3 = vld [vmem:[#allocation4 + $0xb4] sm:$0xf0]  ;;  %v7003_v32 = vld [vmem:[%s9483_s4 + $0x74] sm:$0xf]  ;;  %v5668_v34 = vor.u32 %v7250_v31, %v5667_v38 }
 0x29f   : > { %v5420_v17 = vor.u32 %v7028_v15, %v5419_v29  ;;  %v5341_v16 = vld [vmem:[%s9483_s4 + $0x98] sm:$0xf0]  ;;  %v5299_v53 = vld [vmem:[%s9483_s4 + $0x20] sm:$0xf]  ;;  %v6998_v26 = vld [vmem:[%s9483_s4 + $0x44] sm:$0xf0] }
 0x2a0   : > { %2228 = vmatpush.bf16.msrb.mxu0 %v5324_v19  ;;  %v7254_v19 = vld [vmem:[#allocation4 + $0xc4] sm:$0xf0]  ;;  %v5595_v55 = vld [vmem:[#allocation4 + $0x10] sm:$0xf]  ;;  %v6993_v51 = vld [vmem:[%s9483_s4 + $0x24] sm:$0xf]  ;;  %v5300_v0 = vor.u32 %v6998_v26, %v5299_v53 }
 0x2a1   : > { %2241 = vmatpush.bf16.msrb.mxu1 %v5328_v20  ;;  %v5421_v20 = vld [vmem:[%s9483_s4 + $0x138] sm:$0xf0]  ;;  %v5684_v22 = vor.u32 %v7254_v19, %v5683_v18  ;;  %v5659_v48 = vld [vmem:[#allocation4 + $0x90] sm:$0xf]  ;;  %v7248_v52 = vld [vmem:[#allocation4 + $0x94] sm:$0xf0] }
 0x2a2   : > { %2254 = vmatpush.bf16.msrb.mxu2 %v5332_v47  ;;  %2267 = vmatpush.bf16.msrb.mxu3 %v5336_v23  ;;  %v5620_v47 = vor.u32 %v7238_v11, %v5619_v13  ;;  %v5611_v23 = vld [vmem:[#allocation4 + $0x30] sm:$0xf]  ;;  %v5424_v24 = vor.u32 %v7023_v62, %v5421_v20  ;;  %v5301_v63 = vld [vmem:[%s9483_s4 + $0x48] sm:$0xf0]  ;;  %v7276_v42 = vld [vmem:[#allocation4 + $0x174] sm:$0xf0]  ;;  %v5660_v2 = vor.u32 %v7248_v52, %v5659_v48 }
 0x2a3   : > { %v5612_v41 = vor.u32 %v7236_v33, %v5611_v23  ;;  %v5835_v35 = vld [vmem:[#allocation4 + $0x1f0] sm:$0xf]  ;;  %v5587_v21 = vld [vmem:[#allocation4] sm:$0xf]  ;;  %v5304_v57 = vor.u32 %v6993_v51, %v5301_v63  ;;  %v7274_v4 = vld [vmem:[#allocation4 + $0x164] sm:$0xf0] }
 0x2a4   : > { %2229 = vmatpush.bf16.msrb.mxu0 %v5284_v39  ;;  %v5381_v39 = vld [vmem:[%s9483_s4 + $0xe8] sm:$0xf0]  ;;  %v5651_v5 = vld [vmem:[#allocation4 + $0x80] sm:$0xf]  ;;  %v7246_v6 = vld [vmem:[#allocation4 + $0x84] sm:$0xf0] }
 0x2a5   : > { %2242 = vmatpush.bf16.msrb.mxu1 %v5288_v8  ;;  %v5339_v8 = vld [vmem:[%s9483_s4 + $0x70] sm:$0xf]  ;;  %v5899_v29 = vld [vmem:[#allocation4 + $0x270] sm:$0xf]  ;;  %v7324_v15 = vld [vmem:[#allocation4 + $0x2f4] sm:$0xf0]  ;;  %v5652_v18 = vor.u32 %v7246_v6, %v5651_v5 }
 0x2a6   : > { %2255 = vmatpush.bf16.msrb.mxu2 %v5292_v9  ;;  %2268 = vmatpush.bf16.msrb.mxu3 %v5296_v44  ;;  %v5676_v9 = vor.u32 %v7252_v3, %v5675_v36  ;;  %v5603_v44 = vld [vmem:[#allocation4 + $0x20] sm:$0xf]  ;;  %v5340_v40 = vor.u32 %v7008_v28, %v5339_v8  ;;  %v7290_v13 = vld [vmem:[#allocation4 + $0x1e4] sm:$0xf0]  ;;  %v5755_v62 = vld [vmem:[#allocation4 + $0x150] sm:$0xf] }
 0x2a7   : > { %2230 = vmatmul.bf16.vlgmr.msrb.gmra.mxu0 %v8983_v25  ;;  %v7272_v20 = vld [vmem:[#allocation4 + $0x154] sm:$0xf0]  ;;  %v5819_v50 = vld [vmem:[#allocation4 + $0x1d0] sm:$0xf]  ;;  %v5891_v23 = vld [vmem:[#allocation4 + $0x260] sm:$0xf] }
 0x2a8   : > { %2274 = vmatpush.bf16.msra.mxu0 %v5580_v46  ;;  %2243 = vmatmul.bf16.vlgmr.msrb.gmra.mxu1 %v8983_v25  ;;  %v7234_v46 = vld [vmem:[#allocation4 + $0x24] sm:$0xf0]  ;;  %v5955_v61 = vld [vmem:[#allocation4 + $0x2e0] sm:$0xf]  ;;  %v5756_v3 = vor.u32 %v7272_v20, %v5755_v62  ;;  %v5947_v28 = vld [vmem:[#allocation4 + $0x2d0] sm:$0xf] }
 0x2a9   : > { %2287 = vmatpush.bf16.msra.mxu1 %v5584_v12  ;;  %2256 = vmatmul.bf16.vlgmr.msrb.gmra.mxu2 %v8983_v25  ;;  %v5384_v12 = vor.u32 %v7013_v37, %v5381_v39  ;;  %v7306_v33 = vld [vmem:[#allocation4 + $0x264] sm:$0xf0]  ;;  %v5747_v37 = vld [vmem:[#allocation4 + $0x140] sm:$0xf]  ;;  %v7320_v38 = vld [vmem:[#allocation4 + $0x2d4] sm:$0xf0] }
 0x2aa   : > { %2269 = vmatmul.bf16.vlgmr.msrb.gmra.mxu3 %v8983_v25  ;;  %3510 = vmatpush.bf16.msra.mxu2 %v5644_v58  ;;  %v5344_v58 = vor.u32 %v7003_v32, %v5341_v16  ;;  %v7322_v36 = vld [vmem:[#allocation4 + $0x2e4] sm:$0xf0]  ;;  %v5811_v8 = vld [vmem:[#allocation4 + $0x1c0] sm:$0xf]  ;;  %v5739_v16 = vld [vmem:[#allocation4 + $0x130] sm:$0xf] }
 0x2ab   : > { %3523 = vmatpush.bf16.msra.mxu3 %v5708_v43  ;;  %v5771_v43 = vld [vmem:[#allocation4 + $0x170] sm:$0xf]  ;;  %v7270_v39 = vld [vmem:[#allocation4 + $0x144] sm:$0xf0]  ;;  %v7268_v53 = vld [vmem:[#allocation4 + $0x134] sm:$0xf0] }
 0x2ac   : > { %2275 = vmatpush.bf16.msra.mxu0 %v5540_v54  ;;  %v5604_v54 = vor.u32 %v7234_v46, %v5603_v44  ;;  %v5772_v49 = vor.u32 %v7276_v42, %v5771_v43  ;;  %v5883_v44 = vld [vmem:[#allocation4 + $0x250] sm:$0xf]  ;;  %v7304_v46 = vld [vmem:[#allocation4 + $0x254] sm:$0xf0]  ;;  %v5748_v31 = vor.u32 %v7270_v39, %v5747_v37  ;;  %v5795_v51 = vld [vmem:[#allocation4 + $0x1a0] sm:$0xf] }
 0x2ad   : > { %2288 = vmatpush.bf16.msra.mxu1 %v5544_v56  ;;  %v7232_v56 = vld [vmem:[#allocation4 + $0x14] sm:$0xf0]  ;;  %v7282_v48 = vld [vmem:[#allocation4 + $0x1a4] sm:$0xf0]  ;;  %v5723_v43 = vld [vmem:[#allocation4 + $0x110] sm:$0xf] }
 0x2ae   : > { %3511 = vmatpush.bf16.msra.mxu2 %v5636_v45  ;;  %v7292_v45 = vld [vmem:[#allocation4 + $0x1f4] sm:$0xf0]  ;;  %v5796_v63 = vor.u32 %v7282_v48, %v5795_v51  ;;  %v7302_v62 = vld [vmem:[#allocation4 + $0x244] sm:$0xf0]  ;;  %v5939_v20 = vld [vmem:[#allocation4 + $0x2c0] sm:$0xf] }
 0x2af   : > { %3524 = vmatpush.bf16.msra.mxu3 %v5700_v1  ;;  %v5763_v1 = vld [vmem:[#allocation4 + $0x160] sm:$0xf]  ;;  %v7284_v26 = vld [vmem:[#allocation4 + $0x1b4] sm:$0xf0]  ;;  %v5931_v39 = vld [vmem:[#allocation4 + $0x2b0] sm:$0xf] }
 0x2b0   : > { %2276 = vmatpush.bf16.msra.mxu0 %v5500_v59  ;;  %v5596_v59 = vor.u32 %v7232_v56, %v5595_v55  ;;  %v5764_v19 = vor.u32 %v7274_v4, %v5763_v1  ;;  %v5731_v56 = vld [vmem:[#allocation4 + $0x120] sm:$0xf]  ;;  %v7264_v42 = vld [vmem:[#allocation4 + $0x114] sm:$0xf0]  ;;  %v6091_v4 = vld [vmem:[#allocation4 + $0x3f0] sm:$0xf] }
 0x2b1   : > { %2289 = vmatpush.bf16.msra.mxu1 %v5504_v30  ;;  %v7230_v30 = vld [vmem:[#allocation4 + $0x4] sm:$0xf0]  ;;  %v5715_v1 = vld [vmem:[#allocation4 + $0x100] sm:$0xf]  ;;  %v7356_v5 = vld [vmem:[#allocation4 + $0x3f4] sm:$0xf0] }
 0x2b2   : > { %3512 = vmatpush.bf16.msra.mxu2 %v5628_v60  ;;  %v5836_v60 = vor.u32 %v7292_v45, %v5835_v35  ;;  %v5588_v11 = vor.u32 %v7230_v30, %v5587_v21  ;;  %v5787_v35 = vld [vmem:[#allocation4 + $0x190] sm:$0xf]  ;;  %v7280_v45 = vld [vmem:[#allocation4 + $0x194] sm:$0xf0]  ;;  %v5779_v21 = vld [vmem:[#allocation4 + $0x180] sm:$0xf] }
 0x2b3   : > { %3525 = vmatpush.bf16.msra.mxu3 %v5692_v10  ;;  %v7308_v10 = vld [vmem:[#allocation4 + $0x274] sm:$0xf0]  ;;  %v7278_v30 = vld [vmem:[#allocation4 + $0x184] sm:$0xf0]  ;;  %v5851_v51 = vld [vmem:[#allocation4 + $0x210] sm:$0xf] }
 0x2b4   : > { %2277 = vmatpush.bf16.msra.mxu0 %v5460_v7  ;;  %v5827_v7 = vld [vmem:[#allocation4 + $0x1e0] sm:$0xf]  ;;  %v7300_v37 = vld [vmem:[#allocation4 + $0x234] sm:$0xf0] }
 0x2b5   : > { %2290 = vmatpush.bf16.msra.mxu1 %v5464_v14  ;;  %v5963_v14 = vld [vmem:[#allocation4 + $0x2f0] sm:$0xf]  ;;  %v7296_v48 = vld [vmem:[#allocation4 + $0x214] sm:$0xf0] }
 0x2b6   : > { %3513 = vmatpush.bf16.msra.mxu2 %v5620_v47  ;;  %v5900_v47 = vor.u32 %v7308_v10, %v5899_v29  ;;  %v6092_v29 = vor.u32 %v7356_v5, %v6091_v4  ;;  %v6019_v10 = vld [vmem:[#allocation4 + $0x360] sm:$0xf]  ;;  %v7310_v4 = vld [vmem:[#allocation4 + $0x284] sm:$0xf0] }
 0x2b7   : > { %3526 = vmatpush.bf16.msra.mxu3 %v5684_v22  ;;  %v5964_v22 = vor.u32 %v7324_v15, %v5963_v14  ;;  %v7354_v14 = vld [vmem:[#allocation4 + $0x3e4] sm:$0xf0] }
 0x2b8   : > { %2278 = vmatpush.bf16.msra.mxu0 %v5420_v17  ;;  %v5828_v17 = vor.u32 %v7290_v13, %v5827_v7  ;;  %v7338_v13 = vld [vmem:[#allocation4 + $0x364] sm:$0xf0] }
 0x2b9   : > { %2291 = vmatpush.bf16.msra.mxu1 %v5424_v24  ;;  %v7288_v24 = vld [vmem:[#allocation4 + $0x1d4] sm:$0xf0]  ;;  %v6020_v15 = vor.u32 %v7338_v13, %v6019_v10 }
 0x2ba   : > { %3514 = vmatpush.bf16.msra.mxu2 %v5612_v41  ;;  %v5892_v41 = vor.u32 %v7306_v33, %v5891_v23  ;;  %v7336_v23 = vld [vmem:[#allocation4 + $0x354] sm:$0xf0] }
 0x2bb   : > { %3527 = vmatpush.bf16.msra.mxu3 %v5676_v9  ;;  %v5956_v9 = vor.u32 %v7322_v36, %v5955_v61  ;;  %v7352_v61 = vld [vmem:[#allocation4 + $0x3d4] sm:$0xf0] }
 0x2bc   : > { %2279 = vmatpush.bf16.msra.mxu0 %v5380_v27  ;;  %v5820_v27 = vor.u32 %v7288_v24, %v5819_v50  ;;  %v6075_v24 = vld [vmem:[#allocation4 + $0x3d0] sm:$0xf] }
 0x2bd   : > { %2292 = vmatpush.bf16.msra.mxu1 %v5384_v12  ;;  %v7286_v12 = vld [vmem:[#allocation4 + $0x1c4] sm:$0xf0]  ;;  %v6076_v36 = vor.u32 %v7352_v61, %v6075_v24 }
 0x2be   : > { %3515 = vmatpush.bf16.msra.mxu2 %v5604_v54  ;;  %v5812_v32 = vor.u32 %v7286_v12, %v5811_v8  ;;  %v5948_v54 = vor.u32 %v7320_v38, %v5947_v28  ;;  %v7350_v28 = vld [vmem:[#allocation4 + $0x3c4] sm:$0xf0] }
 0x2bf   : > { %3528 = vmatpush.bf16.msra.mxu3 %v5668_v34  ;;  %v5740_v34 = vor.u32 %v7268_v53, %v5739_v16  ;;  %v5923_v16 = vld [vmem:[#allocation4 + $0x2a0] sm:$0xf]  ;;  %v7314_v53 = vld [vmem:[#allocation4 + $0x2a4] sm:$0xf0] }
 0x2c0   : > { %2280 = vmatpush.bf16.msra.mxu0 %v5340_v40  ;;  %v5803_v40 = vld [vmem:[#allocation4 + $0x1b0] sm:$0xf] }
 0x2c1   : > { %2293 = vmatpush.bf16.msra.mxu1 %v5344_v58  ;;  %v5804_v55 = vor.u32 %v7284_v26, %v5803_v40  ;;  %v7266_v58 = vld [vmem:[#allocation4 + $0x124] sm:$0xf0]  ;;  %v5995_v40 = vld [vmem:[#allocation4 + $0x330] sm:$0xf]  ;;  %v7332_v26 = vld [vmem:[#allocation4 + $0x334] sm:$0xf0] }
 0x2c2   : > { %3516 = vmatpush.bf16.msra.mxu2 %v5596_v59  ;;  %v5732_v52 = vor.u32 %v7266_v58, %v5731_v56  ;;  %v5724_v59 = vor.u32 %v7264_v42, %v5723_v43  ;;  %v7348_v56 = vld [vmem:[#allocation4 + $0x3b4] sm:$0xf0] }
 0x2c3   : > { %3529 = vmatpush.bf16.msra.mxu3 %v5660_v2  ;;  %v7262_v2 = vld [vmem:[#allocation4 + $0x104] sm:$0xf0]  ;;  %v7312_v43 = vld [vmem:[#allocation4 + $0x294] sm:$0xf0] }
 0x2c4   : > { %2281 = vmatpush.bf16.msra.mxu0 %v5300_v0  ;;  %v5788_v0 = vor.u32 %v7280_v45, %v5787_v35  ;;  %v5716_v6 = vor.u32 %v7262_v2, %v5715_v1  ;;  %v5987_v35 = vld [vmem:[#allocation4 + $0x320] sm:$0xf]  ;;  %v7330_v45 = vld [vmem:[#allocation4 + $0x324] sm:$0xf0] }
 0x2c5   : > { %2294 = vmatpush.bf16.msra.mxu1 %v5304_v57  ;;  %v6027_v57 = vld [vmem:[#allocation4 + $0x370] sm:$0xf]  ;;  %v7346_v1 = vld [vmem:[#allocation4 + $0x3a4] sm:$0xf0] }
 0x2c6   : > { %3517 = vmatpush.bf16.msra.mxu2 %v5588_v11  ;;  %v6083_v11 = vld [vmem:[#allocation4 + $0x3e0] sm:$0xf] }
 0x2c7   : > { %2282 = vmatmul.bf16.vlgmr.msra.gmra.mxu0 %v8983_v25  ;;  %3530 = vmatpush.bf16.msra.mxu3 %v5652_v18  ;;  %v6084_v18 = vor.u32 %v7354_v14, %v6083_v11  ;;  %v5971_v11 = vld [vmem:[#allocation4 + $0x300] sm:$0xf]  ;;  %v7326_v14 = vld [vmem:[#allocation4 + $0x304] sm:$0xf0] }
 0x2c8   : > { %3536 = vmatpush.bf16.msrb.mxu0 %v5772_v49  ;;  %2295 = vmatmul.bf16.vlgmr.msra.gmra.mxu1 %v8983_v25  ;;  %v5884_v25 = vor.u32 %v7304_v46, %v5883_v44  ;;  %v7340_v49 = vld [vmem:[#allocation4 + $0x374] sm:$0xf0]  ;;  %v7334_v44 = vld [vmem:[#allocation4 + $0x344] sm:$0xf0]  ;;  %v6067_v46 = vld [vmem:[#allocation4 + $0x3c0] sm:$0xf] }
 0x2c9   : > { %3549 = vmatpush.bf16.msrb.mxu1 %v5836_v60  ;;  %v5780_v60 = vor.u32 %v7278_v30, %v5779_v21  ;;  %v6028_v7 = vor.u32 %v7340_v49, %v6027_v57  ;;  %v6068_v38 = vor.u32 %v7350_v28, %v6067_v46  ;;  %v5843_v21 = vld [vmem:[#allocation4 + $0x200] sm:$0xf]  ;;  %v7294_v30 = vld [vmem:[#allocation4 + $0x204] sm:$0xf0] }
 0x2ca   : > { %3562 = vmatpush.bf16.msrb.mxu2 %v5900_v47  ;;  %v5907_v57 = vld [vmem:[#allocation4 + $0x280] sm:$0xf]  ;;  %v5844_v49 = vor.u32 %v7294_v30, %v5843_v21  ;;  %v7386_v30 = vld [vmem:[#allocation4 + $0x4e4] sm:$0xf0] }
 0x2cb   : > { %3575 = vmatpush.bf16.msrb.mxu3 %v5964_v22  ;;  %v6011_v22 = vld [vmem:[#allocation4 + $0x350] sm:$0xf]  ;;  %v5908_v5 = vor.u32 %v7310_v4, %v5907_v57  ;;  %v6211_v21 = vld [vmem:[#allocation4 + $0x4e0] sm:$0xf]  ;;  %v5645_v4 = vld [vmem:[#allocation4 + $0x78] sm:$0xf0] }
 0x2cc   : > { %3537 = vmatpush.bf16.msrb.mxu0 %v5764_v19  ;;  %v5875_v19 = vld [vmem:[#allocation4 + $0x240] sm:$0xf]  ;;  %v6012_v33 = vor.u32 %v7336_v23, %v6011_v22 }
 0x2cd   : > { %3550 = vmatpush.bf16.msrb.mxu1 %v5828_v17  ;;  %v5876_v47 = vor.u32 %v7302_v62, %v5875_v19  ;;  %v7318_v17 = vld [vmem:[#allocation4 + $0x2c4] sm:$0xf0] }
 0x2ce   : > { %3563 = vmatpush.bf16.msrb.mxu2 %v5892_v41  ;;  %v5940_v50 = vor.u32 %v7318_v17, %v5939_v20  ;;  %v7342_v19 = vld [vmem:[#allocation4 + $0x384] sm:$0xf0]  ;;  %v9253_v20 = vld [vmem:[%s9484_s5] sm:$0xff] }
 0x2cf   : > { %3576 = vmatpush.bf16.msrb.mxu3 %v5956_v9  ;;  %v6003_v9 = vld [vmem:[#allocation4 + $0x340] sm:$0xf]  ;;  %v1751_v17 = vperm.slane %v9253_v20, 1 }
 0x2d0   : > { %3538 = vmatpush.bf16.msrb.mxu0 %v5756_v3  ;;  %v5867_v3 = vld [vmem:[#allocation4 + $0x230] sm:$0xf]  ;;  %v6004_v12 = vor.u32 %v7334_v44, %v6003_v9 }
 0x2d1   : > { %3551 = vmatpush.bf16.msrb.mxu1 %v5820_v27  ;;  %v5868_v41 = vor.u32 %v7300_v37, %v5867_v3  ;;  %v7316_v27 = vld [vmem:[#allocation4 + $0x2b4] sm:$0xf0]  ;;  %v1753_v37 = vperm.slane %v9253_v20, 3 }
 0x2d2   : > { %3564 = vmatpush.bf16.msrb.mxu2 %v5884_v25  ;;  %v5932_v8 = vor.u32 %v7316_v27, %v5931_v39  ;;  %v7298_v25 = vld [vmem:[#allocation4 + $0x224] sm:$0xf0] }
 0x2d3   : > { %3577 = vmatpush.bf16.msrb.mxu3 %v5948_v54  ;;  %v5924_v54 = vor.u32 %v7314_v53, %v5923_v16  ;;  %v7372_v16 = vld [vmem:[#allocation4 + $0x474] sm:$0xf0] }
 0x2d4   : > { %3539 = vmatpush.bf16.msrb.mxu0 %v5748_v31  ;;  %v5859_v31 = vld [vmem:[#allocation4 + $0x220] sm:$0xf] }
 0x2d5   : > { %3552 = vmatpush.bf16.msrb.mxu1 %v5812_v32  ;;  %v5860_v32 = vor.u32 %v7298_v25, %v5859_v31 }
 0x2d6   : > { %3565 = vmatpush.bf16.msrb.mxu2 %v5876_v47  ;;  %v1750_v47 = vperm.slane %v9253_v20, 0 }
 0x2d7   : > { %3578 = vmatpush.bf16.msrb.mxu3 %v5940_v50 }
 0x2d8   : > { %3540 = vmatpush.bf16.msrb.mxu0 %v5740_v34  ;;  %v6059_v34 = vld [vmem:[#allocation4 + $0x3b0] sm:$0xf] }
 0x2d9   : > { %3553 = vmatpush.bf16.msrb.mxu1 %v5804_v55  ;;  %v5996_v55 = vor.u32 %v7332_v26, %v5995_v40  ;;  %v6060_v58 = vor.u32 %v7348_v56, %v6059_v34  ;;  %v6219_v40 = vld [vmem:[#allocation4 + $0x4f0] sm:$0xf] }
 0x2da   : > { %3566 = vmatpush.bf16.msrb.mxu2 %v5868_v41 }
 0x2db   : > { %3579 = vmatpush.bf16.msrb.mxu3 %v5932_v8 }
 0x2dc   : > { %3541 = vmatpush.bf16.msrb.mxu0 %v5732_v52  ;;  %v5915_v52 = vld [vmem:[#allocation4 + $0x290] sm:$0xf] }
 0x2dd   : > { %3554 = vmatpush.bf16.msrb.mxu1 %v5796_v63  ;;  %v5852_v63 = vor.u32 %v7296_v48, %v5851_v51  ;;  %v5916_v42 = vor.u32 %v7312_v43, %v5915_v52 }
 0x2de   : > { %3567 = vmatpush.bf16.msrb.mxu2 %v5860_v32  ;;  %v6155_v32 = vld [vmem:[#allocation4 + $0x470] sm:$0xf] }
 0x2df   : > { %3580 = vmatpush.bf16.msrb.mxu3 %v5924_v54  ;;  %v6156_v52 = vor.u32 %v7372_v16, %v6155_v32  ;;  %v6123_v32 = vld [vmem:[#allocation4 + $0x430] sm:$0xf]  ;;  %v7364_v16 = vld [vmem:[#allocation4 + $0x434] sm:$0xf0] }
 0x2e0   : > { %3542 = vmatpush.bf16.msrb.mxu0 %v5724_v59  ;;  %v6051_v59 = vld [vmem:[#allocation4 + $0x3a0] sm:$0xf] }
 0x2e1   : > { %3555 = vmatpush.bf16.msrb.mxu1 %v5788_v0  ;;  %v5988_v0 = vor.u32 %v7330_v45, %v5987_v35  ;;  %v6052_v2 = vor.u32 %v7346_v1, %v6051_v59  ;;  %v6147_v45 = vld [vmem:[#allocation4 + $0x460] sm:$0xf]  ;;  %v7370_v59 = vld [vmem:[#allocation4 + $0x464] sm:$0xf0] }
 0x2e2   : > { %3568 = vmatpush.bf16.msrb.mxu2 %v5852_v63 }
 0x2e3   : > { %3581 = vmatpush.bf16.msrb.mxu3 %v5916_v42 }
 0x2e4   : > { %3543 = vmatpush.bf16.msrb.mxu0 %v5716_v6  ;;  %v5979_v6 = vld [vmem:[#allocation4 + $0x310] sm:$0xf] }
 0x2e5   : > { %3556 = vmatpush.bf16.msrb.mxu1 %v5780_v60  ;;  %v7328_v60 = vld [vmem:[#allocation4 + $0x314] sm:$0xf0] }
 0x2e6   : > { %3569 = vmatpush.bf16.msrb.mxu2 %v5844_v49  ;;  %v5980_v10 = vor.u32 %v7328_v60, %v5979_v6  ;;  %v7243_v49 = vld [vmem:[#allocation4 + $0x74] sm:$0xf]  ;;  %v6148_v6 = vor.u32 %v7370_v59, %v6147_v45  ;;  %v6115_v45 = vld [vmem:[#allocation4 + $0x420] sm:$0xf] }
 0x2e7   : > { %3582 = vmatpush.bf16.msrb.mxu3 %v5908_v5  ;;  %v7259_v60 = vld [vmem:[#allocation4 + $0xf4] sm:$0xf] }
 0x2e8   : > { %3588 = vmatpush.bf16.msra.mxu0 %v6028_v7  ;;  %v6043_v7 = vld [vmem:[#allocation4 + $0x390] sm:$0xf] }
 0x2e9   : > { %3601 = vmatpush.bf16.msra.mxu1 %v6092_v29  ;;  %v7344_v29 = vld [vmem:[#allocation4 + $0x394] sm:$0xf0] }
 0x2ea   : > { %v6044_v13 = vor.u32 %v7344_v29, %v6043_v7  ;;  %v5709_v7 = vld [vmem:[#allocation4 + $0xf8] sm:$0xf0] }
 0x2ec   : > { %3589 = vmatpush.bf16.msra.mxu0 %v6020_v15  ;;  %v5972_v15 = vor.u32 %v7326_v14, %v5971_v11  ;;  %v7368_v11 = vld [vmem:[#allocation4 + $0x454] sm:$0xf0] }
 0x2ed   : > { %3602 = vmatpush.bf16.msra.mxu1 %v6084_v18  ;;  %v6035_v18 = vld [vmem:[#allocation4 + $0x380] sm:$0xf] }
 0x2ee   : > { %v6036_v62 = vor.u32 %v7342_v19, %v6035_v18  ;;  %v7384_v18 = vld [vmem:[#allocation4 + $0x4d4] sm:$0xf0] }
 0x2f0   : > { %3590 = vmatpush.bf16.msra.mxu0 %v6012_v33 }
 0x2f1   : > { %3603 = vmatpush.bf16.msra.mxu1 %v6076_v36  ;;  %v1752_v36 = vperm.slane %v9253_v20, 2 }
 0x2f4   : > { %3591 = vmatpush.bf16.msra.mxu0 %v6004_v12 }
 0x2f5   : > { %3604 = vmatpush.bf16.msra.mxu1 %v6068_v38 }
 0x2f8   : > { %3592 = vmatpush.bf16.msra.mxu0 %v5996_v55  ;;  %v7388_v55 = vld [vmem:[#allocation4 + $0x4f4] sm:$0xf0] }
 0x2f9   : > { %3605 = vmatpush.bf16.msra.mxu1 %v6060_v58  ;;  %v6220_v35 = vor.u32 %v7388_v55, %v6219_v40  ;;  %v5621_v55 = vld [vmem:[#allocation4 + $0x48] sm:$0xf0] }
 0x2fc   : > { %3593 = vmatpush.bf16.msra.mxu0 %v5988_v0 }
 0x2fd   : > { %3606 = vmatpush.bf16.msra.mxu1 %v6052_v2 }
 0x300   : > { %3594 = vmatpush.bf16.msra.mxu0 %v5980_v10  ;;  %v6212_v10 = vor.u32 %v7386_v30, %v6211_v21  ;;  %v6179_v21 = vld [vmem:[#allocation4 + $0x4a0] sm:$0xf]  ;;  %v7378_v30 = vld [vmem:[#allocation4 + $0x4a4] sm:$0xf0] }
 0x301   : > { %3607 = vmatpush.bf16.msra.mxu1 %v6044_v13  ;;  %v6139_v13 = vld [vmem:[#allocation4 + $0x450] sm:$0xf] }
 0x304   : > { %3595 = vmatpush.bf16.msra.mxu0 %v5972_v15  ;;  %v2179_v50 = vpop.f32.mrf.mxu0  ;;  %v6203_v15 = vld [vmem:[#allocation4 + $0x4d0] sm:$0xf] }
 0x305   : > { %3608 = vmatpush.bf16.msra.mxu1 %v6036_v62  ;;  %v2180_v22 = vadd.f32 %v2179_v50, %v1750_v47  ;;  %v2192_v23 = vpop.f32.mrf.mxu1  ;;  %v5648_v62 = vor.u32 %v7243_v49, %v5645_v4  ;;  %v7241_v47 = vld [vmem:[#allocation4 + $0x64] sm:$0xf]  ;;  %v7235_v49 = vld [vmem:[#allocation4 + $0x34] sm:$0xf]  ;;  %v5613_v4 = vld [vmem:[#allocation4 + $0x38] sm:$0xf0] }
 0x306   : > { %v2193_v33 = vadd.f32 %v2192_v23, %v1751_v17  ;;  %v5637_v17 = vld [vmem:[#allocation4 + $0x68] sm:$0xf0]  ;;  %v6140_v23 = vor.u32 %v7368_v11, %v6139_v13  ;;  %v1757_v13 = vperm.slane %v9253_v20, 7 }
 0x307   : > { %v2300_v24 = vadd.f32 3.0, %v2180_v22 }
 0x308   : > { %v2301_v61 = vadd.f32 3.0, %v2193_v33 }
 0x309   : > { %v2310_v3 = vmax.f32 %v2300_v24, 0.0  ;;  %v5701_v24 = vld [vmem:[#allocation4 + $0xe8] sm:$0xf0] }
 0x30a   : > { %v2311_v39 = vmax.f32 %v2301_v61, 0.0 }
 0x30b   : > { %v2320_v41 = vmin.f32 %v2310_v3, 6.0  ;;  %v6131_v3 = vld [vmem:[#allocation4 + $0x440] sm:$0xf] }
 0x30c   : > { %v2205_v27 = vpop.f32.mrf.mxu2  ;;  %v2321_v8 = vmin.f32 %v2311_v39, 6.0  ;;  %v2181_v46 = vpop.f32.mrf.mxu0  ;;  %v6195_v39 = vld [vmem:[#allocation4 + $0x4c0] sm:$0xf] }
 0x30d   : > { %v2206_v9 = vadd.f32 %v2205_v27, %v1752_v36  ;;  %v2330_v12 = vmul.f32 %v2320_v41, %v2180_v22  ;;  %v2194_v38 = vpop.f32.mrf.mxu1  ;;  %v5712_v22 = vor.u32 %v7259_v60, %v5709_v7  ;;  %v6204_v36 = vor.u32 %v7384_v18, %v6203_v15  ;;  %v7382_v41 = vld [vmem:[#allocation4 + $0x4c4] sm:$0xf0]  ;;  %v7251_v7 = vld [vmem:[#allocation4 + $0xb4] sm:$0xf]  ;;  %v6107_v18 = vld [vmem:[#allocation4 + $0x410] sm:$0xf] }
 0x30e   : > { %v2218_v44 = vpop.f32.mrf.mxu3  ;;  %v2331_v31 = vmul.f32 %v2321_v8, %v2193_v33  ;;  %v7257_v33 = vld [vmem:[#allocation4 + $0xe4] sm:$0xf]  ;;  %v5640_v27 = vor.u32 %v7241_v47, %v5637_v17  ;;  %v1754_v8 = vperm.slane %v9253_v20, 4  ;;  %v7255_v38 = vld [vmem:[#allocation4 + $0xd4] sm:$0xf]  ;;  %v6180_v17 = vor.u32 %v7378_v30, %v6179_v21 }
 0x30f   : > { %v2219_v28 = vadd.f32 %v2218_v44, %v1753_v37  ;;  %v2302_v25 = vadd.f32 3.0, %v2206_v9  ;;  %v2340_v53 = vmul.f32 0.16666667, %v2330_v12  ;;  %v7366_v37 = vld [vmem:[#allocation4 + $0x444] sm:$0xf0]  ;;  %v5704_v44 = vor.u32 %v7257_v33, %v5701_v24 }
 0x310   : > { %v2341_v26 = vmul.f32 0.16666667, %v2331_v31  ;;  %v6132_v46 = vor.u32 %v7366_v37, %v6131_v3  ;;  %v7239_v12 = vld [vmem:[#allocation4 + $0x54] sm:$0xf]  ;;  %v6196_v31 = vor.u32 %v7382_v41, %v6195_v39  ;;  %v5605_v3 = vld [vmem:[#allocation4 + $0x28] sm:$0xf0] }
 0x311   : > { %v2303_v54 = vadd.f32 3.0, %v2219_v28  ;;  %v2312_v34 = vmax.f32 %v2302_v25, 0.0  ;;  %v9259_v56 = vpack.c.bf16 %v2340_v53, %v2340_v53  ;;  %v5693_v25 = vld [vmem:[#allocation4 + $0xd8] sm:$0xf0]  ;;  %v6187_v53 = vld [vmem:[#allocation4 + $0x4b0] sm:$0xf] }
 0x312   : > { %v9261_v51 = vpack.c.bf16 %v2341_v26, %v2341_v26  ;;  %v7231_v21 = vld [vmem:[#allocation4 + $0x14] sm:$0xf]  ;;  %v5597_v30 = vld [vmem:[#allocation4 + $0x18] sm:$0xf0] }
 0x313   : > { %v2313_v58 = vmax.f32 %v2303_v54, 0.0  ;;  %v2322_v48 = vmin.f32 %v2312_v34, 6.0  ;;  %v2690_v42 = vrot.slane %v9259_v56, 1  ;;  %v7380_v54 = vld [vmem:[#allocation4 + $0x4b4] sm:$0xf0] }
 0x314   : > { %v2207_v43 = vpop.f32.mrf.mxu2  ;;  %v2691_v2 = vrot.slane %v9261_v51, 1  ;;  %v7237_v34 = vld [vmem:[#allocation4 + $0x44] sm:$0xf] }
 0x315   : > { %v2323_v63 = vmin.f32 %v2313_v58, 6.0  ;;  %v2332_v0 = vmul.f32 %v2322_v48, %v2206_v9  ;;  %3518 = vmatmul.bf16.vlgmr.msra.gmra.mxu2 %v2690_v42  ;;  %v1755_v9 = vperm.slane %v9253_v20, 5  ;;  %v7253_v43 = vld [vmem:[#allocation4 + $0xc4] sm:$0xf]  ;;  %v5624_v60 = vor.u32 %v7237_v34, %v5621_v55  ;;  %v5773_v34 = vld [vmem:[#allocation4 + $0x178] sm:$0xf0] }
 0x316   : > { %v2220_v1 = vpop.f32.mrf.mxu3  ;;  %3531 = vmatmul.bf16.vlgmr.msra.gmra.mxu3 %v2691_v2  ;;  %3614 = vmatpush.bf16.msra.mxu2 %v6156_v52  ;;  %v5696_v52 = vor.u32 %v7255_v38, %v5693_v25  ;;  %v7358_v25 = vld [vmem:[#allocation4 + $0x404] sm:$0xf0] }
 0x317   : > { %v2333_v57 = vmul.f32 %v2323_v63, %v2219_v28  ;;  %v2342_v5 = vmul.f32 0.16666667, %v2332_v0  ;;  %3627 = vmatpush.bf16.msra.mxu3 %v6220_v35  ;;  %v5629_v28 = vld [vmem:[#allocation4 + $0x58] sm:$0xf0]  ;;  %v6124_v63 = vor.u32 %v7364_v16, %v6123_v32  ;;  %v5685_v35 = vld [vmem:[#allocation4 + $0xc8] sm:$0xf0]  ;;  %v6188_v0 = vor.u32 %v7380_v54, %v6187_v53 }
 0x318   : > { %v5632_v26 = vor.u32 %v7239_v12, %v5629_v28  ;;  %v7362_v1 = vld [vmem:[#allocation4 + $0x424] sm:$0xf0]  ;;  %v5688_v11 = vor.u32 %v7253_v43, %v5685_v35  ;;  %v6163_v32 = vld [vmem:[#allocation4 + $0x480] sm:$0xf]  ;;  %v5837_v35 = vld [vmem:[#allocation4 + $0x1f8] sm:$0xf0] }
 0x319   : > { %v2343_v29 = vmul.f32 0.16666667, %v2333_v57  ;;  %v9269_v14 = vpack.c.bf16 %v2342_v5, %v2342_v5  ;;  %v6116_v15 = vor.u32 %v7362_v1, %v6115_v45  ;;  %v7374_v16 = vld [vmem:[#allocation4 + $0x484] sm:$0xf0] }
 0x31a   : > { %3615 = vmatpush.bf16.msra.mxu2 %v6148_v6  ;;  %v1756_v6 = vperm.slane %v9253_v20, 6 }
 0x31b   : > { %v9271_v19 = vpack.c.bf16 %v2343_v29, %v2343_v29  ;;  %v2692_v50 = vrot.slane %v9269_v14, 1  ;;  %3628 = vmatpush.bf16.msra.mxu3 %v6212_v10  ;;  %v5677_v29 = vld [vmem:[#allocation4 + $0xb8] sm:$0xf0] }
 0x31c   : > { %v5680_v20 = vor.u32 %v7251_v7, %v5677_v29 }
 0x31d   : > { %v2693_v61 = vrot.slane %v9271_v19, 1  ;;  %3544 = vmatmul.bf16.vlgmr.msrb.gmra.mxu0 %v2692_v50 }
 0x31e   : > { %3640 = vmatpush.bf16.msrb.mxu0 %v5648_v62  ;;  %3616 = vmatpush.bf16.msra.mxu2 %v6140_v23  ;;  %v7360_v62 = vld [vmem:[#allocation4 + $0x414] sm:$0xf0] }
 0x31f   : > { %3557 = vmatmul.bf16.vlgmr.msrb.gmra.mxu1 %v2693_v61  ;;  %3629 = vmatpush.bf16.msra.mxu3 %v6204_v36  ;;  %v7376_v23 = vld [vmem:[#allocation4 + $0x494] sm:$0xf0]  ;;  %v7233_v36 = vld [vmem:[#allocation4 + $0x24] sm:$0xf] }
 0x320   : > { %3653 = vmatpush.bf16.msrb.mxu1 %v5712_v22  ;;  %v6171_v22 = vld [vmem:[#allocation4 + $0x490] sm:$0xf] }
 0x322   : > { %3641 = vmatpush.bf16.msrb.mxu0 %v5640_v27  ;;  %3617 = vmatpush.bf16.msra.mxu2 %v6132_v46  ;;  %v6099_v46 = vld [vmem:[#allocation4 + $0x400] sm:$0xf] }
 0x323   : > { %3630 = vmatpush.bf16.msra.mxu3 %v6196_v31  ;;  %v6108_v31 = vor.u32 %v7360_v62, %v6107_v18 }
 0x324   : > { %v2231_v40 = vpop.f32.mrf.mxu0  ;;  %3654 = vmatpush.bf16.msrb.mxu1 %v5704_v44  ;;  %v5669_v44 = vld [vmem:[#allocation4 + $0xa8] sm:$0xf0] }
 0x325   : > { %v2232_v58 = vadd.f32 %v2231_v40, %v1754_v8  ;;  %v2244_v48 = vpop.f32.mrf.mxu1  ;;  %v5616_v8 = vor.u32 %v7235_v49, %v5613_v4  ;;  %v6172_v40 = vor.u32 %v7376_v23, %v6171_v22  ;;  %v6164_v4 = vor.u32 %v7374_v16, %v6163_v32  ;;  %v7289_v22 = vld [vmem:[#allocation4 + $0x1e4] sm:$0xf]  ;;  %v5829_v23 = vld [vmem:[#allocation4 + $0x1e8] sm:$0xf0] }
 0x326   : > { %v2245_v59 = vadd.f32 %v2244_v48, %v1755_v9  ;;  %3642 = vmatpush.bf16.msrb.mxu0 %v5632_v26  ;;  %3618 = vmatpush.bf16.msra.mxu2 %v6124_v63  ;;  %v7249_v9 = vld [vmem:[#allocation4 + $0xa4] sm:$0xf]  ;;  %v7275_v26 = vld [vmem:[#allocation4 + $0x174] sm:$0xf] }
 0x327   : > { %v2304_v57 = vadd.f32 3.0, %v2232_v58  ;;  %3631 = vmatpush.bf16.msra.mxu3 %v6188_v0  ;;  %v5672_v1 = vor.u32 %v7249_v9, %v5669_v44  ;;  %v5901_v9 = vld [vmem:[#allocation4 + $0x278] sm:$0xf0]  ;;  %v7323_v44 = vld [vmem:[#allocation4 + $0x2f4] sm:$0xf] }
 0x328   : > { %v2305_v5 = vadd.f32 3.0, %v2245_v59  ;;  %3655 = vmatpush.bf16.msrb.mxu1 %v5696_v52  ;;  %v7291_v52 = vld [vmem:[#allocation4 + $0x1f4] sm:$0xf] }
 0x329   : > { %v2314_v10 = vmax.f32 %v2304_v57, 0.0 }
 0x32a   : > { %v2315_v47 = vmax.f32 %v2305_v5, 0.0  ;;  %3643 = vmatpush.bf16.msrb.mxu0 %v5624_v60  ;;  %3619 = vmatpush.bf16.msra.mxu2 %v6116_v15  ;;  %v7247_v5 = vld [vmem:[#allocation4 + $0x94] sm:$0xf] }
 0x32b   : > { %v2324_v33 = vmin.f32 %v2314_v10, 6.0  ;;  %3632 = vmatpush.bf16.msra.mxu3 %v6180_v17  ;;  %v5776_v10 = vor.u32 %v7275_v26, %v5773_v34  ;;  %v5600_v17 = vor.u32 %v7231_v21, %v5597_v30  ;;  %v7305_v34 = vld [vmem:[#allocation4 + $0x264] sm:$0xf]  ;;  %v5813_v30 = vld [vmem:[#allocation4 + $0x1c8] sm:$0xf0] }
 0x32c   : > { %v2257_v24 = vpop.f32.mrf.mxu2  ;;  %v2325_v37 = vmin.f32 %v2315_v47, 6.0  ;;  %v2233_v27 = vpop.f32.mrf.mxu0  ;;  %3656 = vmatpush.bf16.msrb.mxu1 %v5688_v11  ;;  %v5765_v11 = vld [vmem:[#allocation4 + $0x168] sm:$0xf0]  ;;  %v5840_v47 = vor.u32 %v7291_v52, %v5837_v35  ;;  %v7285_v21 = vld [vmem:[#allocation4 + $0x1c4] sm:$0xf] }
 0x32d   : > { %v2258_v39 = vadd.f32 %v2257_v24, %v1756_v6  ;;  %v2270_v41 = vpop.f32.mrf.mxu3  ;;  %v2334_v12 = vmul.f32 %v2324_v33, %v2232_v58  ;;  %v2246_v38 = vpop.f32.mrf.mxu1  ;;  %v5608_v58 = vor.u32 %v7233_v36, %v5605_v3  ;;  %v5661_v6 = vld [vmem:[#allocation4 + $0x98] sm:$0xf0]  ;;  %v7229_v36 = vld [vmem:[#allocation4 + $0x4] sm:$0xf]  ;;  %v5589_v3 = vld [vmem:[#allocation4 + $0x8] sm:$0xf0] }
 0x32e   : > { %v2271_v28 = vadd.f32 %v2270_v41, %v1757_v13  ;;  %v2335_v53 = vmul.f32 %v2325_v37, %v2245_v59  ;;  %3644 = vmatpush.bf16.msrb.mxu0 %v5616_v8  ;;  %3620 = vmatpush.bf16.msra.mxu2 %v6108_v31  ;;  %v6100_v59 = vor.u32 %v7358_v25, %v6099_v46  ;;  %v7273_v13 = vld [vmem:[#allocation4 + $0x164] sm:$0xf]  ;;  %v7307_v27 = vld [vmem:[#allocation4 + $0x274] sm:$0xf]  ;;  %v5965_v38 = vld [vmem:[#allocation4 + $0x2f8] sm:$0xf0] }
 0x32f   : > { %v2306_v54 = vadd.f32 3.0, %v2258_v39  ;;  %v2344_v55 = vmul.f32 0.16666667, %v2334_v12  ;;  %3633 = vmatpush.bf16.msra.mxu3 %v6172_v40  ;;  %v5664_v24 = vor.u32 %v7247_v5, %v5661_v6  ;;  %v7245_v37 = vld [vmem:[#allocation4 + $0x84] sm:$0xf]  ;;  %v5832_v12 = vor.u32 %v7289_v22, %v5829_v23 }
 0x330   : > { %v2307_v48 = vadd.f32 3.0, %v2271_v28  ;;  %v2345_v63 = vmul.f32 0.16666667, %v2335_v53  ;;  %3657 = vmatpush.bf16.msrb.mxu1 %v5680_v20  ;;  %v5768_v20 = vor.u32 %v7273_v13, %v5765_v11  ;;  %v7271_v31 = vld [vmem:[#allocation4 + $0x154] sm:$0xf]  ;;  %v5904_v26 = vor.u32 %v7307_v27, %v5901_v9 }
 0x331   : > { %v2316_v43 = vmax.f32 %v2306_v54, 0.0  ;;  %v9283_v45 = vpack.c.bf16 %v2344_v55, %v2344_v55  ;;  %v5757_v25 = vld [vmem:[#allocation4 + $0x158] sm:$0xf0]  ;;  %v7287_v53 = vld [vmem:[#allocation4 + $0x1d4] sm:$0xf]  ;;  %v5968_v52 = vor.u32 %v7323_v44, %v5965_v38  ;;  %v5816_v11 = vor.u32 %v7285_v21, %v5813_v30 }
 0x332   : > { %v2317_v0 = vmax.f32 %v2307_v48, 0.0  ;;  %v9285_v57 = vpack.c.bf16 %v2345_v63, %v2345_v63  ;;  %3645 = vmatpush.bf16.msrb.mxu0 %v5608_v58  ;;  %3621 = vmatpush.bf16.msra.mxu2 %v6100_v59  ;;  %v5821_v54 = vld [vmem:[#allocation4 + $0x1d8] sm:$0xf0]  ;;  %v5893_v55 = vld [vmem:[#allocation4 + $0x268] sm:$0xf0]  ;;  %v5760_v63 = vor.u32 %v7271_v31, %v5757_v25 }
 0x333   : > { %v2326_v49 = vmin.f32 %v2316_v43, 6.0  ;;  %v2694_v29 = vrot.slane %v9283_v45, 1  ;;  %3634 = vmatpush.bf16.msra.mxu3 %v6164_v4  ;;  %v7321_v43 = vld [vmem:[#allocation4 + $0x2e4] sm:$0xf]  ;;  %v1747_v58 = vld [vmem:[%s9484_s5 + $0x8] sm:$0x3]  ;;  %v5824_v35 = vor.u32 %v7287_v53, %v5821_v54 }
 0x334   : > { %v2327_v60 = vmin.f32 %v2317_v0, 6.0  ;;  %v2259_v7 = vpop.f32.mrf.mxu2  ;;  %v2695_v62 = vrot.slane %v9285_v57, 1  ;;  %3658 = vmatpush.bf16.msrb.mxu1 %v5672_v1  ;;  %v5957_v0 = vld [vmem:[#allocation4 + $0x2e8] sm:$0xf0]  ;;  %v7269_v1 = vld [vmem:[#allocation4 + $0x144] sm:$0xf] }
 0x335   : > { %v2336_v15 = vmul.f32 %v2326_v49, %v2258_v39  ;;  %v2272_v18 = vpop.f32.mrf.mxu3  ;;  %3570 = vmatmul.bf16.vlgmr.msrb.gmra.mxu2 %v2694_v29  ;;  %v5653_v39 = vld [vmem:[#allocation4 + $0x88] sm:$0xf0]  ;;  %v5896_v49 = vor.u32 %v7305_v34, %v5893_v55  ;;  %v1758_v4 = vperm.slane %v1747_v58, 0  ;;  %v1759_v5 = vperm.slane %v1747_v58, 1  ;;  %v7303_v7 = vld [vmem:[#allocation4 + $0x254] sm:$0xf] }
 0x336   : > { %v2337_v33 = vmul.f32 %v2327_v60, %v2271_v28  ;;  %3583 = vmatmul.bf16.vlgmr.msrb.gmra.mxu3 %v2695_v62  ;;  %3666 = vmatpush.bf16.msrb.mxu2 %v5776_v10  ;;  %v5592_v28 = vor.u32 %v7229_v36, %v5589_v3  ;;  %v5656_v16 = vor.u32 %v7245_v37, %v5653_v39  ;;  %v5749_v59 = vld [vmem:[#allocation4 + $0x148] sm:$0xf0]  ;;  %v5885_v10 = vld [vmem:[#allocation4 + $0x258] sm:$0xf0]  ;;  %v7319_v13 = vld [vmem:[#allocation4 + $0x2d4] sm:$0xf] }
 0x337   : > { %v2346_v41 = vmul.f32 0.16666667, %v2336_v15  ;;  %3679 = vmatpush.bf16.msrb.mxu3 %v5840_v47  ;;  %3646 = vmatpush.bf16.msrb.mxu0 %v5600_v17  ;;  %v5960_v6 = vor.u32 %v7321_v43, %v5957_v0  ;;  %v5752_v60 = vor.u32 %v7269_v1, %v5749_v59  ;;  %v5949_v15 = vld [vmem:[#allocation4 + $0x2d8] sm:$0xf0]  ;;  %v7267_v18 = vld [vmem:[#allocation4 + $0x134] sm:$0xf] }
 0x338   : > { %v2347_v8 = vmul.f32 0.16666667, %v2337_v33  ;;  %3659 = vmatpush.bf16.msrb.mxu1 %v5664_v24  ;;  %v5741_v47 = vld [vmem:[#allocation4 + $0x138] sm:$0xf0]  ;;  %v7283_v17 = vld [vmem:[#allocation4 + $0x1b4] sm:$0xf]  ;;  %v5888_v33 = vor.u32 %v7303_v7, %v5885_v10  ;;  %v5952_v3 = vor.u32 %v7319_v13, %v5949_v15 }
 0x339   : > { %v9293_v46 = vpack.c.bf16 %v2346_v41, %v2346_v41  ;;  %v5805_v22 = vld [vmem:[#allocation4 + $0x1b8] sm:$0xf0]  ;;  %v5744_v37 = vor.u32 %v7267_v18, %v5741_v47  ;;  %v7301_v41 = vld [vmem:[#allocation4 + $0x244] sm:$0xf]  ;;  %v5877_v39 = vld [vmem:[#allocation4 + $0x248] sm:$0xf0] }
 0x33a   : > { %v9295_v32 = vpack.c.bf16 %v2347_v8, %v2347_v8  ;;  %3667 = vmatpush.bf16.msrb.mxu2 %v5768_v20  ;;  %v7317_v27 = vld [vmem:[#allocation4 + $0x2c4] sm:$0xf]  ;;  %v5808_v20 = vor.u32 %v7283_v17, %v5805_v22  ;;  %v5941_v9 = vld [vmem:[#allocation4 + $0x2c8] sm:$0xf0]  ;;  %v7299_v53 = vld [vmem:[#allocation4 + $0x234] sm:$0xf] }
 0x33b   : > { %v2696_v40 = vrot.slane %v9293_v46, 1  ;;  %3680 = vmatpush.bf16.msrb.mxu3 %v5832_v12  ;;  %3647 = vmatpush.bf16.msrb.mxu0 %v5592_v28  ;;  %v7265_v44 = vld [vmem:[#allocation4 + $0x124] sm:$0xf]  ;;  %v5733_v12 = vld [vmem:[#allocation4 + $0x128] sm:$0xf0]  ;;  %v5944_v34 = vor.u32 %v7317_v27, %v5941_v9 }
 0x33c   : > { %v2697_v48 = vrot.slane %v9295_v32, 1  ;;  %3660 = vmatpush.bf16.msrb.mxu1 %v5656_v16  ;;  %v7281_v38 = vld [vmem:[#allocation4 + $0x1a4] sm:$0xf]  ;;  %v5797_v31 = vld [vmem:[#allocation4 + $0x1a8] sm:$0xf0]  ;;  %v5880_v16 = vor.u32 %v7301_v41, %v5877_v39  ;;  %v5736_v55 = vor.u32 %v7265_v44, %v5733_v12 }
 0x33d   : > { %3596 = vmatmul.bf16.vlgmr.msra.gmra.mxu0 %v2696_v40  ;;  %v5869_v54 = vld [vmem:[#allocation4 + $0x238] sm:$0xf0]  ;;  %v5800_v58 = vor.u32 %v7281_v38, %v5797_v31  ;;  %v7279_v59 = vld [vmem:[#allocation4 + $0x194] sm:$0xf]  ;;  %v5861_v13 = vld [vmem:[#allocation4 + $0x228] sm:$0xf0] }
 0x33e   : > { %3609 = vmatmul.bf16.vlgmr.msra.gmra.mxu1 %v2697_v48  ;;  %3668 = vmatpush.bf16.msrb.mxu2 %v5760_v63  ;;  %v5933_v63 = vld [vmem:[#allocation4 + $0x2b8] sm:$0xf0]  ;;  %v5925_v15 = vld [vmem:[#allocation4 + $0x2a8] sm:$0xf0]  ;;  %v7261_v17 = vld [vmem:[#allocation4 + $0x104] sm:$0xf] }
 0x33f   : > { %3692 = vmatpush.bf16.msra.mxu0 %v5904_v26  ;;  %3681 = vmatpush.bf16.msrb.mxu3 %v5824_v35  ;;  %v7263_v35 = vld [vmem:[#allocation4 + $0x114] sm:$0xf]  ;;  %v5725_v0 = vld [vmem:[#allocation4 + $0x118] sm:$0xf0]  ;;  %v5717_v22 = vld [vmem:[#allocation4 + $0x108] sm:$0xf0] }
 0x340   : > { %3705 = vmatpush.bf16.msra.mxu1 %v5968_v52  ;;  %v7315_v52 = vld [vmem:[#allocation4 + $0x2b4] sm:$0xf]  ;;  %v5789_v21 = vld [vmem:[#allocation4 + $0x198] sm:$0xf0]  ;;  %v5728_v10 = vor.u32 %v7263_v35, %v5725_v0  ;;  %v7309_v35 = vld [vmem:[#allocation4 + $0x284] sm:$0xf] }
 0x341   : > { %v5936_v7 = vor.u32 %v7315_v52, %v5933_v63  ;;  %v5792_v47 = vor.u32 %v7279_v59, %v5789_v21  ;;  %v6029_v41 = vld [vmem:[#allocation4 + $0x378] sm:$0xf0]  ;;  %v7355_v39 = vld [vmem:[#allocation4 + $0x3f4] sm:$0xf]  ;;  %v6085_v52 = vld [vmem:[#allocation4 + $0x3e8] sm:$0xf0] }
 0x342   : > { %3669 = vmatpush.bf16.msrb.mxu2 %v5752_v60  ;;  %v6093_v9 = vld [vmem:[#allocation4 + $0x3f8] sm:$0xf0]  ;;  %v7295_v44 = vld [vmem:[#allocation4 + $0x214] sm:$0xf]  ;;  %v5909_v0 = vld [vmem:[#allocation4 + $0x288] sm:$0xf0] }
 0x343   : > { %3693 = vmatpush.bf16.msra.mxu0 %v5896_v49  ;;  %3682 = vmatpush.bf16.msrb.mxu3 %v5816_v11  ;;  %v7313_v11 = vld [vmem:[#allocation4 + $0x2a4] sm:$0xf]  ;;  %v5853_v12 = vld [vmem:[#allocation4 + $0x218] sm:$0xf0]  ;;  %v7311_v38 = vld [vmem:[#allocation4 + $0x294] sm:$0xf] }
 0x344   : > { %v2283_v23 = vpop.f32.mrf.mxu0  ;;  %3706 = vmatpush.bf16.msra.mxu1 %v5960_v6  ;;  %v5917_v31 = vld [vmem:[#allocation4 + $0x298] sm:$0xf0] }
 0x345   : > { %v2284_v24 = vadd.f32 %v2283_v23, %v1758_v4  ;;  %v2296_v36 = vpop.f32.mrf.mxu1  ;;  %v5872_v4 = vor.u32 %v7299_v53, %v5869_v54  ;;  %v7277_v23 = vld [vmem:[#allocation4 + $0x184] sm:$0xf]  ;;  %v6021_v53 = vld [vmem:[#allocation4 + $0x368] sm:$0xf0]  ;;  %v5920_v63 = vor.u32 %v7311_v38, %v5917_v31  ;;  %v6157_v59 = vld [vmem:[#allocation4 + $0x478] sm:$0xf0] }
 0x346   : > { %v2297_v8 = vadd.f32 %v2296_v36, %v1759_v5  ;;  %3670 = vmatpush.bf16.msrb.mxu2 %v5744_v37  ;;  %v7297_v5 = vld [vmem:[#allocation4 + $0x224] sm:$0xf]  ;;  %v5781_v36 = vld [vmem:[#allocation4 + $0x188] sm:$0xf0]  ;;  %v7331_v38 = vld [vmem:[#allocation4 + $0x334] sm:$0xf] }
 0x347   : > { %v2308_v28 = vadd.f32 3.0, %v2284_v24  ;;  %3694 = vmatpush.bf16.msra.mxu0 %v5888_v33  ;;  %3683 = vmatpush.bf16.msrb.mxu3 %v5808_v20  ;;  %v5864_v37 = vor.u32 %v7297_v5, %v5861_v13  ;;  %v5720_v20 = vor.u32 %v7261_v17, %v5717_v22  ;;  %v7351_v13 = vld [vmem:[#allocation4 + $0x3d4] sm:$0xf]  ;;  %v7385_v22 = vld [vmem:[#allocation4 + $0x4e4] sm:$0xf] }
 0x348   : > { %v2309_v25 = vadd.f32 3.0, %v2297_v8  ;;  %3707 = vmatpush.bf16.msra.mxu1 %v5952_v3  ;;  %v5997_v31 = vld [vmem:[#allocation4 + $0x338] sm:$0xf0] }
 0x349   : > { %v2318_v26 = vmax.f32 %v2308_v28, 0.0  ;;  %v5784_v28 = vor.u32 %v7277_v23, %v5781_v36  ;;  %v6213_v23 = vld [vmem:[#allocation4 + $0x4e8] sm:$0xf0]  ;;  %v7333_v36 = vld [vmem:[#allocation4 + $0x344] sm:$0xf] }
 0x34a   : > { %v2319_v43 = vmax.f32 %v2309_v25, 0.0  ;;  %3671 = vmatpush.bf16.msrb.mxu2 %v5736_v55  ;;  %v7353_v55 = vld [vmem:[#allocation4 + $0x3e4] sm:$0xf] }
 0x34b   : > { %v2328_v1 = vmin.f32 %v2318_v26, 6.0  ;;  %3695 = vmatpush.bf16.msra.mxu0 %v5880_v16  ;;  %3684 = vmatpush.bf16.msrb.mxu3 %v5800_v58  ;;  %v7337_v16 = vld [vmem:[#allocation4 + $0x364] sm:$0xf]  ;;  %v6096_v26 = vor.u32 %v7355_v39, %v6093_v9  ;;  %v5845_v58 = vld [vmem:[#allocation4 + $0x208] sm:$0xf0]  ;;  %v6216_v39 = vor.u32 %v7385_v22, %v6213_v23 }
 0x34c   : > { %v2329_v30 = vmin.f32 %v2319_v43, 6.0  ;;  %v2285_v49 = vpop.f32.mrf.mxu0  ;;  %3708 = vmatpush.bf16.msra.mxu1 %v5944_v34  ;;  %v5856_v34 = vor.u32 %v7295_v44, %v5853_v12  ;;  %v7293_v43 = vld [vmem:[#allocation4 + $0x204] sm:$0xf]  ;;  %v6024_v21 = vor.u32 %v7337_v16, %v6021_v53  ;;  %v7383_v44 = vld [vmem:[#allocation4 + $0x4d4] sm:$0xf] }
 0x34d   : > { %v2338_v6 = vmul.f32 %v2328_v1, %v2284_v24  ;;  %v2298_v60 = vpop.f32.mrf.mxu1  ;;  %3648 = vmatmul.bf16.vlgmr.msrb.gmra.mxu0 %v2690_v42  ;;  %v7339_v24 = vld [vmem:[#allocation4 + $0x374] sm:$0xf]  ;;  %v6221_v49 = vld [vmem:[#allocation4 + $0x4f8] sm:$0xf0]  ;;  %v5848_v5 = vor.u32 %v7293_v43, %v5845_v58  ;;  %v7329_v58 = vld [vmem:[#allocation4 + $0x324] sm:$0xf] }
 0x34e   : > { %v2339_v18 = vmul.f32 %v2329_v30, %v2297_v8  ;;  %3661 = vmatmul.bf16.vlgmr.msrb.gmra.mxu1 %v2691_v2  ;;  %3672 = vmatpush.bf16.msrb.mxu2 %v5728_v10  ;;  %v5928_v8 = vor.u32 %v7313_v11, %v5925_v15  ;;  %v6032_v25 = vor.u32 %v7339_v24, %v6029_v41  ;;  %v7371_v1 = vld [vmem:[#allocation4 + $0x474] sm:$0xf]  ;;  %v6013_v60 = vld [vmem:[#allocation4 + $0x358] sm:$0xf0]  ;;  %v6005_v24 = vld [vmem:[#allocation4 + $0x348] sm:$0xf0] }
 0x34f   : > { %v2348_v33 = vmul.f32 0.16666667, %v2338_v6  ;;  %3696 = vmatpush.bf16.msra.mxu0 %v5872_v4  ;;  %3685 = vmatpush.bf16.msrb.mxu3 %v5792_v47  ;;  %v7387_v30 = vld [vmem:[#allocation4 + $0x4f4] sm:$0xf]  ;;  %v6088_v4 = vor.u32 %v7353_v55, %v6085_v52  ;;  %v6160_v10 = vor.u32 %v7371_v1, %v6157_v59  ;;  %v6077_v11 = vld [vmem:[#allocation4 + $0x3d8] sm:$0xf0]  ;;  %v6008_v9 = vor.u32 %v7333_v36, %v6005_v24 }
 0x350   : > { %v2349_v3 = vmul.f32 0.16666667, %v2339_v18  ;;  %3709 = vmatpush.bf16.msra.mxu1 %v5936_v7  ;;  %v7335_v6 = vld [vmem:[#allocation4 + $0x354] sm:$0xf]  ;;  %v5912_v7 = vor.u32 %v7309_v35, %v5909_v0  ;;  %v6224_v15 = vor.u32 %v7387_v30, %v6221_v49  ;;  %v7369_v18 = vld [vmem:[#allocation4 + $0x464] sm:$0xf] }
 0x351   : > { %v9310_v27 = vpack.c.bf16 %v2348_v33, %v2348_v33  ;;  %v6149_v47 = vld [vmem:[#allocation4 + $0x468] sm:$0xf0]  ;;  %v6016_v17 = vor.u32 %v7335_v6, %v6013_v60  ;;  %v6080_v33 = vor.u32 %v7351_v13, %v6077_v11  ;;  %v6205_v12 = vld [vmem:[#allocation4 + $0x4d8] sm:$0xf0]  ;;  %v7347_v16 = vld [vmem:[#allocation4 + $0x3b4] sm:$0xf] }
 0x352   : > { %v9312_v42 = vpack.c.bf16 %v2349_v3, %v2349_v3  ;;  %3673 = vmatpush.bf16.msrb.mxu2 %v5720_v20  ;;  %v6152_v3 = vor.u32 %v7369_v18, %v6149_v47  ;;  %v6069_v41 = vld [vmem:[#allocation4 + $0x3c8] sm:$0xf0]  ;;  %v6141_v20 = vld [vmem:[#allocation4 + $0x458] sm:$0xf0]  ;;  %v7381_v52 = vld [vmem:[#allocation4 + $0x4c4] sm:$0xf] }
 0x353   : > { %v2698_v2 = vrot.slane %v9310_v27, 1  ;;  %3697 = vmatpush.bf16.msra.mxu0 %v5864_v37  ;;  %3686 = vmatpush.bf16.msrb.mxu3 %v5784_v28  ;;  %v7349_v37 = vld [vmem:[#allocation4 + $0x3c4] sm:$0xf]  ;;  %v6061_v53 = vld [vmem:[#allocation4 + $0x3b8] sm:$0xf0] }
 0x354   : > { %v2699_v54 = vrot.slane %v9312_v42, 1  ;;  %3710 = vmatpush.bf16.msra.mxu1 %v5928_v8  ;;  %v7367_v8 = vld [vmem:[#allocation4 + $0x454] sm:$0xf]  ;;  %v6072_v28 = vor.u32 %v7349_v37, %v6069_v41  ;;  %v6133_v55 = vld [vmem:[#allocation4 + $0x448] sm:$0xf0]  ;;  %v6064_v43 = vor.u32 %v7347_v16, %v6061_v53 }
 0x355   : > { %3622 = vmatmul.bf16.vlgmr.msra.gmra.mxu2 %v2698_v2  ;;  %v5989_v35 = vld [vmem:[#allocation4 + $0x328] sm:$0xf0]  ;;  %v7345_v0 = vld [vmem:[#allocation4 + $0x3a4] sm:$0xf]  ;;  %v6125_v30 = vld [vmem:[#allocation4 + $0x438] sm:$0xf0] }
 0x356   : > { %3635 = vmatmul.bf16.vlgmr.msra.gmra.mxu3 %v2699_v54  ;;  %3718 = vmatpush.bf16.msra.mxu2 %v6032_v25  ;;  %v6144_v25 = vor.u32 %v7367_v8, %v6141_v20  ;;  %v6053_v1 = vld [vmem:[#allocation4 + $0x3a8] sm:$0xf0]  ;;  %v5992_v49 = vor.u32 %v7329_v58, %v5989_v35  ;;  %v7327_v60 = vld [vmem:[#allocation4 + $0x314] sm:$0xf]  ;;  %v6045_v11 = vld [vmem:[#allocation4 + $0x398] sm:$0xf0] }
 0x357   : > { %3731 = vmatpush.bf16.msra.mxu3 %v6096_v26  ;;  %3698 = vmatpush.bf16.msra.mxu0 %v5856_v34  ;;  %v6208_v26 = vor.u32 %v7383_v44, %v6205_v12  ;;  %v7365_v34 = vld [vmem:[#allocation4 + $0x444] sm:$0xf]  ;;  %v6056_v6 = vor.u32 %v7345_v0, %v6053_v1  ;;  %v7343_v13 = vld [vmem:[#allocation4 + $0x394] sm:$0xf]  ;;  %v6117_v18 = vld [vmem:[#allocation4 + $0x428] sm:$0xf0] }
 0x358   : > { %3711 = vmatpush.bf16.msra.mxu1 %v5920_v63  ;;  %v6197_v63 = vld [vmem:[#allocation4 + $0x4c8] sm:$0xf0]  ;;  %v7325_v22 = vld [vmem:[#allocation4 + $0x304] sm:$0xf]  ;;  %v6048_v23 = vor.u32 %v7343_v13, %v6045_v11  ;;  %v6283_v37 = vld [vmem:[#allocation3 + $0x70] sm:$0xf] }
 0x359   : > { %v6200_v59 = vor.u32 %v7381_v52, %v6197_v63  ;;  %v7341_v36 = vld [vmem:[#allocation4 + $0x384] sm:$0xf]  ;;  %v6037_v24 = vld [vmem:[#allocation4 + $0x388] sm:$0xf0]  ;;  %v7084_v41 = vld [vmem:[#allocation3 + $0x74] sm:$0xf0] }
 0x35a   : > { %3719 = vmatpush.bf16.msra.mxu2 %v6024_v21  ;;  %v7363_v21 = vld [vmem:[#allocation4 + $0x434] sm:$0xf]  ;;  %v7100_v20 = vld [vmem:[#allocation3 + $0xf4] sm:$0xf0]  ;;  %v6109_v44 = vld [vmem:[#allocation4 + $0x418] sm:$0xf0] }
 0x35b   : > { %3732 = vmatpush.bf16.msra.mxu3 %v6088_v4  ;;  %3699 = vmatpush.bf16.msra.mxu0 %v5848_v5  ;;  %v7379_v4 = vld [vmem:[#allocation4 + $0x4b4] sm:$0xf]  ;;  %v6189_v5 = vld [vmem:[#allocation4 + $0x4b8] sm:$0xf0]  ;;  %v6275_v16 = vld [vmem:[#allocation3 + $0x60] sm:$0xf] }
 0x35c   : > { %3712 = vmatpush.bf16.msra.mxu1 %v5912_v7  ;;  %v5981_v7 = vld [vmem:[#allocation4 + $0x318] sm:$0xf0]  ;;  %v7357_v63 = vld [vmem:[#allocation4 + $0x404] sm:$0xf]  ;;  %v6165_v35 = vld [vmem:[#allocation4 + $0x488] sm:$0xf0] }
 0x35d   : > { %v5984_v47 = vor.u32 %v7327_v60, %v5981_v7  ;;  %v7373_v58 = vld [vmem:[#allocation4 + $0x484] sm:$0xf]  ;;  %v7116_v0 = vld [vmem:[#allocation3 + $0x174] sm:$0xf0]  ;;  %v6331_v7 = vld [vmem:[#allocation3 + $0xd0] sm:$0xf] }
 0x35e   : > { %3720 = vmatpush.bf16.msra.mxu2 %v6016_v17  ;;  %3700 = vmatmul.bf16.vlgmr.msra.gmra.mxu0 %v2694_v29  ;;  %v6000_v29 = vor.u32 %v7331_v38, %v5997_v31  ;;  %v7377_v17 = vld [vmem:[#allocation4 + $0x4a4] sm:$0xf]  ;;  %v6173_v38 = vld [vmem:[#allocation4 + $0x498] sm:$0xf0]  ;;  %v6040_v31 = vor.u32 %v7341_v36, %v6037_v24  ;;  %v6403_v11 = vld [vmem:[#allocation3 + $0x160] sm:$0xf] }
 0x35f   : > { %3744 = vmatpush.bf16.msrb.mxu0 %v6160_v10  ;;  %3733 = vmatpush.bf16.msra.mxu3 %v6080_v33  ;;  %v6128_v10 = vor.u32 %v7363_v21, %v6125_v30  ;;  %v5973_v33 = vld [vmem:[#allocation4 + $0x308] sm:$0xf0]  ;;  %v7132_v21 = vld [vmem:[#allocation3 + $0x1f4] sm:$0xf0] }
 0x360   : > { %3757 = vmatpush.bf16.msrb.mxu1 %v6224_v15  ;;  %v7361_v15 = vld [vmem:[#allocation4 + $0x424] sm:$0xf]  ;;  %v5976_v12 = vor.u32 %v7325_v22, %v5973_v33  ;;  %v7078_v22 = vld [vmem:[#allocation3 + $0x44] sm:$0xf0]  ;;  %v7112_v24 = vld [vmem:[#allocation3 + $0x154] sm:$0xf0] }
 0x361   : > { %3713 = vmatmul.bf16.vlgmr.msra.gmra.mxu1 %v2695_v62  ;;  %v6136_v62 = vor.u32 %v7365_v34, %v6133_v55  ;;  %v7082_v34 = vld [vmem:[#allocation3 + $0x64] sm:$0xf0]  ;;  %v6339_v55 = vld [vmem:[#allocation3 + $0xe0] sm:$0xf] }
 0x362   : > { %3721 = vmatpush.bf16.msra.mxu2 %v6008_v9  ;;  %v7359_v9 = vld [vmem:[#allocation4 + $0x414] sm:$0xf]  ;;  %v6276_v1 = vor.u32 %v7082_v34, %v6275_v16  ;;  %v7094_v33 = vld [vmem:[#allocation3 + $0xc4] sm:$0xf0] }
 0x363   : > { %3745 = vmatpush.bf16.msrb.mxu0 %v6152_v3  ;;  %3734 = vmatpush.bf16.msra.mxu3 %v6072_v28  ;;  %v6120_v3 = vor.u32 %v7361_v15, %v6117_v18  ;;  %v7375_v28 = vld [vmem:[#allocation4 + $0x494] sm:$0xf]  ;;  %v6467_v18 = vld [vmem:[#allocation3 + $0x1e0] sm:$0xf]  ;;  %v7126_v16 = vld [vmem:[#allocation3 + $0x1c4] sm:$0xf0] }
 0x364   : > { %3758 = vmatpush.bf16.msrb.mxu1 %v6216_v39  ;;  %v6347_v39 = vld [vmem:[#allocation3 + $0xf0] sm:$0xf]  ;;  %v6176_v52 = vor.u32 %v7375_v28, %v6173_v38  ;;  %v6387_v38 = vld [vmem:[#allocation3 + $0x140] sm:$0xf] }
 0x365   : > { %3674 = vmatmul.bf16.vlgmr.msrb.gmra.mxu2 %v2692_v50  ;;  %v6192_v50 = vor.u32 %v7379_v4, %v6189_v5  ;;  %v6348_v53 = vor.u32 %v7100_v20, %v6347_v39  ;;  %v6267_v4 = vld [vmem:[#allocation3 + $0x50] sm:$0xf]  ;;  %v7080_v5 = vld [vmem:[#allocation3 + $0x54] sm:$0xf0] }
 0x366   : > { %3687 = vmatmul.bf16.vlgmr.msrb.gmra.mxu3 %v2693_v61  ;;  %3722 = vmatpush.bf16.msra.mxu2 %v6000_v29  ;;  %v6181_v61 = vld [vmem:[#allocation4 + $0x4a8] sm:$0xf0]  ;;  %v7098_v29 = vld [vmem:[#allocation3 + $0xe4] sm:$0xf0]  ;;  %v6268_v15 = vor.u32 %v7080_v5, %v6267_v4  ;;  %v7076_v20 = vld [vmem:[#allocation3 + $0x34] sm:$0xf0] }
 0x367   : > { %3746 = vmatpush.bf16.msrb.mxu0 %v6144_v25  ;;  %3735 = vmatpush.bf16.msra.mxu3 %v6064_v43  ;;  %v6184_v8 = vor.u32 %v7377_v17, %v6181_v61  ;;  %v6284_v25 = vor.u32 %v7084_v41, %v6283_v37  ;;  %v6101_v43 = vld [vmem:[#allocation4 + $0x408] sm:$0xf0]  ;;  %v6340_v30 = vor.u32 %v7098_v29, %v6339_v55  ;;  %v6259_v61 = vld [vmem:[#allocation3 + $0x40] sm:$0xf]  ;;  %v6459_v37 = vld [vmem:[#allocation3 + $0x1d0] sm:$0xf] }
 0x368   : > { %3759 = vmatpush.bf16.msrb.mxu1 %v6208_v26  ;;  %v6112_v26 = vor.u32 %v7359_v9, %v6109_v44  ;;  %v7128_v41 = vld [vmem:[#allocation3 + $0x1d4] sm:$0xf0]  ;;  %v6315_v44 = vld [vmem:[#allocation3 + $0xb0] sm:$0xf]  ;;  %v6307_v55 = vld [vmem:[#allocation3 + $0xa0] sm:$0xf] }
 0x369   : > { %v6460_v28 = vor.u32 %v7128_v41, %v6459_v37  ;;  %v7090_v29 = vld [vmem:[#allocation3 + $0xa4] sm:$0xf0]  ;;  %v6371_v5 = vld [vmem:[#allocation3 + $0x120] sm:$0xf] }
 0x36a   : > { %3723 = vmatpush.bf16.msra.mxu2 %v5992_v49  ;;  %v6104_v49 = vor.u32 %v7357_v63, %v6101_v43  ;;  %v6379_v63 = vld [vmem:[#allocation3 + $0x130] sm:$0xf]  ;;  %v7108_v43 = vld [vmem:[#allocation3 + $0x134] sm:$0xf0] }
 0x36b   : > { %3747 = vmatpush.bf16.msrb.mxu0 %v6136_v62  ;;  %3736 = vmatpush.bf16.msra.mxu3 %v6056_v6  ;;  %v6411_v62 = vld [vmem:[#allocation3 + $0x170] sm:$0xf]  ;;  %v6168_v6 = vor.u32 %v7373_v58, %v6165_v35 }
 0x36c   : > { %3760 = vmatpush.bf16.msrb.mxu1 %v6200_v59  ;;  %v6475_v59 = vld [vmem:[#allocation3 + $0x1f0] sm:$0xf]  ;;  %v6412_v60 = vor.u32 %v7116_v0, %v6411_v62  ;;  %v7124_v62 = vld [vmem:[#allocation3 + $0x1b4] sm:$0xf0]  ;;  %v6308_v0 = vor.u32 %v7090_v29, %v6307_v55 }
 0x36d   : > { %v6476_v13 = vor.u32 %v7132_v21, %v6475_v59  ;;  %v6443_v35 = vld [vmem:[#allocation3 + $0x1b0] sm:$0xf]  ;;  %v7072_v59 = vld [vmem:[#allocation3 + $0x14] sm:$0xf0]  ;;  %v6380_v21 = vor.u32 %v7108_v43, %v6379_v63 }
 0x36e   : > { %3724 = vmatpush.bf16.msra.mxu2 %v5984_v47  ;;  %v7130_v47 = vld [vmem:[#allocation3 + $0x1e4] sm:$0xf0]  ;;  %v6444_v4 = vor.u32 %v7124_v62, %v6443_v35  ;;  %v7144_v63 = vld [vmem:[#allocation3 + $0x254] sm:$0xf0]  ;;  %v6587_v35 = vld [vmem:[#allocation3 + $0x2d0] sm:$0xf] }
 0x36f   : > { %3748 = vmatpush.bf16.msrb.mxu0 %v6128_v10  ;;  %3737 = vmatpush.bf16.msra.mxu3 %v6048_v23  ;;  %v7096_v10 = vld [vmem:[#allocation3 + $0xd4] sm:$0xf0]  ;;  %v6323_v23 = vld [vmem:[#allocation3 + $0xc0] sm:$0xf]  ;;  %v6468_v36 = vor.u32 %v7130_v47, %v6467_v18  ;;  %v7086_v18 = vld [vmem:[#allocation3 + $0x84] sm:$0xf0] }
 0x370   : > { %3761 = vmatpush.bf16.msrb.mxu1 %v6192_v50  ;;  %v7114_v50 = vld [vmem:[#allocation3 + $0x164] sm:$0xf0]  ;;  %v6332_v17 = vor.u32 %v7096_v10, %v6331_v7  ;;  %v6324_v39 = vor.u32 %v7094_v33, %v6323_v23  ;;  %v6435_v7 = vld [vmem:[#allocation3 + $0x1a0] sm:$0xf]  ;;  %v7164_v23 = vld [vmem:[#allocation3 + $0x2f4] sm:$0xf0] }
 0x371   : > { %v7122_v10 = vld [vmem:[#allocation3 + $0x1a4] sm:$0xf0]  ;;  %v6363_v33 = vld [vmem:[#allocation3 + $0x110] sm:$0xf]  ;;  %v7160_v62 = vld [vmem:[#allocation3 + $0x2d4] sm:$0xf0] }
 0x372   : > { %3725 = vmatpush.bf16.msra.mxu2 %v5976_v12  ;;  %v7092_v12 = vld [vmem:[#allocation3 + $0xb4] sm:$0xf0] }
 0x373   : > { %3749 = vmatpush.bf16.msrb.mxu0 %v6120_v3  ;;  %3738 = vmatpush.bf16.msra.mxu3 %v6040_v31  ;;  %v6260_v3 = vor.u32 %v7078_v22, %v6259_v61  ;;  %v7110_v31 = vld [vmem:[#allocation3 + $0x144] sm:$0xf0]  ;;  %v7148_v61 = vld [vmem:[#allocation3 + $0x274] sm:$0xf0]  ;;  %v6603_v22 = vld [vmem:[#allocation3 + $0x2f0] sm:$0xf] }
 0x374   : > { %3762 = vmatpush.bf16.msrb.mxu1 %v6184_v8  ;;  %v6251_v8 = vld [vmem:[#allocation3 + $0x30] sm:$0xf]  ;;  %v6388_v34 = vor.u32 %v7110_v31, %v6387_v38  ;;  %v6355_v38 = vld [vmem:[#allocation3 + $0x100] sm:$0xf]  ;;  %v7102_v31 = vld [vmem:[#allocation3 + $0x104] sm:$0xf0] }
 0x375   : > { %3726 = vmatmul.bf16.vlgmr.msra.gmra.mxu2 %v2696_v40  ;;  %v6404_v40 = vor.u32 %v7114_v50, %v6403_v11  ;;  %v7070_v50 = vld [vmem:[#allocation3 + $0x4] sm:$0xf0]  ;;  %v6356_v29 = vor.u32 %v7102_v31, %v6355_v38 }
 0x376   : > { %4570 = vmatpush.bf16.msrb.mxu2 %v6284_v25  ;;  %3739 = vmatmul.bf16.vlgmr.msra.gmra.mxu3 %v2697_v48  ;;  %v6395_v48 = vld [vmem:[#allocation3 + $0x150] sm:$0xf]  ;;  %v6451_v25 = vld [vmem:[#allocation3 + $0x1c0] sm:$0xf] }
 0x377   : > { %4583 = vmatpush.bf16.msrb.mxu3 %v6348_v53  ;;  %3750 = vmatpush.bf16.msrb.mxu0 %v6112_v26  ;;  %v6396_v9 = vor.u32 %v7112_v24, %v6395_v48  ;;  %v6316_v53 = vor.u32 %v7092_v12, %v6315_v44  ;;  %v6243_v26 = vld [vmem:[#allocation3 + $0x20] sm:$0xf]  ;;  %v6427_v24 = vld [vmem:[#allocation3 + $0x190] sm:$0xf]  ;;  %v7162_v12 = vld [vmem:[#allocation3 + $0x2e4] sm:$0xf0] }
 0x378   : > { %3763 = vmatpush.bf16.msrb.mxu1 %v6176_v52  ;;  %v6452_v52 = vor.u32 %v7126_v16, %v6451_v25  ;;  %v6595_v44 = vld [vmem:[#allocation3 + $0x2e0] sm:$0xf]  ;;  %v7118_v25 = vld [vmem:[#allocation3 + $0x184] sm:$0xf0]  ;;  %v6667_v16 = vld [vmem:[#allocation3 + $0x370] sm:$0xf] }
 0x379   : > { %v6596_v55 = vor.u32 %v7162_v12, %v6595_v44  ;;  %v6499_v44 = vld [vmem:[#allocation3 + $0x220] sm:$0xf]  ;;  %v7138_v12 = vld [vmem:[#allocation3 + $0x224] sm:$0xf0] }
 0x37a   : > { %4571 = vmatpush.bf16.msrb.mxu2 %v6276_v1  ;;  %v6235_v1 = vld [vmem:[#allocation3 + $0x10] sm:$0xf] }
 0x37b   : > { %4584 = vmatpush.bf16.msrb.mxu3 %v6340_v30  ;;  %3751 = vmatpush.bf16.msrb.mxu0 %v6104_v49  ;;  %v6299_v30 = vld [vmem:[#allocation3 + $0x90] sm:$0xf]  ;;  %v7088_v49 = vld [vmem:[#allocation3 + $0x94] sm:$0xf0] }
 0x37c   : > { %3764 = vmatpush.bf16.msrb.mxu1 %v6168_v6  ;;  %v7106_v6 = vld [vmem:[#allocation3 + $0x124] sm:$0xf0]  ;;  %v6300_v11 = vor.u32 %v7088_v49, %v6299_v30  ;;  %v6723_v30 = vld [vmem:[#allocation3 + $0x3e0] sm:$0xf] }
 0x37d   : > { %v6372_v47 = vor.u32 %v7106_v6, %v6371_v5  ;;  %v7194_v49 = vld [vmem:[#allocation3 + $0x3e4] sm:$0xf0]  ;;  %v6515_v5 = vld [vmem:[#allocation3 + $0x240] sm:$0xf] }
 0x37e   : > { %3752 = vmatmul.bf16.vlgmr.msrb.gmra.mxu0 %v2698_v2  ;;  %4572 = vmatpush.bf16.msrb.mxu2 %v6268_v15  ;;  %v6252_v2 = vor.u32 %v7076_v20, %v6251_v8  ;;  %v6291_v15 = vld [vmem:[#allocation3 + $0x80] sm:$0xf]  ;;  %v6604_v8 = vor.u32 %v7164_v23, %v6603_v22  ;;  %v7142_v6 = vld [vmem:[#allocation3 + $0x244] sm:$0xf0]  ;;  %v7140_v22 = vld [vmem:[#allocation3 + $0x234] sm:$0xf0] }
 0x37f   : > { %4596 = vmatpush.bf16.msra.mxu0 %v6412_v60  ;;  %3765 = vmatmul.bf16.vlgmr.msrb.gmra.mxu1 %v2699_v54  ;;  %v7074_v54 = vld [vmem:[#allocation3 + $0x24] sm:$0xf0]  ;;  %v6236_v60 = vor.u32 %v7072_v59, %v6235_v1  ;;  %v6292_v37 = vor.u32 %v7086_v18, %v6291_v15  ;;  %v6659_v1 = vld [vmem:[#allocation3 + $0x360] sm:$0xf]  ;;  %v6516_v15 = vor.u32 %v7142_v6, %v6515_v5  ;;  %v6715_v18 = vld [vmem:[#allocation3 + $0x3d0] sm:$0xf] }
 0x380   : > { %4609 = vmatpush.bf16.msra.mxu1 %v6476_v13  ;;  %4585 = vmatpush.bf16.msrb.mxu3 %v6332_v17  ;;  %v6244_v58 = vor.u32 %v7074_v54, %v6243_v26  ;;  %v6227_v13 = vld [vmem:[#allocation3] sm:$0xf]  ;;  %v6539_v17 = vld [vmem:[#allocation3 + $0x270] sm:$0xf]  ;;  %v7178_v59 = vld [vmem:[#allocation3 + $0x364] sm:$0xf0] }
 0x381   : > { %v6228_v48 = vor.u32 %v7070_v50, %v6227_v13  ;;  %v6540_v41 = vor.u32 %v7148_v61, %v6539_v17  ;;  %v6731_v54 = vld [vmem:[#allocation3 + $0x3f0] sm:$0xf]  ;;  %v6724_v13 = vor.u32 %v7194_v49, %v6723_v30  ;;  %v7176_v50 = vld [vmem:[#allocation3 + $0x354] sm:$0xf0]  ;;  %v7186_v5 = vld [vmem:[#allocation3 + $0x3a4] sm:$0xf0] }
 0x382   : > { %4573 = vmatpush.bf16.msrb.mxu2 %v6260_v3  ;;  %v7120_v3 = vld [vmem:[#allocation3 + $0x194] sm:$0xf0]  ;;  %v6507_v61 = vld [vmem:[#allocation3 + $0x230] sm:$0xf]  ;;  %v6483_v6 = vld [vmem:[#allocation3 + $0x200] sm:$0xf] }
 0x383   : > { %4597 = vmatpush.bf16.msra.mxu0 %v6404_v40  ;;  %v6436_v40 = vor.u32 %v7122_v10, %v6435_v7  ;;  %v6579_v7 = vld [vmem:[#allocation3 + $0x2c0] sm:$0xf]  ;;  %v7158_v10 = vld [vmem:[#allocation3 + $0x2c4] sm:$0xf0]  ;;  %v6571_v23 = vld [vmem:[#allocation3 + $0x2b0] sm:$0xf] }
 0x384   : > { %4610 = vmatpush.bf16.msra.mxu1 %v6468_v36  ;;  %4586 = vmatpush.bf16.msrb.mxu3 %v6324_v39  ;;  %v7104_v36 = vld [vmem:[#allocation3 + $0x114] sm:$0xf0]  ;;  %v6531_v39 = vld [vmem:[#allocation3 + $0x260] sm:$0xf]  ;;  %v6580_v17 = vor.u32 %v7158_v10, %v6579_v7 }
 0x385   : > { %v6364_v20 = vor.u32 %v7104_v36, %v6363_v33  ;;  %v7156_v33 = vld [vmem:[#allocation3 + $0x2b4] sm:$0xf0] }
 0x386   : > { %4574 = vmatpush.bf16.msrb.mxu2 %v6252_v2  ;;  %v6419_v2 = vld [vmem:[#allocation3 + $0x180] sm:$0xf] }
 0x387   : > { %4598 = vmatpush.bf16.msra.mxu0 %v6396_v9  ;;  %v7146_v9 = vld [vmem:[#allocation3 + $0x264] sm:$0xf0]  ;;  %v6420_v43 = vor.u32 %v7118_v25, %v6419_v2  ;;  %v6563_v2 = vld [vmem:[#allocation3 + $0x2a0] sm:$0xf] }
 0x388   : > { %4611 = vmatpush.bf16.msra.mxu1 %v6460_v28  ;;  %4587 = vmatpush.bf16.msrb.mxu3 %v6316_v53  ;;  %v6428_v28 = vor.u32 %v7120_v3, %v6427_v24  ;;  %v7180_v53 = vld [vmem:[#allocation3 + $0x374] sm:$0xf0]  ;;  %v6532_v26 = vor.u32 %v7146_v9, %v6531_v39  ;;  %v7174_v24 = vld [vmem:[#allocation3 + $0x344] sm:$0xf0]  ;;  %v6572_v9 = vor.u32 %v7156_v33, %v6571_v23  ;;  %v6619_v23 = vld [vmem:[#allocation3 + $0x310] sm:$0xf] }
 0x389   : > { %v7190_v39 = vld [vmem:[#allocation3 + $0x3c4] sm:$0xf0]  ;;  %v7168_v33 = vld [vmem:[#allocation3 + $0x314] sm:$0xf0] }
 0x38a   : > { %4575 = vmatpush.bf16.msrb.mxu2 %v6244_v58  ;;  %v6668_v58 = vor.u32 %v7180_v53, %v6667_v16  ;;  %v7154_v25 = vld [vmem:[#allocation3 + $0x2a4] sm:$0xf0]  ;;  %v6635_v53 = vld [vmem:[#allocation3 + $0x330] sm:$0xf] }
 0x38b   : > { %4599 = vmatpush.bf16.msra.mxu0 %v6388_v34  ;;  %v7196_v34 = vld [vmem:[#allocation3 + $0x3f4] sm:$0xf0] }
 0x38c   : > { %4612 = vmatpush.bf16.msra.mxu1 %v6452_v52  ;;  %4588 = vmatpush.bf16.msrb.mxu3 %v6308_v0  ;;  %v6523_v52 = vld [vmem:[#allocation3 + $0x250] sm:$0xf]  ;;  %v6732_v0 = vor.u32 %v7196_v34, %v6731_v54  ;;  %v6500_v34 = vor.u32 %v7138_v12, %v6499_v44  ;;  %v7226_v44 = vld [vmem:[#allocation3 + $0x4e4] sm:$0xf0] }
 0x38e   : > { %4576 = vmatpush.bf16.msrb.mxu2 %v6236_v60  ;;  %v6660_v60 = vor.u32 %v7178_v59, %v6659_v1  ;;  %v6627_v59 = vld [vmem:[#allocation3 + $0x320] sm:$0xf] }
 0x38f   : > { %4600 = vmatpush.bf16.msra.mxu0 %v6380_v21  ;;  %v6524_v21 = vor.u32 %v7144_v63, %v6523_v52  ;;  %v6564_v52 = vor.u32 %v7154_v25, %v6563_v2  ;;  %v6491_v63 = vld [vmem:[#allocation3 + $0x210] sm:$0xf]  ;;  %v7182_v2 = vld [vmem:[#allocation3 + $0x384] sm:$0xf0]  ;;  %v7083_v25 = vld [vmem:[#allocation3 + $0x74] sm:$0xf] }
 0x390   : > { %4613 = vmatpush.bf16.msra.mxu1 %v6444_v4  ;;  %4589 = vmatpush.bf16.msrb.mxu3 %v6300_v11  ;;  %v6588_v4 = vor.u32 %v7160_v62, %v6587_v35  ;;  %v6651_v11 = vld [vmem:[#allocation3 + $0x350] sm:$0xf] }
 0x391   : > { %v6555_v62 = vld [vmem:[#allocation3 + $0x290] sm:$0xf] }
 0x392   : > { %4577 = vmatpush.bf16.msrb.mxu2 %v6228_v48  ;;  %v6643_v48 = vld [vmem:[#allocation3 + $0x340] sm:$0xf] }
 0x393   : > { %4601 = vmatpush.bf16.msra.mxu0 %v6372_v47  ;;  %v7192_v47 = vld [vmem:[#allocation3 + $0x3d4] sm:$0xf0]  ;;  %v6644_v31 = vor.u32 %v7174_v24, %v6643_v48  ;;  %v6683_v48 = vld [vmem:[#allocation3 + $0x390] sm:$0xf] }
 0x394   : > { %4614 = vmatpush.bf16.msra.mxu1 %v6436_v40  ;;  %4590 = vmatpush.bf16.msrb.mxu3 %v6292_v37  ;;  %v6652_v40 = vor.u32 %v7176_v50, %v6651_v11  ;;  %v6716_v36 = vor.u32 %v7192_v47, %v6715_v18  ;;  %v6508_v37 = vor.u32 %v7140_v22, %v6507_v61  ;;  %v6547_v11 = vld [vmem:[#allocation3 + $0x280] sm:$0xf]  ;;  %v7150_v50 = vld [vmem:[#allocation3 + $0x284] sm:$0xf0]  ;;  %v6795_v47 = vld [vmem:[#allocation3 + $0x470] sm:$0xf] }
 0x395   : > { %4578 = vmatmul.bf16.vlgmr.msrb.gmra.mxu2 %v9259_v56  ;;  %v6859_v61 = vld [vmem:[#allocation3 + $0x4f0] sm:$0xf]  ;;  %v7184_v24 = vld [vmem:[#allocation3 + $0x394] sm:$0xf0] }
 0x396   : > { %4622 = vmatpush.bf16.msra.mxu2 %v6540_v41  ;;  %v6707_v41 = vld [vmem:[#allocation3 + $0x3c0] sm:$0xf]  ;;  %v6684_v12 = vor.u32 %v7184_v24, %v6683_v48  ;;  %v7077_v48 = vld [vmem:[#allocation3 + $0x44] sm:$0xf]  ;;  %v6261_v24 = vld [vmem:[#allocation3 + $0x48] sm:$0xf0] }
 0x397   : > { %4602 = vmatpush.bf16.msra.mxu0 %v6364_v20  ;;  %4591 = vmatmul.bf16.vlgmr.msrb.gmra.mxu3 %v9261_v51  ;;  %v6708_v16 = vor.u32 %v7190_v39, %v6707_v41  ;;  %v6787_v41 = vld [vmem:[#allocation3 + $0x460] sm:$0xf] }
 0x398   : > { %4635 = vmatpush.bf16.msra.mxu3 %v6604_v8  ;;  %4615 = vmatpush.bf16.msra.mxu1 %v6428_v28  ;;  %v3519_v3 = vpop.f32.mrf.mxu2 }
 0x399   : > { %v3532_v8 = vpop.f32.mrf.mxu3 }
 0x39a   : > { %4623 = vmatpush.bf16.msra.mxu2 %v6532_v26  ;;  %v3545_v20 = vpop.f32.mrf.mxu0  ;;  %v3533_v28 = vadd.f32 %v3532_v8, %v3519_v3  ;;  %v7172_v26 = vld [vmem:[#allocation3 + $0x334] sm:$0xf0]  ;;  %v6548_v3 = vor.u32 %v7150_v50, %v6547_v11  ;;  %v6620_v8 = vor.u32 %v7168_v33, %v6619_v23  ;;  %v7079_v11 = vld [vmem:[#allocation3 + $0x54] sm:$0xf]  ;;  %v6269_v50 = vld [vmem:[#allocation3 + $0x58] sm:$0xf0] }
 0x39b   : > { %4603 = vmatpush.bf16.msra.mxu0 %v6356_v29  ;;  %v7188_v29 = vld [vmem:[#allocation3 + $0x3b4] sm:$0xf0]  ;;  %v6636_v35 = vor.u32 %v7172_v26, %v6635_v53  ;;  %v7099_v26 = vld [vmem:[#allocation3 + $0xf4] sm:$0xf]  ;;  %v6827_v23 = vld [vmem:[#allocation3 + $0x4b0] sm:$0xf] }
 0x39c   : > { %4636 = vmatpush.bf16.msra.mxu3 %v6596_v55  ;;  %4616 = vmatpush.bf16.msra.mxu1 %v6420_v43  ;;  %v3558_v38 = vpop.f32.mrf.mxu1  ;;  %v3546_v54 = vadd.f32 %v3545_v20, %v3533_v28  ;;  %v6699_v55 = vld [vmem:[#allocation3 + $0x3b0] sm:$0xf]  ;;  %v7136_v43 = vld [vmem:[#allocation3 + $0x214] sm:$0xf0]  ;;  %v7210_v20 = vld [vmem:[#allocation3 + $0x464] sm:$0xf0] }
 0x39d   : > { %v6700_v1 = vor.u32 %v7188_v29, %v6699_v55  ;;  %v6492_v49 = vor.u32 %v7136_v43, %v6491_v63  ;;  %v6611_v28 = vld [vmem:[#allocation3 + $0x300] sm:$0xf]  ;;  %v6788_v53 = vor.u32 %v7210_v20, %v6787_v41  ;;  %v6779_v29 = vld [vmem:[#allocation3 + $0x450] sm:$0xf]  ;;  %v7220_v33 = vld [vmem:[#allocation3 + $0x4b4] sm:$0xf0] }
 0x39e   : > { %4604 = vmatmul.bf16.vlgmr.msra.gmra.mxu0 %v9269_v14  ;;  %4624 = vmatpush.bf16.msra.mxu2 %v6524_v21  ;;  %v7170_v21 = vld [vmem:[#allocation3 + $0x324] sm:$0xf0]  ;;  %v6325_v41 = vld [vmem:[#allocation3 + $0xc8] sm:$0xf0]  ;;  %v6755_v20 = vld [vmem:[#allocation3 + $0x420] sm:$0xf] }
 0x39f   : > { %4648 = vmatpush.bf16.msrb.mxu0 %v6668_v58  ;;  %4617 = vmatmul.bf16.vlgmr.msra.gmra.mxu1 %v9271_v19  ;;  %v9340_v58 = vadd.f32 %v3558_v38, %v3546_v54  ;;  %v6628_v18 = vor.u32 %v7170_v21, %v6627_v59  ;;  %v7166_v38 = vld [vmem:[#allocation3 + $0x304] sm:$0xf0]  ;;  %v6349_v54 = vld [vmem:[#allocation3 + $0xf8] sm:$0xf0]  ;;  %v6277_v59 = vld [vmem:[#allocation3 + $0x68] sm:$0xf0] }
 0x3a0   : > { %4661 = vmatpush.bf16.msrb.mxu1 %v6732_v0  ;;  %4637 = vmatpush.bf16.msra.mxu3 %v6588_v4  ;;  %v7152_v0 = vld [vmem:[#allocation3 + $0x294] sm:$0xf0]  ;;  %v3521_v30 = vpop.f32.mrf.mxu2  ;;  %v6691_v4 = vld [vmem:[#allocation3 + $0x3a0] sm:$0xf]  ;;  %v6612_v55 = vor.u32 %v7166_v38, %v6611_v28  ;;  %v6264_v38 = vor.u32 %v7077_v48, %v6261_v24  ;;  %v7087_v24 = vld [vmem:[#allocation3 + $0x94] sm:$0xf] }
 0x3a1   : > { %v6556_v10 = vor.u32 %v7152_v0, %v6555_v62  ;;  %v6692_v22 = vor.u32 %v7186_v5, %v6691_v4  ;;  %v7224_v62 = vld [vmem:[#allocation3 + $0x4d4] sm:$0xf0]  ;;  %v6352_v0 = vor.u32 %v7099_v26, %v6349_v54  ;;  %v7097_v30 = vld [vmem:[#allocation3 + $0xe4] sm:$0xf]  ;;  %v6771_v5 = vld [vmem:[#allocation3 + $0x440] sm:$0xf] }
 0x3a2   : > { %4625 = vmatpush.bf16.msra.mxu2 %v6516_v15  ;;  %v3547_v7 = vpop.f32.mrf.mxu0  ;;  %v6253_v26 = vld [vmem:[#allocation3 + $0x38] sm:$0xf0] }
 0x3a3   : > { %4649 = vmatpush.bf16.msrb.mxu0 %v6660_v60  ;;  %v3534_v60 = vpop.f32.mrf.mxu3  ;;  %v6835_v7 = vld [vmem:[#allocation3 + $0x4c0] sm:$0xf] }
 0x3a4   : > { %4662 = vmatpush.bf16.msrb.mxu1 %v6724_v13  ;;  %4638 = vmatpush.bf16.msra.mxu3 %v6580_v17  ;;  %v7134_v13 = vld [vmem:[#allocation3 + $0x204] sm:$0xf0]  ;;  %v3560_v15 = vpop.f32.mrf.mxu1  ;;  %v7212_v17 = vld [vmem:[#allocation3 + $0x474] sm:$0xf0] }
 0x3a6   : > { %4626 = vmatpush.bf16.msra.mxu2 %v6508_v37  ;;  %v6796_v37 = vor.u32 %v7212_v17, %v6795_v47  ;;  %v6333_v47 = vld [vmem:[#allocation3 + $0xd8] sm:$0xf0] }
 0x3a7   : > { %4650 = vmatpush.bf16.msrb.mxu0 %v6652_v40  ;;  %v7228_v40 = vld [vmem:[#allocation3 + $0x4f4] sm:$0xf0] }
 0x3a8   : > { %4663 = vmatpush.bf16.msrb.mxu1 %v6716_v36  ;;  %4639 = vmatpush.bf16.msra.mxu3 %v6572_v9  ;;  %v6484_v36 = vor.u32 %v7134_v13, %v6483_v6  ;;  %v6860_v39 = vor.u32 %v7228_v40, %v6859_v61  ;;  %v6851_v9 = vld [vmem:[#allocation3 + $0x4e0] sm:$0xf]  ;;  %v7206_v6 = vld [vmem:[#allocation3 + $0x444] sm:$0xf0]  ;;  %v6763_v61 = vld [vmem:[#allocation3 + $0x430] sm:$0xf]  ;;  %v6272_v40 = vor.u32 %v7079_v11, %v6269_v50 }
 0x3a9   : > { %v6772_v15 = vor.u32 %v7206_v6, %v6771_v5  ;;  %v6309_v5 = vld [vmem:[#allocation3 + $0xa8] sm:$0xf0]  ;;  %v6739_v6 = vld [vmem:[#allocation3 + $0x400] sm:$0xf]  ;;  %v7214_v11 = vld [vmem:[#allocation3 + $0x484] sm:$0xf0] }
 0x3aa   : > { %4627 = vmatpush.bf16.msra.mxu2 %v6500_v34  ;;  %v6852_v34 = vor.u32 %v7226_v44, %v6851_v9  ;;  %v7202_v9 = vld [vmem:[#allocation3 + $0x424] sm:$0xf0] }
 0x3ab   : > { %4651 = vmatpush.bf16.msrb.mxu0 %v6644_v31  ;;  %v6675_v31 = vld [vmem:[#allocation3 + $0x380] sm:$0xf] }
 0x3ac   : > { %4664 = vmatpush.bf16.msrb.mxu1 %v6708_v16  ;;  %4640 = vmatpush.bf16.msra.mxu3 %v6564_v52  ;;  %v6285_v16 = vld [vmem:[#allocation3 + $0x78] sm:$0xf0]  ;;  %v7208_v52 = vld [vmem:[#allocation3 + $0x454] sm:$0xf0]  ;;  %v6676_v63 = vor.u32 %v7182_v2, %v6675_v31  ;;  %v6819_v31 = vld [vmem:[#allocation3 + $0x4a0] sm:$0xf] }
 0x3ad   : > { %v6288_v43 = vor.u32 %v7083_v25, %v6285_v16  ;;  %v6780_v21 = vor.u32 %v7208_v52, %v6779_v29  ;;  %v7218_v2 = vld [vmem:[#allocation3 + $0x4a4] sm:$0xf0]  ;;  %v6317_v29 = vld [vmem:[#allocation3 + $0xb8] sm:$0xf0] }
 0x3ae   : > { %4628 = vmatpush.bf16.msra.mxu2 %v6492_v49  ;;  %v6341_v49 = vld [vmem:[#allocation3 + $0xe8] sm:$0xf0]  ;;  %v6820_v52 = vor.u32 %v7218_v2, %v6819_v31  ;;  %v7085_v2 = vld [vmem:[#allocation3 + $0x84] sm:$0xf] }
 0x3af   : > { %4652 = vmatpush.bf16.msrb.mxu0 %v6636_v35  ;;  %v6843_v35 = vld [vmem:[#allocation3 + $0x4d0] sm:$0xf]  ;;  %v6344_v13 = vor.u32 %v7097_v30, %v6341_v49  ;;  %v6229_v31 = vld [vmem:[#allocation3 + $0x8] sm:$0xf0] }
 0x3b0   : > { %4665 = vmatpush.bf16.msrb.mxu1 %v6700_v1  ;;  %4641 = vmatpush.bf16.msra.mxu3 %v6556_v10  ;;  %v7081_v1 = vld [vmem:[#allocation3 + $0x64] sm:$0xf]  ;;  %v6844_v4 = vor.u32 %v7224_v62, %v6843_v35  ;;  %v7222_v10 = vld [vmem:[#allocation3 + $0x4c4] sm:$0xf0]  ;;  %v6811_v62 = vld [vmem:[#allocation3 + $0x490] sm:$0xf] }
 0x3b1   : > { %v6280_v60 = vor.u32 %v7081_v1, %v6277_v59  ;;  %v6836_v17 = vor.u32 %v7222_v10, %v6835_v7  ;;  %v7073_v59 = vld [vmem:[#allocation3 + $0x24] sm:$0xf]  ;;  %v7198_v10 = vld [vmem:[#allocation3 + $0x404] sm:$0xf0] }
 0x3b2   : > { %4629 = vmatpush.bf16.msra.mxu2 %v6484_v36  ;;  %v6740_v48 = vor.u32 %v7198_v10, %v6739_v6  ;;  %v7161_v6 = vld [vmem:[#allocation3 + $0x2e4] sm:$0xf] }
 0x3b3   : > { %4653 = vmatpush.bf16.msrb.mxu0 %v6628_v18  ;;  %v7095_v18 = vld [vmem:[#allocation3 + $0xd4] sm:$0xf]  ;;  %v7109_v10 = vld [vmem:[#allocation3 + $0x144] sm:$0xf] }
 0x3b4   : > { %4666 = vmatpush.bf16.msrb.mxu1 %v6692_v22  ;;  %4642 = vmatpush.bf16.msra.mxu3 %v6548_v3  ;;  %v7204_v22 = vld [vmem:[#allocation3 + $0x434] sm:$0xf0]  ;;  %v6336_v36 = vor.u32 %v7095_v18, %v6333_v47  ;;  %v7115_v47 = vld [vmem:[#allocation3 + $0x174] sm:$0xf] }
 0x3b5   : > { %4630 = vmatmul.bf16.vlgmr.msra.gmra.mxu2 %v9283_v45  ;;  %v6764_v3 = vor.u32 %v7204_v22, %v6763_v61  ;;  %v7131_v61 = vld [vmem:[#allocation3 + $0x1f4] sm:$0xf] }
 0x3b6   : > { %4674 = vmatpush.bf16.msrb.mxu2 %v6796_v37  ;;  %v7093_v37 = vld [vmem:[#allocation3 + $0xc4] sm:$0xf] }
 0x3b7   : > { %4654 = vmatpush.bf16.msrb.mxu0 %v6620_v8  ;;  %4643 = vmatmul.bf16.vlgmr.msra.gmra.mxu3 %v9285_v57  ;;  %v6828_v8 = vor.u32 %v7220_v33, %v6827_v23  ;;  %v6328_v16 = vor.u32 %v7093_v37, %v6325_v41  ;;  %v6477_v23 = vld [vmem:[#allocation3 + $0x1f8] sm:$0xf0]  ;;  %v7071_v33 = vld [vmem:[#allocation3 + $0x14] sm:$0xf] }
 0x3b8   : > { %4687 = vmatpush.bf16.msrb.mxu3 %v6860_v39  ;;  %4667 = vmatpush.bf16.msrb.mxu1 %v6684_v12  ;;  %v3571_v39 = vpop.f32.mrf.mxu2 }
 0x3b9   : > { %v3572_v44 = vadd.f32 %v3571_v39, %v9340_v58  ;;  %v3584_v12 = vpop.f32.mrf.mxu3  ;;  %v7113_v39 = vld [vmem:[#allocation3 + $0x164] sm:$0xf] }
 0x3ba   : > { %4675 = vmatpush.bf16.msrb.mxu2 %v6788_v53  ;;  %v3597_v28 = vpop.f32.mrf.mxu0  ;;  %v7075_v53 = vld [vmem:[#allocation3 + $0x34] sm:$0xf] }
 0x3bb   : > { %4655 = vmatpush.bf16.msrb.mxu0 %v6612_v55  ;;  %v3610_v25 = vpop.f32.mrf.mxu1  ;;  %v3585_v54 = vadd.f32 %v3584_v12, %v3572_v44  ;;  %v7091_v55 = vld [vmem:[#allocation3 + $0xb4] sm:$0xf]  ;;  %v6256_v35 = vor.u32 %v7075_v53, %v6253_v26  ;;  %v7129_v44 = vld [vmem:[#allocation3 + $0x1e4] sm:$0xf]  ;;  %v6469_v12 = vld [vmem:[#allocation3 + $0x1e8] sm:$0xf0] }
 0x3bc   : > { %4688 = vmatpush.bf16.msrb.mxu3 %v6852_v34  ;;  %4668 = vmatpush.bf16.msrb.mxu1 %v6676_v63  ;;  %v6756_v34 = vor.u32 %v7202_v9, %v6755_v20  ;;  %v6747_v63 = vld [vmem:[#allocation3 + $0x410] sm:$0xf]  ;;  %v6320_v1 = vor.u32 %v7091_v55, %v6317_v29  ;;  %v6405_v9 = vld [vmem:[#allocation3 + $0x168] sm:$0xf0]  ;;  %v6541_v53 = vld [vmem:[#allocation3 + $0x278] sm:$0xf0]  ;;  %v6472_v29 = vor.u32 %v7129_v44, %v6469_v12 }
 0x3bd   : > { %v3598_v58 = vadd.f32 %v3597_v28, %v3585_v54  ;;  %v6408_v26 = vor.u32 %v7113_v39, %v6405_v9  ;;  %v7163_v54 = vld [vmem:[#allocation3 + $0x2f4] sm:$0xf]  ;;  %v7157_v9 = vld [vmem:[#allocation3 + $0x2c4] sm:$0xf]  ;;  %v6581_v44 = vld [vmem:[#allocation3 + $0x2c8] sm:$0xf0] }
 0x3be   : > { %4656 = vmatmul.bf16.vlgmr.msrb.gmra.mxu0 %v9293_v46  ;;  %4676 = vmatpush.bf16.msrb.mxu2 %v6780_v21  ;;  %v6245_v21 = vld [vmem:[#allocation3 + $0x28] sm:$0xf0]  ;;  %v7105_v12 = vld [vmem:[#allocation3 + $0x124] sm:$0xf] }
 0x3bf   : > { %4700 = vmatpush.bf16.msra.mxu0 %v6288_v43  ;;  %4669 = vmatmul.bf16.vlgmr.msrb.gmra.mxu1 %v9295_v32  ;;  %v7200_v43 = vld [vmem:[#allocation3 + $0x414] sm:$0xf0]  ;;  %v9347_v30 = vadd.f32 %v3610_v25, %v3598_v58  ;;  %v6248_v18 = vor.u32 %v7073_v59, %v6245_v21  ;;  %v6293_v25 = vld [vmem:[#allocation3 + $0x88] sm:$0xf0] }
 0x3c0   : > { %4713 = vmatpush.bf16.msra.mxu1 %v6352_v0  ;;  %4689 = vmatpush.bf16.msrb.mxu3 %v6844_v4  ;;  %v7216_v0 = vld [vmem:[#allocation3 + $0x494] sm:$0xf0]  ;;  %v6748_v49 = vor.u32 %v7200_v43, %v6747_v63  ;;  %v7089_v4 = vld [vmem:[#allocation3 + $0xa4] sm:$0xf]  ;;  %v7111_v63 = vld [vmem:[#allocation3 + $0x154] sm:$0xf] }
 0x3c1   : > { %v6812_v7 = vor.u32 %v7216_v0, %v6811_v62  ;;  %v3586_v50 = vpop.f32.mrf.mxu3  ;;  %v6397_v43 = vld [vmem:[#allocation3 + $0x158] sm:$0xf0]  ;;  %v7127_v0 = vld [vmem:[#allocation3 + $0x1d4] sm:$0xf] }
 0x3c2   : > { %4677 = vmatpush.bf16.msrb.mxu2 %v6772_v15  ;;  %v3599_v15 = vpop.f32.mrf.mxu0  ;;  %v7125_v50 = vld [vmem:[#allocation3 + $0x1c4] sm:$0xf] }
 0x3c3   : > { %4701 = vmatpush.bf16.msra.mxu0 %v6280_v60  ;;  %v3573_v60 = vpop.f32.mrf.mxu2  ;;  %v3612_v22 = vpop.f32.mrf.mxu1  ;;  %v6453_v15 = vld [vmem:[#allocation3 + $0x1c8] sm:$0xf0] }
 0x3c4   : > { %4714 = vmatpush.bf16.msra.mxu1 %v6344_v13  ;;  %4690 = vmatpush.bf16.msrb.mxu3 %v6836_v17  ;;  %v6803_v13 = vld [vmem:[#allocation3 + $0x480] sm:$0xf]  ;;  %v6413_v17 = vld [vmem:[#allocation3 + $0x178] sm:$0xf0]  ;;  %v6597_v60 = vld [vmem:[#allocation3 + $0x2e8] sm:$0xf0] }
 0x3c5   : > { %v6804_v37 = vor.u32 %v7214_v11, %v6803_v13  ;;  %v6416_v41 = vor.u32 %v7115_v47, %v6413_v17  ;;  %v6389_v13 = vld [vmem:[#allocation3 + $0x148] sm:$0xf0]  ;;  %v7143_v47 = vld [vmem:[#allocation3 + $0x254] sm:$0xf]  ;;  %v6525_v17 = vld [vmem:[#allocation3 + $0x258] sm:$0xf0] }
 0x3c6   : > { %4678 = vmatpush.bf16.msrb.mxu2 %v6764_v3  ;;  %v6301_v3 = vld [vmem:[#allocation3 + $0x98] sm:$0xf0]  ;;  %v7159_v22 = vld [vmem:[#allocation3 + $0x2d4] sm:$0xf] }
 0x3c7   : > { %4702 = vmatpush.bf16.msra.mxu0 %v6272_v40  ;;  %v6312_v40 = vor.u32 %v7089_v4, %v6309_v5  ;;  %v6304_v28 = vor.u32 %v7087_v24, %v6301_v3  ;;  %v6533_v4 = vld [vmem:[#allocation3 + $0x268] sm:$0xf0]  ;;  %v6400_v5 = vor.u32 %v7111_v63, %v6397_v43  ;;  %v6528_v3 = vor.u32 %v7143_v47, %v6525_v17  ;;  %v7179_v17 = vld [vmem:[#allocation3 + $0x374] sm:$0xf] }
 0x3c8   : > { %4715 = vmatpush.bf16.msra.mxu1 %v6336_v36  ;;  %4691 = vmatpush.bf16.msrb.mxu3 %v6828_v8  ;;  %v6237_v36 = vld [vmem:[#allocation3 + $0x18] sm:$0xf0]  ;;  %v6480_v8 = vor.u32 %v7131_v61, %v6477_v23  ;;  %v6392_v61 = vor.u32 %v7109_v10, %v6389_v13  ;;  %v7101_v10 = vld [vmem:[#allocation3 + $0x104] sm:$0xf] }
 0x3c9   : > { %v6240_v20 = vor.u32 %v7071_v33, %v6237_v36  ;;  %v6456_v33 = vor.u32 %v7125_v50, %v6453_v15  ;;  %v7107_v36 = vld [vmem:[#allocation3 + $0x134] sm:$0xf]  ;;  %v7117_v50 = vld [vmem:[#allocation3 + $0x184] sm:$0xf]  ;;  %v6421_v15 = vld [vmem:[#allocation3 + $0x188] sm:$0xf0] }
 0x3ca   : > { %4679 = vmatpush.bf16.msrb.mxu2 %v6756_v34  ;;  %v6605_v34 = vld [vmem:[#allocation3 + $0x2f8] sm:$0xf0]  ;;  %v3649_v55 = vpop.f32.mrf.mxu0 }
 0x3cb   : > { %4703 = vmatpush.bf16.msra.mxu0 %v6264_v38  ;;  %v7069_v38 = vld [vmem:[#allocation3 + $0x4] sm:$0xf]  ;;  %v3662_v58 = vpop.f32.mrf.mxu1  ;;  %v6608_v21 = vor.u32 %v7163_v54, %v6605_v34  ;;  %v7139_v54 = vld [vmem:[#allocation3 + $0x234] sm:$0xf]  ;;  %v6509_v34 = vld [vmem:[#allocation3 + $0x238] sm:$0xf0] }
 0x3cc   : > { %4716 = vmatpush.bf16.msra.mxu1 %v6328_v16  ;;  %4692 = vmatpush.bf16.msrb.mxu3 %v6820_v52  ;;  %v7147_v16 = vld [vmem:[#allocation3 + $0x274] sm:$0xf]  ;;  %v6232_v52 = vor.u32 %v7069_v38, %v6229_v31  ;;  %v9350_v59 = vadd.f32 %v3662_v58, %v3649_v55 }
 0x3cd   : > { %v6544_v62 = vor.u32 %v7147_v16, %v6541_v53 }
 0x3ce   : > { %4680 = vmatpush.bf16.msrb.mxu2 %v6748_v49  ;;  %v7145_v49 = vld [vmem:[#allocation3 + $0x264] sm:$0xf] }
 0x3cf   : > { %4704 = vmatpush.bf16.msra.mxu0 %v6256_v35  ;;  %v6296_v35 = vor.u32 %v7085_v2, %v6293_v25  ;;  %v6536_v11 = vor.u32 %v7145_v49, %v6533_v4  ;;  %v7121_v2 = vld [vmem:[#allocation3 + $0x1a4] sm:$0xf]  ;;  %v6437_v25 = vld [vmem:[#allocation3 + $0x1a8] sm:$0xf0] }
 0x3d0   : > { %4717 = vmatpush.bf16.msra.mxu1 %v6320_v1  ;;  %4693 = vmatpush.bf16.msrb.mxu3 %v6812_v7  ;;  %v6461_v1 = vld [vmem:[#allocation3 + $0x1d8] sm:$0xf0]  ;;  %v6440_v58 = vor.u32 %v7121_v2, %v6437_v25  ;;  %v7137_v4 = vld [vmem:[#allocation3 + $0x224] sm:$0xf]  ;;  %v6485_v2 = vld [vmem:[#allocation3 + $0x208] sm:$0xf0] }
 0x3d1   : > { %v6464_v7 = vor.u32 %v7127_v0, %v6461_v1  ;;  %v7119_v1 = vld [vmem:[#allocation3 + $0x194] sm:$0xf]  ;;  %v7149_v25 = vld [vmem:[#allocation3 + $0x284] sm:$0xf] }
 0x3d2   : > { %4681 = vmatpush.bf16.msrb.mxu2 %v6740_v48  ;;  %v3651_v23 = vpop.f32.mrf.mxu0  ;;  %v6381_v48 = vld [vmem:[#allocation3 + $0x138] sm:$0xf0] }
 0x3d3   : > { %4705 = vmatpush.bf16.msra.mxu0 %v6248_v18  ;;  %v6600_v18 = vor.u32 %v7161_v6, %v6597_v60  ;;  %v3664_v24 = vpop.f32.mrf.mxu1  ;;  %v7153_v60 = vld [vmem:[#allocation3 + $0x2a4] sm:$0xf] }
 0x3d4   : > { %4718 = vmatpush.bf16.msra.mxu1 %v6312_v40  ;;  %4694 = vmatpush.bf16.msrb.mxu3 %v6804_v37  ;;  %v6589_v40 = vld [vmem:[#allocation3 + $0x2d8] sm:$0xf0]  ;;  %v7123_v37 = vld [vmem:[#allocation3 + $0x1b4] sm:$0xf] }
 0x3d5   : > { %4682 = vmatmul.bf16.vlgmr.msrb.gmra.mxu2 %v9310_v27  ;;  %v6592_v39 = vor.u32 %v7159_v22, %v6589_v40  ;;  %v7195_v22 = vld [vmem:[#allocation3 + $0x3f4] sm:$0xf] }
 0x3d6   : > { %4726 = vmatpush.bf16.msra.mxu2 %v6416_v41  ;;  %v6445_v41 = vld [vmem:[#allocation3 + $0x1b8] sm:$0xf0] }
 0x3d7   : > { %4706 = vmatpush.bf16.msra.mxu0 %v6240_v20  ;;  %4695 = vmatmul.bf16.vlgmr.msrb.gmra.mxu3 %v9312_v42  ;;  %v6384_v20 = vor.u32 %v7107_v36, %v6381_v48  ;;  %v7135_v36 = vld [vmem:[#allocation3 + $0x214] sm:$0xf]  ;;  %v6493_v48 = vld [vmem:[#allocation3 + $0x218] sm:$0xf0] }
 0x3d8   : > { %4739 = vmatpush.bf16.msra.mxu3 %v6480_v8  ;;  %4719 = vmatpush.bf16.msra.mxu1 %v6304_v28  ;;  %v7141_v8 = vld [vmem:[#allocation3 + $0x244] sm:$0xf]  ;;  %v6373_v28 = vld [vmem:[#allocation3 + $0x128] sm:$0xf0]  ;;  %v3623_v38 = vpop.f32.mrf.mxu2 }
 0x3d9   : > { %v3624_v16 = vadd.f32 %v3623_v38, %v9347_v30  ;;  %v3636_v53 = vpop.f32.mrf.mxu3  ;;  %v6376_v55 = vor.u32 %v7105_v12, %v6373_v28  ;;  %v6512_v30 = vor.u32 %v7139_v54, %v6509_v34  ;;  %v7193_v12 = vld [vmem:[#allocation3 + $0x3e4] sm:$0xf]  ;;  %v6725_v28 = vld [vmem:[#allocation3 + $0x3e8] sm:$0xf0]  ;;  %v7227_v34 = vld [vmem:[#allocation3 + $0x4f4] sm:$0xf] }
 0x3da   : > { %4727 = vmatpush.bf16.msra.mxu2 %v6408_v26  ;;  %v6584_v26 = vor.u32 %v7157_v9, %v6581_v44  ;;  %v6496_v44 = vor.u32 %v7135_v36, %v6493_v48  ;;  %v6845_v36 = vld [vmem:[#allocation3 + $0x4d8] sm:$0xf0] }
 0x3db   : > { %4707 = vmatpush.bf16.msra.mxu0 %v6232_v52  ;;  %v6573_v52 = vld [vmem:[#allocation3 + $0x2b8] sm:$0xf0]  ;;  %v9356_v63 = vadd.f32 %v3636_v53, %v3624_v16  ;;  %v9358_v43 = vpop.f32.mrf.mxu0  ;;  %v6549_v16 = vld [vmem:[#allocation3 + $0x288] sm:$0xf0]  ;;  %v7211_v53 = vld [vmem:[#allocation3 + $0x474] sm:$0xf] }
 0x3dc   : > { %4740 = vmatpush.bf16.msra.mxu3 %v6472_v29  ;;  %4720 = vmatpush.bf16.msra.mxu1 %v6296_v35  ;;  %v7155_v29 = vld [vmem:[#allocation3 + $0x2b4] sm:$0xf] }
 0x3dd   : > { %v7103_v35 = vld [vmem:[#allocation3 + $0x114] sm:$0xf]  ;;  %v6576_v49 = vor.u32 %v7155_v29, %v6573_v52  ;;  %v6728_v52 = vor.u32 %v7193_v12, %v6725_v28  ;;  %v7169_v12 = vld [vmem:[#allocation3 + $0x324] sm:$0xf]  ;;  %v6629_v28 = vld [vmem:[#allocation3 + $0x328] sm:$0xf0] }
 0x3de   : > { %4708 = vmatmul.bf16.vlgmr.msra.gmra.mxu0 %v9259_v56  ;;  %4728 = vmatpush.bf16.msra.mxu2 %v6400_v5  ;;  %v6517_v56 = vld [vmem:[#allocation3 + $0x248] sm:$0xf0]  ;;  %v9360_v0 = vpop.f32.mrf.mxu1 }
 0x3df   : > { %4752 = vmatpush.bf16.msrb.mxu0 %v6544_v62  ;;  %4721 = vmatmul.bf16.vlgmr.msra.gmra.mxu1 %v9261_v51  ;;  %v6448_v51 = vor.u32 %v7123_v37, %v6445_v41  ;;  %v6520_v31 = vor.u32 %v7141_v8, %v6517_v56  ;;  %v6365_v62 = vld [vmem:[#allocation3 + $0x118] sm:$0xf0]  ;;  %v6501_v5 = vld [vmem:[#allocation3 + $0x228] sm:$0xf0]  ;;  %v7177_v56 = vld [vmem:[#allocation3 + $0x364] sm:$0xf] }
 0x3e0   : > { %4765 = vmatpush.bf16.msrb.mxu1 %v6608_v21  ;;  %4741 = vmatpush.bf16.msra.mxu3 %v6464_v7  ;;  %v6429_v21 = vld [vmem:[#allocation3 + $0x198] sm:$0xf0]  ;;  %v6368_v6 = vor.u32 %v7103_v35, %v6365_v62  ;;  %v6565_v7 = vld [vmem:[#allocation3 + $0x2a8] sm:$0xf0]  ;;  %v6504_v47 = vor.u32 %v7137_v4, %v6501_v5  ;;  %v7175_v35 = vld [vmem:[#allocation3 + $0x354] sm:$0xf] }
 0x3e1   : > { %v6432_v13 = vor.u32 %v7119_v1, %v6429_v21  ;;  %v3638_v40 = vpop.f32.mrf.mxu3  ;;  %v6568_v23 = vor.u32 %v7153_v60, %v6565_v7  ;;  %v6557_v37 = vld [vmem:[#allocation3 + $0x298] sm:$0xf0]  ;;  %v6552_v21 = vor.u32 %v7149_v25, %v6549_v16  ;;  %v7191_v4 = vld [vmem:[#allocation3 + $0x3d4] sm:$0xf]  ;;  %v7209_v60 = vld [vmem:[#allocation3 + $0x464] sm:$0xf] }
 0x3e2   : > { %4729 = vmatpush.bf16.msra.mxu2 %v6392_v61  ;;  %v6669_v61 = vld [vmem:[#allocation3 + $0x378] sm:$0xf0]  ;;  %v6789_v7 = vld [vmem:[#allocation3 + $0x468] sm:$0xf0]  ;;  %v7203_v16 = vld [vmem:[#allocation3 + $0x434] sm:$0xf] }
 0x3e3   : > { %4753 = vmatpush.bf16.msrb.mxu0 %v6536_v11  ;;  %v6357_v11 = vld [vmem:[#allocation3 + $0x108] sm:$0xf0]  ;;  %v3703_v41 = vpop.f32.mrf.mxu0  ;;  %v6672_v8 = vor.u32 %v7179_v17, %v6669_v61  ;;  %v6653_v62 = vld [vmem:[#allocation3 + $0x358] sm:$0xf0]  ;;  %v7189_v17 = vld [vmem:[#allocation3 + $0x3c4] sm:$0xf] }
 0x3e4   : > { %4766 = vmatpush.bf16.msrb.mxu1 %v6600_v18  ;;  %4742 = vmatpush.bf16.msra.mxu3 %v6456_v33  ;;  %v3625_v18 = vpop.f32.mrf.mxu2  ;;  %v6733_v33 = vld [vmem:[#allocation3 + $0x3f8] sm:$0xf0]  ;;  %v6360_v24 = vor.u32 %v7101_v10, %v6357_v11  ;;  %v7225_v11 = vld [vmem:[#allocation3 + $0x4e4] sm:$0xf] }
 0x3e5   : > { %v6736_v9 = vor.u32 %v7195_v22, %v6733_v33  ;;  %v6717_v5 = vld [vmem:[#allocation3 + $0x3d8] sm:$0xf0]  ;;  %v6645_v18 = vld [vmem:[#allocation3 + $0x348] sm:$0xf0]  ;;  %v7207_v22 = vld [vmem:[#allocation3 + $0x454] sm:$0xf] }
 0x3e6   : > { %4730 = vmatpush.bf16.msra.mxu2 %v6384_v20  ;;  %v3716_v20 = vpop.f32.mrf.mxu1  ;;  %v6781_v40 = vld [vmem:[#allocation3 + $0x458] sm:$0xf0]  ;;  %v7223_v33 = vld [vmem:[#allocation3 + $0x4d4] sm:$0xf] }
 0x3e7   : > { %4754 = vmatpush.bf16.msrb.mxu0 %v6528_v3  ;;  %v7151_v3 = vld [vmem:[#allocation3 + $0x294] sm:$0xf]  ;;  %v7205_v20 = vld [vmem:[#allocation3 + $0x444] sm:$0xf] }
 0x3e8   : > { %4767 = vmatpush.bf16.msrb.mxu1 %v6592_v39  ;;  %4743 = vmatpush.bf16.msra.mxu3 %v6448_v51  ;;  %v6424_v39 = vor.u32 %v7117_v50, %v6421_v15  ;;  %v6661_v51 = vld [vmem:[#allocation3 + $0x368] sm:$0xf0]  ;;  %v6560_v38 = vor.u32 %v7151_v3, %v6557_v37  ;;  %v7173_v15 = vld [vmem:[#allocation3 + $0x344] sm:$0xf]  ;;  %v7171_v3 = vld [vmem:[#allocation3 + $0x334] sm:$0xf] }
 0x3e9   : > { %v6664_v54 = vor.u32 %v7177_v56, %v6661_v51  ;;  %v3688_v1 = vpop.f32.mrf.mxu3  ;;  %v6853_v50 = vld [vmem:[#allocation3 + $0x4e8] sm:$0xf0]  ;;  %v6637_v37 = vld [vmem:[#allocation3 + $0x338] sm:$0xf0]  ;;  %v7221_v51 = vld [vmem:[#allocation3 + $0x4c4] sm:$0xf] }
 0x3ea   : > { %4731 = vmatpush.bf16.msra.mxu2 %v6376_v55  ;;  %v6861_v55 = vld [vmem:[#allocation3 + $0x4f8] sm:$0xf0]  ;;  %v6856_v61 = vor.u32 %v7225_v11, %v6853_v50  ;;  %v6821_v11 = vld [vmem:[#allocation3 + $0x4a8] sm:$0xf0] }
 0x3eb   : > { %4755 = vmatpush.bf16.msrb.mxu0 %v6520_v31  ;;  %v7133_v31 = vld [vmem:[#allocation3 + $0x204] sm:$0xf]  ;;  %v6701_v56 = vld [vmem:[#allocation3 + $0x3b8] sm:$0xf0] }
 0x3ec   : > { %4768 = vmatpush.bf16.msrb.mxu1 %v6584_v26  ;;  %4744 = vmatpush.bf16.msra.mxu3 %v6440_v58  ;;  %v6797_v26 = vld [vmem:[#allocation3 + $0x478] sm:$0xf0]  ;;  %v3675_v29 = vpop.f32.mrf.mxu2  ;;  %v6488_v58 = vor.u32 %v7133_v31, %v6485_v2  ;;  %v7185_v31 = vld [vmem:[#allocation3 + $0x3a4] sm:$0xf]  ;;  %v6693_v2 = vld [vmem:[#allocation3 + $0x3a8] sm:$0xf0] }
 0x3ee   : > { %4732 = vmatpush.bf16.msra.mxu2 %v6368_v6  ;;  %v6864_v6 = vor.u32 %v7227_v34, %v6861_v55  ;;  %v6829_v34 = vld [vmem:[#allocation3 + $0x4b8] sm:$0xf0] }
 0x3ef   : > { %4756 = vmatpush.bf16.msrb.mxu0 %v6512_v30  ;;  %v3676_v30 = vadd.f32 %v3675_v29, %v9350_v59  ;;  %v6720_v59 = vor.u32 %v7191_v4, %v6717_v5  ;;  %v6685_v4 = vld [vmem:[#allocation3 + $0x398] sm:$0xf0] }
 0x3f0   : > { %4769 = vmatpush.bf16.msrb.mxu1 %v6576_v49  ;;  %4745 = vmatpush.bf16.msra.mxu3 %v6432_v13  ;;  %v6800_v49 = vor.u32 %v7211_v53, %v6797_v26  ;;  %v6656_v13 = vor.u32 %v7175_v35, %v6653_v62  ;;  %v6765_v53 = vld [vmem:[#allocation3 + $0x438] sm:$0xf0]  ;;  %v6632_v26 = vor.u32 %v7169_v12, %v6629_v28  ;;  %v7396_v28 = vld [vmem:[%s9489_s10 + $0x38] sm:$0xff] }
 0x3f1   : > { %v3689_v10 = vadd.f32 %v3688_v1, %v3676_v30  ;;  %v3690_v41 = vpop.f32.mrf.mxu3  ;;  %v6621_v35 = vld [vmem:[#allocation3 + $0x318] sm:$0xf0] }
 0x3f2   : > { %4733 = vmatpush.bf16.msra.mxu2 %v6360_v24 }
 0x3f3   : > { %4757 = vmatpush.bf16.msrb.mxu0 %v6504_v47  ;;  %v6792_v47 = vor.u32 %v7209_v60, %v6789_v7  ;;  %v6757_v60 = vld [vmem:[#allocation3 + $0x428] sm:$0xf0] }
 0x3f4   : > { %4770 = vmatpush.bf16.msrb.mxu1 %v6568_v23  ;;  %4746 = vmatpush.bf16.msra.mxu3 %v6424_v39  ;;  %v6648_v23 = vor.u32 %v7173_v15, %v6645_v18  ;;  %v6784_v39 = vor.u32 %v7207_v22, %v6781_v40  ;;  %v6613_v15 = vld [vmem:[#allocation3 + $0x308] sm:$0xf0]  ;;  %v6749_v22 = vld [vmem:[#allocation3 + $0x418] sm:$0xf0] }
 0x3f5   : > { %4734 = vmatmul.bf16.vlgmr.msra.gmra.mxu2 %v9269_v14  ;;  %v3702_v14 = vadd.f32 %v9358_v43, %v3689_v10  ;;  %v3677_v43 = vpop.f32.mrf.mxu2 }
 0x3f6   : > { %4778 = vmatpush.bf16.msrb.mxu2 %v6672_v8  ;;  %v7187_v8 = vld [vmem:[#allocation3 + $0x3b4] sm:$0xf] }
 0x3f7   : > { %4758 = vmatpush.bf16.msrb.mxu0 %v6496_v44  ;;  %4747 = vmatmul.bf16.vlgmr.msra.gmra.mxu3 %v9271_v19  ;;  %v6709_v19 = vld [vmem:[#allocation3 + $0x3c8] sm:$0xf0]  ;;  %v3715_v48 = vadd.f32 %v9360_v0, %v3702_v14  ;;  %v6640_v44 = vor.u32 %v7171_v3, %v6637_v37 }
 0x3f8   : > { %4791 = vmatpush.bf16.msrb.mxu3 %v6736_v9  ;;  %4771 = vmatpush.bf16.msrb.mxu1 %v6560_v38  ;;  %v6712_v24 = vor.u32 %v7189_v17, %v6709_v19  ;;  %v6773_v9 = vld [vmem:[#allocation3 + $0x448] sm:$0xf0] }
 0x3f9   : > { %v6837_v0 = vld [vmem:[#allocation3 + $0x4c8] sm:$0xf0]  ;;  %v6776_v38 = vor.u32 %v7205_v20, %v6773_v9  ;;  %v3740_v1 = vpop.f32.mrf.mxu3 }
 0x3fa   : > { %4779 = vmatpush.bf16.msrb.mxu2 %v6664_v54  ;;  %v6840_v25 = vor.u32 %v7221_v51, %v6837_v0  ;;  %v7219_v54 = vld [vmem:[#allocation3 + $0x4b4] sm:$0xf]  ;;  %v6677_v17 = vld [vmem:[#allocation3 + $0x388] sm:$0xf0] }
 0x3fb   : > { %4759 = vmatpush.bf16.msrb.mxu0 %v6488_v58  ;;  %v3753_v55 = vpop.f32.mrf.mxu0  ;;  %v7167_v58 = vld [vmem:[#allocation3 + $0x314] sm:$0xf]  ;;  %v6832_v5 = vor.u32 %v7219_v54, %v6829_v34  ;;  %v6805_v20 = vld [vmem:[#allocation3 + $0x488] sm:$0xf0] }
 0x3fc   : > { %4792 = vmatpush.bf16.msrb.mxu3 %v6728_v52  ;;  %4772 = vmatpush.bf16.msrb.mxu1 %v6552_v21  ;;  %v6696_v52 = vor.u32 %v7185_v31, %v6693_v2  ;;  %v3766_v62 = vpop.f32.mrf.mxu1  ;;  %v6768_v21 = vor.u32 %v7203_v16, %v6765_v53  ;;  %v6624_v10 = vor.u32 %v7167_v58, %v6621_v35  ;;  %v7391_v16 = vld [vmem:[%s9489_s10 + $0x10] sm:$0xff]  ;;  %v7389_v58 = vld [vmem:[%s9489_s10] sm:$0xff] }
 0x3fd   : > { %v3727_v29 = vpop.f32.mrf.mxu2 }
 0x3fe   : > { %4760 = vmatmul.bf16.vlgmr.msrb.gmra.mxu0 %v9283_v45  ;;  %4780 = vmatpush.bf16.msrb.mxu2 %v6656_v13  ;;  %v6848_v45 = vor.u32 %v7223_v33, %v6845_v36  ;;  %v3728_v30 = vadd.f32 %v3727_v29, %v3715_v48  ;;  %v7217_v13 = vld [vmem:[#allocation3 + $0x4a4] sm:$0xf]  ;;  %v6813_v33 = vld [vmem:[#allocation3 + $0x498] sm:$0xf0] }
 0x3ff   : > { %4804 = vmatpush.bf16.msra.mxu0 %v6800_v49  ;;  %4773 = vmatmul.bf16.vlgmr.msrb.gmra.mxu1 %v9285_v57  ;;  %v6704_v57 = vor.u32 %v7187_v8, %v6701_v56  ;;  %v7183_v49 = vld [vmem:[#allocation3 + $0x394] sm:$0xf]  ;;  %v6824_v19 = vor.u32 %v7217_v13, %v6821_v11  ;;  %v7197_v8 = vld [vmem:[#allocation3 + $0x404] sm:$0xf]  ;;  %v6741_v56 = vld [vmem:[#allocation3 + $0x408] sm:$0xf0] }
 0x400   : > { %4817 = vmatpush.bf16.msra.mxu1 %v6864_v6  ;;  %4793 = vmatpush.bf16.msrb.mxu3 %v6720_v59  ;;  %v7201_v6 = vld [vmem:[#allocation3 + $0x424] sm:$0xf]  ;;  %v3741_v7 = vadd.f32 %v3740_v1, %v3728_v30  ;;  %v6688_v50 = vor.u32 %v7183_v49, %v6685_v4  ;;  %v6744_v9 = vor.u32 %v7197_v8, %v6741_v56 }
 0x401   : > { %v7165_v59 = vld [vmem:[#allocation3 + $0x304] sm:$0xf]  ;;  %v6760_v14 = vor.u32 %v7201_v6, %v6757_v60  ;;  %v3742_v37 = vpop.f32.mrf.mxu3  ;;  %v9403_v6 = vld [vmem:[%s9487_s8] sm:$0x3] }
 0x402   : > { %4781 = vmatpush.bf16.msrb.mxu2 %v6648_v23  ;;  %v3754_v18 = vadd.f32 %v3753_v55, %v3741_v7  ;;  %v6616_v40 = vor.u32 %v7165_v59, %v6613_v15  ;;  %v7215_v23 = vld [vmem:[#allocation3 + $0x494] sm:$0xf]  ;;  %v7390_v29 = vld [vmem:[%s9489_s10 + $0x8] sm:$0xff]  ;;  %v4832_v59 = vperm.slane %v9403_v6, 0 }
 0x403   : > { %4805 = vmatpush.bf16.msra.mxu0 %v6792_v47  ;;  %v7181_v47 = vld [vmem:[#allocation3 + $0x384] sm:$0xf]  ;;  %v3755_v48 = vpop.f32.mrf.mxu0  ;;  %v7400_v37 = vld [vmem:[%s9489_s10 + $0x58] sm:$0xff] }
 0x404   : > { %4818 = vmatpush.bf16.msra.mxu1 %v6856_v61  ;;  %4794 = vmatpush.bf16.msrb.mxu3 %v6712_v24  ;;  %v7199_v61 = vld [vmem:[#allocation3 + $0x414] sm:$0xf]  ;;  %v9369_v36 = vadd.f32 %v3766_v62, %v3754_v18  ;;  %v6680_v24 = vor.u32 %v7181_v47, %v6677_v17  ;;  %v3768_v3 = vpop.f32.mrf.mxu1 }
 0x405   : > { %v3729_v43 = vpop.f32.mrf.mxu2  ;;  %v6752_v41 = vor.u32 %v7199_v61, %v6749_v22  ;;  %v7404_v17 = vld [vmem:[%s9489_s10 + $0x78] sm:$0xff]  ;;  %v7401_v3 = vld [vmem:[%s9489_s10 + $0x60] sm:$0xff] }
 0x406   : > { %4782 = vmatpush.bf16.msrb.mxu2 %v6640_v44 }
 0x407   : > { %4806 = vmatpush.bf16.msra.mxu0 %v6784_v39  ;;  %v6816_v39 = vor.u32 %v7215_v23, %v6813_v33 }
 0x408   : > { %4819 = vmatpush.bf16.msra.mxu1 %v6848_v45  ;;  %4795 = vmatpush.bf16.msrb.mxu3 %v6704_v57  ;;  %v7213_v45 = vld [vmem:[#allocation3 + $0x484] sm:$0xf] }
 0x409   : > { %v6808_v44 = vor.u32 %v7213_v45, %v6805_v20  ;;  %v7399_v45 = vld [vmem:[%s9489_s10 + $0x50] sm:$0xff]  ;;  %v7398_v20 = vld [vmem:[%s9489_s10 + $0x48] sm:$0xff] }
 0x40a   : > { %4783 = vmatpush.bf16.msrb.mxu2 %v6632_v26 }
 0x40b   : > { %4807 = vmatpush.bf16.msra.mxu0 %v6776_v38 }
 0x40c   : > { %4820 = vmatpush.bf16.msra.mxu1 %v6840_v25  ;;  %4796 = vmatpush.bf16.msrb.mxu3 %v6696_v52  ;;  %v7392_v25 = vld [vmem:[%s9489_s10 + $0x18] sm:$0xff] }
 0x40e   : > { %4784 = vmatpush.bf16.msrb.mxu2 %v6624_v10  ;;  %v9408_v10 = vld [vmem:[%s9488_s9] sm:$0x3] }
 0x40f   : > { %4808 = vmatpush.bf16.msra.mxu0 %v6768_v21 }
 0x410   : > { %4821 = vmatpush.bf16.msra.mxu1 %v6832_v5  ;;  %4797 = vmatpush.bf16.msrb.mxu3 %v6688_v50 }
 0x412   : > { %4785 = vmatpush.bf16.msrb.mxu2 %v6616_v40  ;;  %v7403_v40 = vld [vmem:[%s9489_s10 + $0x70] sm:$0xff] }
 0x413   : > { %4809 = vmatpush.bf16.msra.mxu0 %v6760_v14  ;;  %v4840_v14 = vperm.slane %v9408_v10, 0 }
 0x414   : > { %4822 = vmatpush.bf16.msra.mxu1 %v6824_v19  ;;  %4798 = vmatpush.bf16.msrb.mxu3 %v6680_v24  ;;  %v7402_v24 = vld [vmem:[%s9489_s10 + $0x68] sm:$0xff] }
 0x415   : > { %4786 = vmatmul.bf16.vlgmr.msrb.gmra.mxu2 %v9293_v46  ;;  %v7395_v46 = vld [vmem:[%s9489_s10 + $0x30] sm:$0xff] }
 0x416   : > { %4978 = vmatpush.bf16.msra.mxu2 %v7396_v28 }
 0x417   : > { %4810 = vmatpush.bf16.msra.mxu0 %v6752_v41  ;;  %4799 = vmatmul.bf16.vlgmr.msrb.gmra.mxu3 %v9295_v32 }
 0x418   : > { %4823 = vmatpush.bf16.msra.mxu1 %v6816_v39  ;;  %v4579_v51 = vpop.f32.mrf.mxu2  ;;  %4991 = vmatpush.bf16.msra.mxu3 %v7404_v17 }
 0x419   : > { %v4580_v55 = vadd.f32 %v4579_v51, %v9356_v63 }
 0x41a   : > { %v4592_v57 = vpop.f32.mrf.mxu3  ;;  %4979 = vmatpush.bf16.msra.mxu2 %v7395_v46 }
 0x41b   : > { %4811 = vmatpush.bf16.msra.mxu0 %v6744_v9  ;;  %v4605_v0 = vpop.f32.mrf.mxu0  ;;  %v4593_v52 = vadd.f32 %v4592_v57, %v4580_v55 }
 0x41c   : > { %4824 = vmatpush.bf16.msra.mxu1 %v6808_v44  ;;  %v4618_v12 = vpop.f32.mrf.mxu1  ;;  %4992 = vmatpush.bf16.msra.mxu3 %v7403_v40 }
 0x41d   : > { %v4606_v21 = vadd.f32 %v4605_v0, %v4593_v52 }
 0x41e   : > { %4812 = vmatmul.bf16.vlgmr.msra.gmra.mxu0 %v9310_v27  ;;  %v7394_v27 = vld [vmem:[%s9489_s10 + $0x28] sm:$0xff] }
 0x41f   : > { %4825 = vmatmul.bf16.vlgmr.msra.gmra.mxu1 %v9312_v42  ;;  %4980 = vmatpush.bf16.msra.mxu2 %v7394_v27  ;;  %v7393_v42 = vld [vmem:[%s9489_s10 + $0x20] sm:$0xff]  ;;  %v4619_v49 = vadd.f32 %v4618_v12, %v4606_v21  ;;  %v7412_v21 = vld [vmem:[%s9492_s13 + $0x38] sm:$0xff] }
 0x420   : > { %v4581_v38 = vpop.f32.mrf.mxu2  ;;  %4993 = vmatpush.bf16.msra.mxu3 %v7402_v24  ;;  %v7397_v12 = vld [vmem:[%s9489_s10 + $0x40] sm:$0xff]  ;;  %5084 = vmatpush.bf16.msrb.mxu0 %v7412_v21 }
 0x422   : > { %v4594_v32 = vpop.f32.mrf.mxu3 }
 0x423   : > { %v4607_v31 = vpop.f32.mrf.mxu0  ;;  %4981 = vmatpush.bf16.msra.mxu2 %v7393_v42 }
 0x424   : > { %v4620_v2 = vpop.f32.mrf.mxu1  ;;  %4994 = vmatpush.bf16.msra.mxu3 %v7401_v3 }
 0x427   : > { %4982 = vmatpush.bf16.msra.mxu2 %v7392_v25 }
 0x428   : > { %4995 = vmatpush.bf16.msra.mxu3 %v7400_v37 }
 0x42b   : > { %4983 = vmatpush.bf16.msra.mxu2 %v7391_v16 }
 0x42c   : > { %4996 = vmatpush.bf16.msra.mxu3 %v7399_v45 }
 0x42f   : > { %4984 = vmatpush.bf16.msra.mxu2 %v7390_v29 }
 0x430   : > { %4997 = vmatpush.bf16.msra.mxu3 %v7398_v20 }
 0x433   : > { %4985 = vmatpush.bf16.msra.mxu2 %v7389_v58 }
 0x434   : > { %4998 = vmatpush.bf16.msra.mxu3 %v7397_v12 }
 0x438   : > { %v4631_v53 = vpop.f32.mrf.mxu2 }
 0x439   : > { %v4632_v4 = vadd.f32 %v4631_v53, %v4619_v49  ;;  %v7411_v49 = vld [vmem:[%s9492_s13 + $0x30] sm:$0xff] }
 0x43a   : > { %v4644_v54 = vpop.f32.mrf.mxu3  ;;  %5085 = vmatpush.bf16.msrb.mxu0 %v7411_v49 }
 0x43b   : > { %v4657_v26 = vpop.f32.mrf.mxu0  ;;  %v4645_v5 = vadd.f32 %v4644_v54, %v4632_v4  ;;  %v4833_v54 = vperm.slane %v9403_v6, 1  ;;  %v7410_v4 = vld [vmem:[%s9492_s13 + $0x28] sm:$0xff] }
 0x43c   : > { %v4670_v34 = vpop.f32.mrf.mxu1 }
 0x43d   : > { %v4658_v63 = vadd.f32 %v4657_v26, %v4645_v5  ;;  %v7409_v5 = vld [vmem:[%s9492_s13 + $0x20] sm:$0xff] }
 0x43e   : > { %5086 = vmatpush.bf16.msrb.mxu0 %v7410_v4 }
 0x43f   : > { %v4671_v60 = vadd.f32 %v4670_v34, %v4658_v63  ;;  %v4841_v34 = vperm.slane %v9408_v10, 1  ;;  %v7408_v63 = vld [vmem:[%s9492_s13 + $0x18] sm:$0xff]  ;;  %v7406_v10 = vld [vmem:[%s9492_s13 + $0x8] sm:$0xff] }
 0x440   : > { %v4633_v35 = vpop.f32.mrf.mxu2 }
 0x442   : > { %v4646_v30 = vpop.f32.mrf.mxu3  ;;  %5087 = vmatpush.bf16.msrb.mxu0 %v7409_v5 }
 0x443   : > { %v4659_v62 = vpop.f32.mrf.mxu0 }
 0x444   : > { %v4672_v1 = vpop.f32.mrf.mxu1 }
 0x446   : > { %5088 = vmatpush.bf16.msrb.mxu0 %v7408_v63 }
 0x458   : > { %v4683_v7 = vpop.f32.mrf.mxu2 }
 0x459   : > { %v4684_v11 = vadd.f32 %v4683_v7, %v4671_v60  ;;  %v7407_v7 = vld [vmem:[%s9492_s13 + $0x10] sm:$0xff] }
 0x45a   : > { %v4696_v50 = vpop.f32.mrf.mxu3  ;;  %5089 = vmatpush.bf16.msrb.mxu0 %v7407_v7 }
 0x45b   : > { %v4709_v13 = vpop.f32.mrf.mxu0  ;;  %v4697_v18 = vadd.f32 %v4696_v50, %v4684_v11  ;;  %v7440_v11 = vld [vmem:[%s9490_s11] ss:$0 sm:$0xff] }
 0x45c   : > { %v4722_v15 = vpop.f32.mrf.mxu1  ;;  %v4710_v57 = vadd.f32 %v4709_v13, %v9369_v36  ;;  %v7405_v13 = vld [vmem:[%s9492_s13] sm:$0xff] }
 0x45d   : > { %v4836_v47 = vmul.f32 %v4832_v59, %v4697_v18 }
 0x45e   : > { %v4723_v28 = vadd.f32 %v4722_v15, %v4710_v57  ;;  %5090 = vmatpush.bf16.msrb.mxu0 %v7406_v10  ;;  %v7441_v15 = vld [vmem:[%s9491_s12] ss:$0 sm:$0xff] }
 0x45f   : > { %v4844_v19 = vadd.f32 %v4840_v14, %v4836_v47 }
 0x460   : > { %v4685_v61 = vpop.f32.mrf.mxu2 }
 0x461   : > { %v4846_v23 = vmax.f32 %v4844_v19, 0.0  ;;  %v7442_v61 = vld [vmem:[%s9493_s14] ss:$0 sm:$0xff] }
 0x462   : > { %v4698_v33 = vpop.f32.mrf.mxu3  ;;  %5091 = vmatpush.bf16.msrb.mxu0 %v7405_v13 }
 0x463   : > { %v4711_v22 = vpop.f32.mrf.mxu0  ;;  %v4848_v43 = vpack.c.bf16 %v4846_v23, %v4846_v23 }
 0x464   : > { %v4724_v48 = vpop.f32.mrf.mxu1 }
 0x465   : > { %4986 = vmatmul.bf16.vlgmr.msra.gmra.mxu2 %v4848_v43 }
 0x478   : > { %v4735_v41 = vpop.f32.mrf.mxu2 }
 0x479   : > { %v4736_v38 = vadd.f32 %v4735_v41, %v4723_v28 }
 0x47a   : > { %v4748_v8 = vpop.f32.mrf.mxu3 }
 0x47b   : > { %v4761_v39 = vpop.f32.mrf.mxu0  ;;  %v4749_v31 = vadd.f32 %v4748_v8, %v4736_v38 }
 0x47c   : > { %v4774_v56 = vpop.f32.mrf.mxu1 }
 0x47d   : > { %v4762_v46 = vadd.f32 %v4761_v39, %v4749_v31 }
 0x47f   : > { %v4775_v32 = vadd.f32 %v4774_v56, %v4762_v46 }
 0x480   : > { %v4737_v9 = vpop.f32.mrf.mxu2 }
 0x482   : > { %v4750_v51 = vpop.f32.mrf.mxu3 }
 0x483   : > { %v4763_v44 = vpop.f32.mrf.mxu0 }
 0x484   : > { %v4776_v0 = vpop.f32.mrf.mxu1 }
 0x498   : > { %v4787_v2 = vpop.f32.mrf.mxu2 }
 0x499   : > { %v4788_v42 = vadd.f32 %v4787_v2, %v4775_v32 }
 0x49a   : > { %v4800_v25 = vpop.f32.mrf.mxu3 }
 0x49b   : > { %v4813_v27 = vpop.f32.mrf.mxu0  ;;  %v4801_v53 = vadd.f32 %v4800_v25, %v4788_v42 }
 0x49c   : > { %v4826_v16 = vpop.f32.mrf.mxu1 }
 0x49d   : > { %v4814_v26 = vadd.f32 %v4813_v27, %v4801_v53 }
 0x49f   : > { %v4827_v36 = vadd.f32 %v4826_v16, %v4814_v26 }
 0x4a0   : > { %v4789_v55 = vpop.f32.mrf.mxu2 }
 0x4a1   : > { %v4837_v52 = vmul.f32 %v4833_v54, %v4827_v36 }
 0x4a2   : > { %v4802_v58 = vpop.f32.mrf.mxu3 }
 0x4a3   : > { %v4815_v29 = vpop.f32.mrf.mxu0  ;;  %v4845_v62 = vadd.f32 %v4841_v34, %v4837_v52 }
 0x4a4   : > { %v4828_v35 = vpop.f32.mrf.mxu1 }
 0x4a5   : > { %v4847_v30 = vmax.f32 %v4845_v62, 0.0 }
 0x4a7   : > { %v4849_v1 = vpack.c.bf16 %v4847_v30, %v4847_v30 }
 0x4a9   : > { %4999 = vmatmul.bf16.vlgmr.msra.gmra.mxu3 %v4849_v1 }
 0x4e8   : > { %v4987_v6 = vpop.f32.mrf.mxu2 }
 0x4f0   : > { %v4989_v60 = vpop.f32.mrf.mxu2 }
 0x52c   : > { %v5000_v50 = vpop.f32.mrf.mxu3 }
 0x52d   : > { %v5001_v59 = vadd.f32 %v5000_v50, %v4987_v6 }
 0x52f   : > { %v5008_v18 = vmul.f32 %v7440_v11, %v5001_v59 }
 0x531   : > { %v5013_v14 = vadd.f32 %v7441_v15, %v5008_v18 }
 0x533   : > { %v5014_v47 = vmax.f32 %v5013_v14, 0.0 }
 0x534   : > { %v5002_v17 = vpop.f32.mrf.mxu3 }
 0x535   : > { %v5015_v19 = vpack.c.bf16 %v5014_v47, %v5014_v47 }
 0x537   : > { %5092 = vmatmul.bf16.vlgmr.msrb.gmra.mxu0 %v5015_v19 }
 0x5b4   : > { %v5093_v22 = vpop.f32.mrf.mxu0 }
 0x5b5   : > { %v5094_v40 = vadd.f32 %v7442_v61, %v5093_v22 }
 0x5b7   : > { %5097 = vst [vmem:[#allocation6] sm:$0x3] %v5094_v40 }
 0x5bc   : > { %v5095_v23 = vpop.f32.mrf.mxu0 }
 0x5bd PF: > { %p7423_p6 = scmp.eq.s32.totalorder %s7576_s19, 3  ;;  %s7489_s30 = smov [#allocation6]  }
 0x5be   : > { %s5104_s16 = sshll.u32 %s7489_s30, 4  ;;  %s5106_s20 = sshll.u32 %s9494_s15, 4  ;;  %s5105_s16 = int_to_ptr.vmem [resolvable:$true] %s5104_s16  ;;  %s5107_s20 = int_to_ptr.hbm [resolvable:$true] %s5106_s20 }
 0x5bf   : > { %7420 = dma.vmem_to_hbm [thread:$0]  (%p7423_p6), %s5105_s16, 32, %s5107_s20, [#allocation7]  }
 0x5c0   : > { %7480 = dma.done.wait (%p7423_p6), [#allocation7], 32  }
 0x5c1   : > { %7482 = vsyncadd (%p7423_p6), [#allocation7], 4294967264 }
 0x5c2 PF: > { %s26_s18 = sadd.s32 1, %s7485_s18  }
 0x5c3   : > { %p23_p7 = scmp.ge.s32.totalorder %s26_s18, 6  }
 0x5c5   :  { %25 = sbr.rel (!%p23_p7) target bundleno = 1 (0x1), region = 157 }
 0x5ca   :  { %5120 = vsyncpa [#allocation7], 1 }
 0x5cb   :  { %5122 = vsyncpa [#allocation7 + $0x1], 1 }
 0x5cc   :  { %5123 = vsyncmov [#allocation5] }
 0x5cf   :  { %s5124_s19 = vpop.sfrf %5123 }
 0x5d0   :  { %p6965_p8 = scmp.ne.s32.totalorder %s5124_s19, 0 }
 0x5d2   :  { %5128 = shalt.err (%p6965_p8)  }
 0x5d3   :  { %5130 = vsyncmov [#allocation5 + $0x1] }
 0x5d6   :  { %s5131_s21 = vpop.sfrf %5130 }
 0x5d7   :  { %p6966_p9 = scmp.ne.s32.totalorder %s5131_s21, 0 }
 0x5d9   :  { %5135 = shalt.err (%p6966_p9)  }

</bundles_post_ra>
